<compile_context>
chip_gen: v5e
topology: v5e:2x2
jax: 0.10.0
libtpu: 0.0.40
codegen_flags: <defaults>
</compile_context>

<pallas_src>
import functools

import jax
import jax.numpy as jnp
from jax.experimental import pallas as pl
from jax.experimental.pallas import tpu as pltpu


# ----------------------------------------------------------------------------
# Hardware-aware constants
# ----------------------------------------------------------------------------

@functools.lru_cache(maxsize=None)
def _vmem_capacity_bytes():
    try:
        return int(pltpu.get_tpu_info().vmem_capacity_bytes)
    except Exception:
        return 128 * 1024 * 1024


@functools.lru_cache(maxsize=None)
def _vmem_limit_bytes():
    # ~100 MB on 128 MiB-VMEM chips (v5e/v6e), ~51 MB on 64 MiB chips (v7x).
    return int(min(100 * 1024 * 1024, _vmem_capacity_bytes() * 4 // 5))


@functools.lru_cache(maxsize=None)
def _single_buffering_supported():
    """Probe whether pipeline_mode=pl.Buffered(1) works on this jax build."""
    try:
        def _k(a_ref, o_ref):
            o_ref[...] = a_ref[...] + 1.0

        x = jnp.zeros((8, 128), jnp.float32)
        y = pl.pallas_call(
            _k,
            grid=(1,),
            in_specs=[pl.BlockSpec((8, 128), lambda i: (0, 0),
                                   pipeline_mode=pl.Buffered(1))],
            out_specs=pl.BlockSpec((8, 128), lambda i: (0, 0)),
            out_shape=jax.ShapeDtypeStruct((8, 128), jnp.float32),
        )(x)
        jax.block_until_ready(y)
        return True
    except Exception:
        return False


def _const_spec(block_shape):
    """BlockSpec for operands whose index_map is constant (weights, LN params).

    Single-buffered when supported (they are never re-fetched, so the default
    double-buffering only wastes VMEM)."""
    zeros = (0,) * len(block_shape)
    index_map = lambda *args: zeros  # noqa: E731  (works for any grid rank)
    if _single_buffering_supported():
        return pl.BlockSpec(block_shape, index_map, pipeline_mode=pl.Buffered(1))
    return pl.BlockSpec(block_shape, index_map)


def _row_tile(m):
    cap = 512 if _vmem_capacity_bytes() >= 100 * 1024 * 1024 else 256
    for t in (512, 256, 128, 64, 32, 16, 8):
        if t <= cap and m % t == 0:
            return t
    return m  # full extent (always legal)


def _seq_tile(s):
    if s <= 256:
        return s
    for t in (256, 128, 64):
        if s % t == 0:
            return t
    return s


# ----------------------------------------------------------------------------
# Small shared helpers (traced inside kernels)
# ----------------------------------------------------------------------------

def _layernorm_f32(x, g, b, eps=1e-5):
    # torch.nn.LayerNorm semantics, f32 math. g/b are [1, H].
    mu = jnp.mean(x, axis=-1, keepdims=True)
    var = jnp.mean(jnp.square(x - mu), axis=-1, keepdims=True)
    return (x - mu) * jax.lax.rsqrt(var + eps) * g + b


def _gelu_tanh(x):
    # TODO(synk): tanh approximation; swap for exact erf GELU if the reference
    # hidden_act is nn.GELU's default erf form.
    return 0.5 * x * (1.0 + jnp.tanh(0.7978845608028654 * (x + 0.044715 * x * x * x)))


# ----------------------------------------------------------------------------
# Pallas kernels
# ----------------------------------------------------------------------------

def _attn_block_kernel(xq_ref, xkv_ref, gq_ref, bq_ref, gkv_ref, bkv_ref,
                       qw_ref, qb_ref, kvw_ref, kvb_ref, ow_ref, ob_ref,
                       bias_ref, o_ref, *, n_head, d_key, d_value):
    """out = x_q + output_fc( MHA( LN(x_q), LN(x_kv), LN(x_kv) ) )."""
    xq = xq_ref[0].astype(jnp.float32)                               # [Tq, Dq]
    xkv = xkv_ref[0].astype(jnp.float32)                             # [Sk, Dkv]
    xqn = _layernorm_f32(xq, gq_ref[...], bq_ref[...])
    xkvn = _layernorm_f32(xkv, gkv_ref[...], bkv_ref[...])

    # Q projection (1/sqrt(d_key) folded into qw/qb), fused K|V projection.
    q = jnp.dot(xqn.astype(jnp.bfloat16), qw_ref[...],
                preferred_element_type=jnp.float32) + qb_ref[...]    # [Tq, H*dk]
    kv = jnp.dot(xkvn.astype(jnp.bfloat16), kvw_ref[...],
                 preferred_element_type=jnp.float32) + kvb_ref[...]  # [Sk, H*(dk+dv)]
    hq = n_head * d_key
    k = kv[:, :hq]
    v = kv[:, hq:hq + n_head * d_value]

    # Per-head attention; contexts concatenated so the output projection is a
    # single wide matmul with K = n_head * d_value (perf-review item 1).
    ctx_parts = []
    for h in range(n_head):
        qh = q[:, h * d_key:(h + 1) * d_key].astype(jnp.bfloat16)
        kh = k[:, h * d_key:(h + 1) * d_key].astype(jnp.bfloat16)
        vh = v[:, h * d_value:(h + 1) * d_value].astype(jnp.bfloat16)
        # scores = qh @ kh^T (contract the head dim; no explicit transpose)
        s = jax.lax.dot_general(qh, kh, (((1,), (1,)), ((), ())),
                                preferred_element_type=jnp.float32)  # [Tq, Sk]
        s = s + bias_ref[0, h].astype(jnp.float32)
        s = s - jnp.max(s, axis=-1, keepdims=True)
        p = jnp.exp(s)
        p = p * pl.reciprocal(jnp.sum(p, axis=-1, keepdims=True), approx=True)
        ctx_parts.append(jnp.dot(p.astype(jnp.bfloat16), vh,
                                 preferred_element_type=jnp.float32))  # [Tq, dv]
    ctx_all = ctx_parts[0] if n_head == 1 else jnp.concatenate(ctx_parts, axis=-1)

    attn = jnp.dot(ctx_all.astype(jnp.bfloat16), ow_ref[...],
                   preferred_element_type=jnp.float32)               # [Tq, Do]
    o_ref[0] = (attn + ob_ref[...] + xq).astype(o_ref.dtype)         # residual ('da')


def _ffn_residual(x_ref, g_ref, b_ref, w0_ref, b0_ref, w1_ref, b1_ref):
    # x + fc1( gelu( fc0( LN(x) ) ) )
    x = x_ref[...].astype(jnp.float32)                               # [TM, H]
    xn = _layernorm_f32(x, g_ref[...], b_ref[...])
    h = jnp.dot(xn.astype(jnp.bfloat16), w0_ref[...],
                preferred_element_type=jnp.float32) + b0_ref[...]
    h = _gelu_tanh(h)
    out = jnp.dot(h.astype(jnp.bfloat16), w1_ref[...],
                  preferred_element_type=jnp.float32) + b1_ref[...]
    return out + x                                                   # residual ('da')


def _ffn_block_kernel(x_ref, g_ref, b_ref, w0_ref, b0_ref, w1_ref, b1_ref, o_ref):
    o_ref[...] = _ffn_residual(x_ref, g_ref, b_ref, w0_ref, b0_ref,
                               w1_ref, b1_ref).astype(o_ref.dtype)


def _ffn_post_ln_block_kernel(x_ref, g_ref, b_ref, w0_ref, b0_ref, w1_ref, b1_ref,
                              pg_ref, pb_ref, o_ref):
    # FFN block with the final post-encoder LayerNorm fused into the epilogue.
    res = _ffn_residual(x_ref, g_ref, b_ref, w0_ref, b0_ref, w1_ref, b1_ref)
    o_ref[...] = _layernorm_f32(res, pg_ref[...], pb_ref[...]).astype(o_ref.dtype)


# ----------------------------------------------------------------------------
# pallas_call wrappers
# ----------------------------------------------------------------------------

def attn_block(fp, x_q, x_kv, bias, n_head, d_key, d_value):
    """Fused (pre-LN + MHA + output proj + residual) block.

    Self-attention is the special case x_q is x_kv with shared LN params."""
    B, Sq, Dq = x_q.shape
    _, Sk, Dkv = x_kv.shape
    nq = fp["q_w"].shape[1]
    nkv = fp["kv_w"].shape[1]
    ho, do = fp["o_w"].shape
    tq = _seq_tile(Sq)
    n_qt = Sq // tq

    kern = functools.partial(_attn_block_kernel,
                             n_head=n_head, d_key=d_key, d_value=d_value)
    return pl.pallas_call(
        kern,
        grid=(B, n_qt),
        out_shape=jax.ShapeDtypeStruct((B, Sq, do), x_q.dtype),
        in_specs=[
            pl.BlockSpec((1, tq, Dq), lambda b, qi: (b, qi, 0)),     # query rows
            pl.BlockSpec((1, Sk, Dkv), lambda b, qi: (b, 0, 0)),     # full kv seq
            _const_spec((1, Dq)), _const_spec((1, Dq)),              # q-side LN
            _const_spec((1, Dkv)), _const_spec((1, Dkv)),            # kv-side LN
            _const_spec((Dq, nq)), _const_spec((1, nq)),             # Q proj
            _const_spec((Dkv, nkv)), _const_spec((1, nkv)),          # K|V proj
            _const_spec((ho, do)), _const_spec((1, do)),             # output proj
            pl.BlockSpec((1, n_head, tq, Sk), lambda b, qi: (b, 0, qi, 0)),
        ],
        out_specs=pl.BlockSpec((1, tq, do), lambda b, qi: (b, qi, 0)),
        compiler_params=pltpu.CompilerParams(
            dimension_semantics=("parallel", "parallel"),
            vmem_limit_bytes=_vmem_limit_bytes()),
    )(x_q, x_kv, fp["ln_q_g"], fp["ln_q_b"], fp["ln_kv_g"], fp["ln_kv_b"],
      fp["q_w"], fp["q_b"], fp["kv_w"], fp["kv_b"], fp["o_w"], fp["o_b"], bias)


def ffn_block(fp, x, post_ln=None):
    """Fused (pre-LN + fc0 + gelu + fc1 + residual [+ final LN]) block."""
    B, S, H = x.shape
    M = B * S
    D = fp["w0"].shape[1]
    tm = _row_tile(M)

    in_specs = [
        pl.BlockSpec((tm, H), lambda i: (i, 0)),
        _const_spec((1, H)), _const_spec((1, H)),
        _const_spec((H, D)), _const_spec((1, D)),
        _const_spec((D, H)), _const_spec((1, H)),
    ]
    args = [x.reshape(M, H), fp["ln_g"], fp["ln_b"],
            fp["w0"], fp["b0"], fp["w1"], fp["b1"]]
    if post_ln is None:
        kern = _ffn_block_kernel
    else:
        kern = _ffn_post_ln_block_kernel
        in_specs += [_const_spec((1, H)), _const_spec((1, H))]
        args += [post_ln[0], post_ln[1]]

    out = pl.pallas_call(
        kern,
        grid=(M // tm,),
        out_shape=jax.ShapeDtypeStruct((M, H), x.dtype),
        in_specs=in_specs,
        out_specs=pl.BlockSpec((tm, H), lambda i: (i, 0)),
        compiler_params=pltpu.CompilerParams(
            dimension_semantics=("parallel",),
            vmem_limit_bytes=_vmem_limit_bytes()),
    )(*args)
    return out.reshape(B, S, H)


# ----------------------------------------------------------------------------
# Layer / encoder composition (all inside one jax.jit)
# ----------------------------------------------------------------------------

def encoder_layer_fwd(fp, x, bias, n_head, d_key, d_value, post_ln=None):
    attn_out = attn_block(fp["attn"], x, x, bias, n_head, d_key, d_value)
    return ffn_block(fp["ffn"], attn_out, post_ln=post_ln)


def encoder_co_layer_fwd(fp, x_t, x_v, bias_vq, bias_tq, co_head, co_key, co_value):
    # text query attends over visual kv (bias_tq = transposed bias),
    # visual query attends over text kv (bias_vq = original bias).
    attn_t = attn_block(fp["t"], x_t, x_v, bias_tq, co_head, co_key, co_value)
    attn_v = attn_block(fp["v"], x_v, x_t, bias_vq, co_head, co_key, co_value)
    out_t = ffn_block(fp["ffn_t"], attn_t)
    out_v = ffn_block(fp["ffn_v"], attn_v)
    return out_t, out_v


def encoder_forward(cfg, fp, enc_input, enc_vl_input,
                    attn_bias, attn_image_bias, attn_vl_bias):
    # Attention-bias streams in bf16 (review item 4) and the co-attention bias
    # transpose hoisted to once per forward (review item 11).
    attn_bias = attn_bias.astype(jnp.bfloat16)
    attn_image_bias = attn_image_bias.astype(jnp.bfloat16)
    attn_vl_bias = attn_vl_bias.astype(jnp.bfloat16)
    attn_vl_bias_t = jnp.transpose(attn_vl_bias, (0, 1, 3, 2))

    v_start, t_start, block = 0, 0, 0
    v_end = t_end = None
    enc_output = enc_vl_output = None

    for v_layer_id, t_layer_id in zip(cfg["v_biattention_id"], cfg["t_biattention_id"]):
        v_end, t_end = v_layer_id, t_layer_id
        for idx in range(t_start, t_end):
            enc_output = encoder_layer_fwd(fp["layers"][idx], enc_input, attn_bias,
                                           cfg["n_head"], cfg["d_key"], cfg["d_value"])
            enc_input = enc_output
        for idx in range(v_start, v_end):
            enc_vl_output = encoder_layer_fwd(fp["vlayers"][idx], enc_vl_input,
                                              attn_image_bias,
                                              cfg["v_head"], cfg["v_key"], cfg["v_value"])
            enc_vl_input = enc_vl_output
        enc_output, enc_vl_output = encoder_co_layer_fwd(
            fp["colayers"][block], enc_input, enc_vl_input,
            attn_vl_bias, attn_vl_bias_t,
            cfg["co_head"], cfg["co_key"], cfg["co_value"])
        enc_input, enc_vl_input = enc_output, enc_vl_output
        block += 1
        v_start, t_start = v_end, t_end

    # Last text / visual layers, with the post-encoder LayerNorm fused into the
    # FFN epilogue (review item 10).
    enc_output = encoder_layer_fwd(fp["layers"][t_end], enc_output, attn_bias,
                                   cfg["n_head"], cfg["d_key"], cfg["d_value"],
                                   post_ln=(fp["post_ln_g"], fp["post_ln_b"]))
    enc_vl_output = encoder_layer_fwd(fp["vlayers"][v_end], enc_vl_output,
                                      attn_image_bias,
                                      cfg["v_head"], cfg["v_key"], cfg["v_value"],
                                      post_ln=(fp["vl_post_ln_g"], fp["vl_post_ln_b"]))
    return enc_output, enc_vl_output


# ----------------------------------------------------------------------------
# Parameter init (synthetic) and fast-parameter preparation (fusion / bf16)
# ----------------------------------------------------------------------------

def _init_linear(key, d_in, d_out):
    k1, k2 = jax.random.split(key)
    return {"w": 0.02 * jax.random.normal(k1, (d_in, d_out), jnp.float32),
            "b": 0.02 * jax.random.normal(k2, (d_out,), jnp.float32)}


def _init_ln(key, d):
    k1, k2 = jax.random.split(key)
    return {"g": 1.0 + 0.02 * jax.random.normal(k1, (d,), jnp.float32),
            "b": 0.02 * jax.random.normal(k2, (d,), jnp.float32)}


def _init_mha(key, d_key, d_value, d_model, hidden_size, n_head):
    ks = jax.random.split(key, 4)
    return {
        "q": _init_linear(ks[0], d_model, d_key * n_head),
        "k": _init_linear(ks[1], hidden_size, d_key * n_head),
        "v": _init_linear(ks[2], hidden_size, d_value * n_head),
        "o": _init_linear(ks[3], max(d_model, hidden_size), d_model),
    }


def _init_ffn(key, d_hid, d_inner):
    k0, k1 = jax.random.split(key)
    return {"fc0": _init_linear(k0, d_hid, d_inner),
            "fc1": _init_linear(k1, d_inner, d_hid)}


def _init_encoder_layer(key, n_head, d_key, d_value, d_model, d_inner):
    ks = jax.random.split(key, 4)
    return {
        "pre_att": _init_ln(ks[0], d_model),
        "mha": _init_mha(ks[1], d_key, d_value, d_model, d_model, n_head),
        "pre_ffn": _init_ln(ks[2], d_model),
        "ffn": _init_ffn(ks[3], d_model, d_inner),
    }


def _init_co_layer(key, co_head, co_key, co_value, co_model,
                   d_model, d_inner, v_model, v_inner):
    ks = jax.random.split(key, 8)
    return {
        "pre_att": _init_ln(ks[0], d_model),
        "vl_pre_att": _init_ln(ks[1], co_model),
        "mha": _init_mha(ks[2], co_key, co_value, d_model, v_model, co_head),
        "vl_mha": _init_mha(ks[3], co_key, co_value, v_model, d_model, co_head),
        "pre_ffn": _init_ln(ks[4], d_model),
        "vl_pre_ffn": _init_ln(ks[5], v_model),
        "ffn": _init_ffn(ks[6], d_model, d_inner),
        "vl_ffn": _init_ffn(ks[7], v_model, v_inner),
    }


def init_encoder_params(key, cfg):
    params = {"layers": {}, "vlayers": {}, "colayers": {}}
    v_start, t_start, block = 0, 0, 0
    v_end = t_end = None
    for v_layer_id, t_layer_id in zip(cfg["v_biattention_id"], cfg["t_biattention_id"]):
        v_end, t_end = v_layer_id, t_layer_id
        for idx in range(t_start, t_end):
            key, sub = jax.random.split(key)
            params["layers"][idx] = _init_encoder_layer(
                sub, cfg["n_head"], cfg["d_key"], cfg["d_value"],
                cfg["d_model"], cfg["d_inner_hid"])
        for idx in range(v_start, v_end):
            key, sub = jax.random.split(key)
            params["vlayers"][idx] = _init_encoder_layer(
                sub, cfg["v_head"], cfg["v_key"], cfg["v_value"],
                cfg["v_model"], cfg["v_inner_hid"])
        key, sub = jax.random.split(key)
        params["colayers"][block] = _init_co_layer(
            sub, cfg["co_head"], cfg["co_key"], cfg["co_value"], cfg["co_model"],
            cfg["d_model"], cfg["d_inner_hid"], cfg["v_model"], cfg["v_inner_hid"])
        block += 1
        v_start, t_start = v_end, t_end

    key, sub = jax.random.split(key)
    params["layers"][t_end] = _init_encoder_layer(
        sub, cfg["n_head"], cfg["d_key"], cfg["d_value"], cfg["d_model"], cfg["d_inner_hid"])
    key, sub = jax.random.split(key)
    params["vlayers"][v_end] = _init_encoder_layer(
        sub, cfg["v_head"], cfg["v_key"], cfg["v_value"], cfg["v_model"], cfg["v_inner_hid"])
    key, k1, k2 = jax.random.split(key, 3)
    params["post_encoder"] = _init_ln(k1, cfg["d_model"])
    params["vl_post_encoder"] = _init_ln(k2, cfg["v_model"])
    return params


def _prep_ln(ln):
    return ln["g"].reshape(1, -1), ln["b"].reshape(1, -1)


def _prep_attn(pre_q_ln, pre_kv_ln, mha, d_key):
    """Shared prep for self- and cross-attention (self: pre_q_ln == pre_kv_ln).

    1/sqrt(d_key) is folded into the Q weights/bias; K|V weights fused; all
    matmul weights stored in bf16 (halves weight DMA)."""
    scale = float(d_key) ** -0.5
    gq, bq = _prep_ln(pre_q_ln)
    gkv, bkv = _prep_ln(pre_kv_ln)
    kv_w = jnp.concatenate([mha["k"]["w"], mha["v"]["w"]], axis=1)
    kv_b = jnp.concatenate([mha["k"]["b"], mha["v"]["b"]], axis=0)
    return {
        "ln_q_g": gq, "ln_q_b": bq, "ln_kv_g": gkv, "ln_kv_b": bkv,
        "q_w": (mha["q"]["w"] * scale).astype(jnp.bfloat16),
        "q_b": (mha["q"]["b"] * scale).reshape(1, -1),
        "kv_w": kv_w.astype(jnp.bfloat16),
        "kv_b": kv_b.reshape(1, -1),
        "o_w": mha["o"]["w"].astype(jnp.bfloat16),
        "o_b": mha["o"]["b"].reshape(1, -1),
    }


def _prep_ffn(pre_ln, ffn):
    g, b = _prep_ln(pre_ln)
    return {"ln_g": g, "ln_b": b,
            "w0": ffn["fc0"]["w"].astype(jnp.bfloat16),
            "b0": ffn["fc0"]["b"].reshape(1, -1),
            "w1": ffn["fc1"]["w"].astype(jnp.bfloat16),
            "b1": ffn["fc1"]["b"].reshape(1, -1)}


def prepare_fast_params(params, cfg):
    fp = {"layers": {}, "vlayers": {}, "colayers": {}}
    for idx, p in params["layers"].items():
        fp["layers"][idx] = {
            "attn": _prep_attn(p["pre_att"], p["pre_att"], p["mha"], cfg["d_key"]),
            "ffn": _prep_ffn(p["pre_ffn"], p["ffn"])}
    for idx, p in params["vlayers"].items():
        fp["vlayers"][idx] = {
            "attn": _prep_attn(p["pre_att"], p["pre_att"], p["mha"], cfg["v_key"]),
            "ffn": _prep_ffn(p["pre_ffn"], p["ffn"])}
    for idx, p in params["colayers"].items():
        fp["colayers"][idx] = {
            "t": _prep_attn(p["pre_att"], p["vl_pre_att"], p["mha"], cfg["co_key"]),
            "v": _prep_attn(p["vl_pre_att"], p["pre_att"], p["vl_mha"], cfg["co_key"]),
            "ffn_t": _prep_ffn(p["pre_ffn"], p["ffn"]),
            "ffn_v": _prep_ffn(p["vl_pre_ffn"], p["vl_ffn"]),
        }
    fp["post_ln_g"] = params["post_encoder"]["g"].reshape(1, -1)
    fp["post_ln_b"] = params["post_encoder"]["b"].reshape(1, -1)
    fp["vl_post_ln_g"] = params["vl_post_encoder"]["g"].reshape(1, -1)
    fp["vl_post_ln_b"] = params["vl_post_encoder"]["b"].reshape(1, -1)
    return fp


# ----------------------------------------------------------------------------
# Main
# ----------------------------------------------------------------------------

if __name__ == "__main__":
    cfg = dict(
        n_head=2, d_key=16, d_value=16, d_model=32, d_inner_hid=64,
        v_head=2, v_key=16, v_value=16, v_model=32, v_inner_hid=64,
        co_head=2, co_key=16, co_value=16, co_model=32, co_inner_hid=64,
        v_biattention_id=[1], t_biattention_id=[1],
    )

    B, SEQ_T, SEQ_V = 2, 8, 6

    root = jax.random.PRNGKey(0)
    k_params, k_t, k_v, k_b1, k_b2, k_b3 = jax.random.split(root, 6)

    params = init_encoder_params(k_params, cfg)
    fast_params = prepare_fast_params(params, cfg)

    enc_input = jax.random.normal(k_t, (B, SEQ_T, cfg["d_model"]), jnp.float32)
    enc_vl_input = jax.random.normal(k_v, (B, SEQ_V, cfg["v_model"]), jnp.float32)
    attn_bias = jax.random.normal(k_b1, (B, cfg["n_head"], SEQ_T, SEQ_T), jnp.float32)
    attn_image_bias = jax.random.normal(k_b2, (B, cfg["v_head"], SEQ_V, SEQ_V), jnp.float32)
    attn_vl_bias = jax.random.normal(k_b3, (B, cfg["co_head"], SEQ_V, SEQ_T), jnp.float32)

    fwd = jax.jit(functools.partial(encoder_forward, cfg))
    enc_out, enc_vl_out = fwd(fast_params, enc_input, enc_vl_input,
                              attn_bias, attn_image_bias, attn_vl_bias)
    jax.block_until_ready((enc_out, enc_vl_out))

    assert enc_out.shape == (B, SEQ_T, cfg["d_model"])
    assert enc_vl_out.shape == (B, SEQ_V, cfg["v_model"])
    assert bool(jnp.all(jnp.isfinite(enc_out))) and bool(jnp.all(jnp.isfinite(enc_vl_out)))
    print("KERNEL_OK")
</pallas_src>

<mosaic_0001>
module attributes {stable_mosaic.version = 11 : i64} {
  func.func @_attn_block_kernel(%arg0: i32, %arg1: i32, %arg2: memref<1x6x32xf32, #tpu.memory_space<vmem>>, %arg3: memref<1x6x32xf32, #tpu.memory_space<vmem>>, %arg4: memref<1x32xf32, #tpu.memory_space<vmem>>, %arg5: memref<1x32xf32, #tpu.memory_space<vmem>>, %arg6: memref<1x32xf32, #tpu.memory_space<vmem>>, %arg7: memref<1x32xf32, #tpu.memory_space<vmem>>, %arg8: memref<32x32xbf16, #tpu.memory_space<vmem>>, %arg9: memref<1x32xf32, #tpu.memory_space<vmem>>, %arg10: memref<32x64xbf16, #tpu.memory_space<vmem>>, %arg11: memref<1x64xf32, #tpu.memory_space<vmem>>, %arg12: memref<32x32xbf16, #tpu.memory_space<vmem>>, %arg13: memref<1x32xf32, #tpu.memory_space<vmem>>, %arg14: memref<1x2x6x6xbf16, #tpu.memory_space<vmem>>, %arg15: memref<1x6x32xf32, #tpu.memory_space<vmem>>) attributes {dimension_semantics = [#tpu.dimension_semantics<parallel>, #tpu.dimension_semantics<parallel>], iteration_bounds = array<i64: 2, 1>, scalar_prefetch = 0 : i64, scratch_operands = 0 : i64, tpu.core_type = #tpu.core_type<tc>, window_params = [{transform_indices = @transform_0, window_bounds = array<i64: 1, 6, 32>}, {transform_indices = @transform_1, window_bounds = array<i64: 1, 6, 32>}, {pipeline_mode = #tpu.pipeline_mode<synchronous>, transform_indices = @transform_2, window_bounds = array<i64: 1, 32>}, {pipeline_mode = #tpu.pipeline_mode<synchronous>, transform_indices = @transform_3, window_bounds = array<i64: 1, 32>}, {pipeline_mode = #tpu.pipeline_mode<synchronous>, transform_indices = @transform_4, window_bounds = array<i64: 1, 32>}, {pipeline_mode = #tpu.pipeline_mode<synchronous>, transform_indices = @transform_5, window_bounds = array<i64: 1, 32>}, {pipeline_mode = #tpu.pipeline_mode<synchronous>, transform_indices = @transform_6, window_bounds = array<i64: 32, 32>}, {pipeline_mode = #tpu.pipeline_mode<synchronous>, transform_indices = @transform_7, window_bounds = array<i64: 1, 32>}, {pipeline_mode = #tpu.pipeline_mode<synchronous>, transform_indices = @transform_8, window_bounds = array<i64: 32, 64>}, {pipeline_mode = #tpu.pipeline_mode<synchronous>, transform_indices = @transform_9, window_bounds = array<i64: 1, 64>}, {pipeline_mode = #tpu.pipeline_mode<synchronous>, transform_indices = @transform_10, window_bounds = array<i64: 32, 32>}, {pipeline_mode = #tpu.pipeline_mode<synchronous>, transform_indices = @transform_11, window_bounds = array<i64: 1, 32>}, {transform_indices = @transform_12, window_bounds = array<i64: 1, 2, 6, 6>}, {transform_indices = @transform_13, window_bounds = array<i64: 1, 6, 32>}]} {
    %c0 = arith.constant 0 : index
    %c0_0 = arith.constant 0 : index
    %c0_1 = arith.constant 0 : index
    %0 = vector.load %arg2[%c0, %c0_0, %c0_1] : memref<1x6x32xf32, #tpu.memory_space<vmem>>, vector<1x6x32xf32>
    %1 = vector.shape_cast %0 : vector<1x6x32xf32> to vector<6x32xf32>
    %c0_2 = arith.constant 0 : index
    %c0_3 = arith.constant 0 : index
    %c0_4 = arith.constant 0 : index
    %2 = vector.load %arg3[%c0_2, %c0_3, %c0_4] : memref<1x6x32xf32, #tpu.memory_space<vmem>>, vector<1x6x32xf32>
    %3 = vector.shape_cast %2 : vector<1x6x32xf32> to vector<6x32xf32>
    %c0_5 = arith.constant 0 : index
    %c0_6 = arith.constant 0 : index
    %4 = vector.load %arg4[%c0_5, %c0_6] : memref<1x32xf32, #tpu.memory_space<vmem>>, vector<1x32xf32>
    %c0_7 = arith.constant 0 : index
    %c0_8 = arith.constant 0 : index
    %5 = vector.load %arg5[%c0_7, %c0_8] : memref<1x32xf32, #tpu.memory_space<vmem>>, vector<1x32xf32>
    %cst = arith.constant dense<0.000000e+00> : vector<6xf32>
    %6 = vector.multi_reduction <add>, %1, %cst [1] : vector<6x32xf32> to vector<6xf32>
    %7 = vector.shape_cast %6 : vector<6xf32> to vector<6x1xf32>
    %cst_9 = arith.constant 3.200000e+01 : f32
    %8 = vector.broadcast %cst_9 : f32 to vector<6x1xf32>
    %9 = arith.divf %7, %8 : vector<6x1xf32>
    %10 = vector.broadcast %9 : vector<6x1xf32> to vector<6x32xf32>
    %11 = arith.subf %1, %10 : vector<6x32xf32>
    %12 = arith.mulf %11, %11 : vector<6x32xf32>
    %cst_10 = arith.constant dense<0.000000e+00> : vector<6xf32>
    %13 = vector.multi_reduction <add>, %12, %cst_10 [1] : vector<6x32xf32> to vector<6xf32>
    %14 = vector.shape_cast %13 : vector<6xf32> to vector<6x1xf32>
    %cst_11 = arith.constant 3.200000e+01 : f32
    %15 = vector.broadcast %cst_11 : f32 to vector<6x1xf32>
    %16 = arith.divf %14, %15 : vector<6x1xf32>
    %17 = vector.broadcast %9 : vector<6x1xf32> to vector<6x32xf32>
    %18 = arith.subf %1, %17 : vector<6x32xf32>
    %cst_12 = arith.constant 9.99999974E-6 : f32
    %19 = vector.broadcast %cst_12 : f32 to vector<6x1xf32>
    %20 = arith.addf %16, %19 : vector<6x1xf32>
    %21 = math.rsqrt %20 : vector<6x1xf32>
    %22 = vector.broadcast %21 : vector<6x1xf32> to vector<6x32xf32>
    %23 = arith.mulf %18, %22 : vector<6x32xf32>
    %24 = vector.broadcast %4 : vector<1x32xf32> to vector<6x32xf32>
    %25 = arith.mulf %23, %24 : vector<6x32xf32>
    %26 = vector.broadcast %5 : vector<1x32xf32> to vector<6x32xf32>
    %27 = arith.addf %25, %26 : vector<6x32xf32>
    %c0_13 = arith.constant 0 : index
    %c0_14 = arith.constant 0 : index
    %28 = vector.load %arg6[%c0_13, %c0_14] : memref<1x32xf32, #tpu.memory_space<vmem>>, vector<1x32xf32>
    %c0_15 = arith.constant 0 : index
    %c0_16 = arith.constant 0 : index
    %29 = vector.load %arg7[%c0_15, %c0_16] : memref<1x32xf32, #tpu.memory_space<vmem>>, vector<1x32xf32>
    %cst_17 = arith.constant dense<0.000000e+00> : vector<6xf32>
    %30 = vector.multi_reduction <add>, %3, %cst_17 [1] : vector<6x32xf32> to vector<6xf32>
    %31 = vector.shape_cast %30 : vector<6xf32> to vector<6x1xf32>
    %cst_18 = arith.constant 3.200000e+01 : f32
    %32 = vector.broadcast %cst_18 : f32 to vector<6x1xf32>
    %33 = arith.divf %31, %32 : vector<6x1xf32>
    %34 = vector.broadcast %33 : vector<6x1xf32> to vector<6x32xf32>
    %35 = arith.subf %3, %34 : vector<6x32xf32>
    %36 = arith.mulf %35, %35 : vector<6x32xf32>
    %cst_19 = arith.constant dense<0.000000e+00> : vector<6xf32>
    %37 = vector.multi_reduction <add>, %36, %cst_19 [1] : vector<6x32xf32> to vector<6xf32>
    %38 = vector.shape_cast %37 : vector<6xf32> to vector<6x1xf32>
    %cst_20 = arith.constant 3.200000e+01 : f32
    %39 = vector.broadcast %cst_20 : f32 to vector<6x1xf32>
    %40 = arith.divf %38, %39 : vector<6x1xf32>
    %41 = vector.broadcast %33 : vector<6x1xf32> to vector<6x32xf32>
    %42 = arith.subf %3, %41 : vector<6x32xf32>
    %cst_21 = arith.constant 9.99999974E-6 : f32
    %43 = vector.broadcast %cst_21 : f32 to vector<6x1xf32>
    %44 = arith.addf %40, %43 : vector<6x1xf32>
    %45 = math.rsqrt %44 : vector<6x1xf32>
    %46 = vector.broadcast %45 : vector<6x1xf32> to vector<6x32xf32>
    %47 = arith.mulf %42, %46 : vector<6x32xf32>
    %48 = vector.broadcast %28 : vector<1x32xf32> to vector<6x32xf32>
    %49 = arith.mulf %47, %48 : vector<6x32xf32>
    %50 = vector.broadcast %29 : vector<1x32xf32> to vector<6x32xf32>
    %51 = arith.addf %49, %50 : vector<6x32xf32>
    %52 = arith.truncf %27 : vector<6x32xf32> to vector<6x32xbf16>
    %c0_22 = arith.constant 0 : index
    %c0_23 = arith.constant 0 : index
    %53 = vector.load %arg8[%c0_22, %c0_23] : memref<32x32xbf16, #tpu.memory_space<vmem>>, vector<32x32xbf16>
    %cst_24 = arith.constant dense<0.000000e+00> : vector<6x32xf32>
    %54 = tpu.matmul %52, %53, %cst_24 {dimension_numbers = #tpu.dot_dimension_numbers<[1], [0], [0], [1], [0, 0, 1, 1], [], []>} : vector<6x32xbf16>, vector<32x32xbf16>, vector<6x32xf32> -> vector<6x32xf32>
    %c0_25 = arith.constant 0 : index
    %c0_26 = arith.constant 0 : index
    %55 = vector.load %arg9[%c0_25, %c0_26] : memref<1x32xf32, #tpu.memory_space<vmem>>, vector<1x32xf32>
    %56 = vector.broadcast %55 : vector<1x32xf32> to vector<6x32xf32>
    %57 = arith.addf %54, %56 : vector<6x32xf32>
    %58 = arith.truncf %51 : vector<6x32xf32> to vector<6x32xbf16>
    %c0_27 = arith.constant 0 : index
    %c0_28 = arith.constant 0 : index
    %59 = vector.load %arg10[%c0_27, %c0_28] : memref<32x64xbf16, #tpu.memory_space<vmem>>, vector<32x64xbf16>
    %cst_29 = arith.constant dense<0.000000e+00> : vector<6x64xf32>
    %60 = tpu.matmul %58, %59, %cst_29 {dimension_numbers = #tpu.dot_dimension_numbers<[1], [0], [0], [1], [0, 0, 1, 1], [], []>} : vector<6x32xbf16>, vector<32x64xbf16>, vector<6x64xf32> -> vector<6x64xf32>
    %c0_30 = arith.constant 0 : index
    %c0_31 = arith.constant 0 : index
    %61 = vector.load %arg11[%c0_30, %c0_31] : memref<1x64xf32, #tpu.memory_space<vmem>>, vector<1x64xf32>
    %62 = vector.broadcast %61 : vector<1x64xf32> to vector<6x64xf32>
    %63 = arith.addf %60, %62 : vector<6x64xf32>
    %64 = vector.extract_strided_slice %63 {offsets = [0, 0], sizes = [6, 32], strides = [1, 1]} : vector<6x64xf32> to vector<6x32xf32>
    %65 = vector.extract_strided_slice %63 {offsets = [0, 32], sizes = [6, 32], strides = [1, 1]} : vector<6x64xf32> to vector<6x32xf32>
    %66 = vector.extract_strided_slice %57 {offsets = [0, 0], sizes = [6, 16], strides = [1, 1]} : vector<6x32xf32> to vector<6x16xf32>
    %67 = arith.truncf %66 : vector<6x16xf32> to vector<6x16xbf16>
    %68 = vector.extract_strided_slice %64 {offsets = [0, 0], sizes = [6, 16], strides = [1, 1]} : vector<6x32xf32> to vector<6x16xf32>
    %69 = arith.truncf %68 : vector<6x16xf32> to vector<6x16xbf16>
    %70 = vector.extract_strided_slice %65 {offsets = [0, 0], sizes = [6, 16], strides = [1, 1]} : vector<6x32xf32> to vector<6x16xf32>
    %71 = arith.truncf %70 : vector<6x16xf32> to vector<6x16xbf16>
    %cst_32 = arith.constant dense<0.000000e+00> : vector<6x6xf32>
    %72 = tpu.matmul %67, %69, %cst_32 {dimension_numbers = #tpu.dot_dimension_numbers<[1], [1], [0], [0], [0, 0, 1, 0], [], []>} : vector<6x16xbf16>, vector<6x16xbf16>, vector<6x6xf32> -> vector<6x6xf32>
    %c0_33 = arith.constant 0 : index
    %c0_34 = arith.constant 0 : index
    %c0_35 = arith.constant 0 : index
    %c0_36 = arith.constant 0 : index
    %73 = vector.load %arg14[%c0_33, %c0_34, %c0_35, %c0_36] : memref<1x2x6x6xbf16, #tpu.memory_space<vmem>>, vector<1x1x6x6xbf16>
    %74 = vector.shape_cast %73 : vector<1x1x6x6xbf16> to vector<6x6xbf16>
    %75 = arith.extf %74 : vector<6x6xbf16> to vector<6x6xf32>
    %76 = arith.addf %72, %75 : vector<6x6xf32>
    %cst_37 = arith.constant dense<0xFF800000> : vector<6xf32>
    %77 = vector.multi_reduction <maximumf>, %76, %cst_37 [1] : vector<6x6xf32> to vector<6xf32>
    %78 = vector.shape_cast %77 : vector<6xf32> to vector<6x1xf32>
    %79 = vector.broadcast %78 : vector<6x1xf32> to vector<6x6xf32>
    %80 = arith.subf %76, %79 : vector<6x6xf32>
    %81 = math.exp %80 : vector<6x6xf32>
    %cst_38 = arith.constant dense<0.000000e+00> : vector<6xf32>
    %82 = vector.multi_reduction <add>, %81, %cst_38 [1] : vector<6x6xf32> to vector<6xf32>
    %83 = vector.shape_cast %82 : vector<6xf32> to vector<6x1xf32>
    %84 = tpu.reciprocal %83 {approx = true} : vector<6x1xf32> -> vector<6x1xf32>
    %85 = vector.broadcast %84 : vector<6x1xf32> to vector<6x6xf32>
    %86 = arith.mulf %81, %85 : vector<6x6xf32>
    %87 = arith.truncf %86 : vector<6x6xf32> to vector<6x6xbf16>
    %cst_39 = arith.constant dense<0.000000e+00> : vector<6x16xf32>
    %88 = tpu.matmul %87, %71, %cst_39 {dimension_numbers = #tpu.dot_dimension_numbers<[1], [0], [0], [1], [0, 0, 1, 1], [], []>} : vector<6x6xbf16>, vector<6x16xbf16>, vector<6x16xf32> -> vector<6x16xf32>
    %89 = vector.extract_strided_slice %57 {offsets = [0, 16], sizes = [6, 16], strides = [1, 1]} : vector<6x32xf32> to vector<6x16xf32>
    %90 = arith.truncf %89 : vector<6x16xf32> to vector<6x16xbf16>
    %91 = vector.extract_strided_slice %64 {offsets = [0, 16], sizes = [6, 16], strides = [1, 1]} : vector<6x32xf32> to vector<6x16xf32>
    %92 = arith.truncf %91 : vector<6x16xf32> to vector<6x16xbf16>
    %93 = vector.extract_strided_slice %65 {offsets = [0, 16], sizes = [6, 16], strides = [1, 1]} : vector<6x32xf32> to vector<6x16xf32>
    %94 = arith.truncf %93 : vector<6x16xf32> to vector<6x16xbf16>
    %cst_40 = arith.constant dense<0.000000e+00> : vector<6x6xf32>
    %95 = tpu.matmul %90, %92, %cst_40 {dimension_numbers = #tpu.dot_dimension_numbers<[1], [1], [0], [0], [0, 0, 1, 0], [], []>} : vector<6x16xbf16>, vector<6x16xbf16>, vector<6x6xf32> -> vector<6x6xf32>
    %c0_41 = arith.constant 0 : index
    %c1 = arith.constant 1 : index
    %c0_42 = arith.constant 0 : index
    %c0_43 = arith.constant 0 : index
    %96 = vector.load %arg14[%c0_41, %c1, %c0_42, %c0_43] : memref<1x2x6x6xbf16, #tpu.memory_space<vmem>>, vector<1x1x6x6xbf16>
    %97 = vector.shape_cast %96 : vector<1x1x6x6xbf16> to vector<6x6xbf16>
    %98 = arith.extf %97 : vector<6x6xbf16> to vector<6x6xf32>
    %99 = arith.addf %95, %98 : vector<6x6xf32>
    %cst_44 = arith.constant dense<0xFF800000> : vector<6xf32>
    %100 = vector.multi_reduction <maximumf>, %99, %cst_44 [1] : vector<6x6xf32> to vector<6xf32>
    %101 = vector.shape_cast %100 : vector<6xf32> to vector<6x1xf32>
    %102 = vector.broadcast %101 : vector<6x1xf32> to vector<6x6xf32>
    %103 = arith.subf %99, %102 : vector<6x6xf32>
    %104 = math.exp %103 : vector<6x6xf32>
    %cst_45 = arith.constant dense<0.000000e+00> : vector<6xf32>
    %105 = vector.multi_reduction <add>, %104, %cst_45 [1] : vector<6x6xf32> to vector<6xf32>
    %106 = vector.shape_cast %105 : vector<6xf32> to vector<6x1xf32>
    %107 = tpu.reciprocal %106 {approx = true} : vector<6x1xf32> -> vector<6x1xf32>
    %108 = vector.broadcast %107 : vector<6x1xf32> to vector<6x6xf32>
    %109 = arith.mulf %104, %108 : vector<6x6xf32>
    %110 = arith.truncf %109 : vector<6x6xf32> to vector<6x6xbf16>
    %cst_46 = arith.constant dense<0.000000e+00> : vector<6x16xf32>
    %111 = tpu.matmul %110, %94, %cst_46 {dimension_numbers = #tpu.dot_dimension_numbers<[1], [0], [0], [1], [0, 0, 1, 1], [], []>} : vector<6x6xbf16>, vector<6x16xbf16>, vector<6x16xf32> -> vector<6x16xf32>
    %112 = tpu.concatenate %88, %111 in 1 : vector<6x16xf32>, vector<6x16xf32> -> vector<6x32xf32>
    %113 = arith.truncf %112 : vector<6x32xf32> to vector<6x32xbf16>
    %c0_47 = arith.constant 0 : index
    %c0_48 = arith.constant 0 : index
    %114 = vector.load %arg12[%c0_47, %c0_48] : memref<32x32xbf16, #tpu.memory_space<vmem>>, vector<32x32xbf16>
    %cst_49 = arith.constant dense<0.000000e+00> : vector<6x32xf32>
    %115 = tpu.matmul %113, %114, %cst_49 {dimension_numbers = #tpu.dot_dimension_numbers<[1], [0], [0], [1], [0, 0, 1, 1], [], []>} : vector<6x32xbf16>, vector<32x32xbf16>, vector<6x32xf32> -> vector<6x32xf32>
    %c0_50 = arith.constant 0 : index
    %c0_51 = arith.constant 0 : index
    %116 = vector.load %arg13[%c0_50, %c0_51] : memref<1x32xf32, #tpu.memory_space<vmem>>, vector<1x32xf32>
    %117 = vector.broadcast %116 : vector<1x32xf32> to vector<6x32xf32>
    %118 = arith.addf %115, %117 : vector<6x32xf32>
    %119 = arith.addf %118, %1 : vector<6x32xf32>
    %c0_52 = arith.constant 0 : index
    %c0_53 = arith.constant 0 : index
    %c0_54 = arith.constant 0 : index
    %120 = vector.load %arg15[%c0_52, %c0_53, %c0_54] : memref<1x6x32xf32, #tpu.memory_space<vmem>>, vector<1x6x32xf32>
    %121 = vector.shape_cast %120 : vector<1x6x32xf32> to vector<6x32xf32>
    %122 = vector.shape_cast %119 : vector<6x32xf32> to vector<1x6x32xf32>
    tpu.vector_store %arg15[%c0_52, %c0_53, %c0_54], %122 {strides = array<i32>} : memref<1x6x32xf32, #tpu.memory_space<vmem>>, vector<1x6x32xf32>,
    return
  }
  func.func @transform_0(%arg0: i32, %arg1: i32) -> (i32, i32, i32) {
    %c0_i32 = arith.constant 0 : i32
    %c0_i32_0 = arith.constant 0 : i32
    return %arg0, %arg1, %c0_i32 : i32, i32, i32
  }
  func.func @transform_1(%arg0: i32, %arg1: i32) -> (i32, i32, i32) {
    %c0_i32 = arith.constant 0 : i32
    %c0_i32_0 = arith.constant 0 : i32
    %c0_i32_1 = arith.constant 0 : i32
    return %arg0, %c0_i32, %c0_i32_0 : i32, i32, i32
  }
  func.func @transform_2(%arg0: i32, %arg1: i32) -> (i32, i32) {
    %c0_i32 = arith.constant 0 : i32
    %c0_i32_0 = arith.constant 0 : i32
    %c0_i32_1 = arith.constant 0 : i32
    return %c0_i32, %c0_i32_0 : i32, i32
  }
  func.func @transform_3(%arg0: i32, %arg1: i32) -> (i32, i32) {
    %c0_i32 = arith.constant 0 : i32
    %c0_i32_0 = arith.constant 0 : i32
    %c0_i32_1 = arith.constant 0 : i32
    return %c0_i32, %c0_i32_0 : i32, i32
  }
  func.func @transform_4(%arg0: i32, %arg1: i32) -> (i32, i32) {
    %c0_i32 = arith.constant 0 : i32
    %c0_i32_0 = arith.constant 0 : i32
    %c0_i32_1 = arith.constant 0 : i32
    return %c0_i32, %c0_i32_0 : i32, i32
  }
  func.func @transform_5(%arg0: i32, %arg1: i32) -> (i32, i32) {
    %c0_i32 = arith.constant 0 : i32
    %c0_i32_0 = arith.constant 0 : i32
    %c0_i32_1 = arith.constant 0 : i32
    return %c0_i32, %c0_i32_0 : i32, i32
  }
  func.func @transform_6(%arg0: i32, %arg1: i32) -> (i32, i32) {
    %c0_i32 = arith.constant 0 : i32
    %c0_i32_0 = arith.constant 0 : i32
    %c0_i32_1 = arith.constant 0 : i32
    return %c0_i32, %c0_i32_0 : i32, i32
  }
  func.func @transform_7(%arg0: i32, %arg1: i32) -> (i32, i32) {
    %c0_i32 = arith.constant 0 : i32
    %c0_i32_0 = arith.constant 0 : i32
    %c0_i32_1 = arith.constant 0 : i32
    return %c0_i32, %c0_i32_0 : i32, i32
  }
  func.func @transform_8(%arg0: i32, %arg1: i32) -> (i32, i32) {
    %c0_i32 = arith.constant 0 : i32
    %c0_i32_0 = arith.constant 0 : i32
    %c0_i32_1 = arith.constant 0 : i32
    return %c0_i32, %c0_i32_0 : i32, i32
  }
  func.func @transform_9(%arg0: i32, %arg1: i32) -> (i32, i32) {
    %c0_i32 = arith.constant 0 : i32
    %c0_i32_0 = arith.constant 0 : i32
    %c0_i32_1 = arith.constant 0 : i32
    return %c0_i32, %c0_i32_0 : i32, i32
  }
  func.func @transform_10(%arg0: i32, %arg1: i32) -> (i32, i32) {
    %c0_i32 = arith.constant 0 : i32
    %c0_i32_0 = arith.constant 0 : i32
    %c0_i32_1 = arith.constant 0 : i32
    return %c0_i32, %c0_i32_0 : i32, i32
  }
  func.func @transform_11(%arg0: i32, %arg1: i32) -> (i32, i32) {
    %c0_i32 = arith.constant 0 : i32
    %c0_i32_0 = arith.constant 0 : i32
    %c0_i32_1 = arith.constant 0 : i32
    return %c0_i32, %c0_i32_0 : i32, i32
  }
  func.func @transform_12(%arg0: i32, %arg1: i32) -> (i32, i32, i32, i32) {
    %c0_i32 = arith.constant 0 : i32
    %c0_i32_0 = arith.constant 0 : i32
    %c0_i32_1 = arith.constant 0 : i32
    return %arg0, %c0_i32, %arg1, %c0_i32_0 : i32, i32, i32, i32
  }
  func.func @transform_13(%arg0: i32, %arg1: i32) -> (i32, i32, i32) {
    %c0_i32 = arith.constant 0 : i32
    %c0_i32_0 = arith.constant 0 : i32
    return %arg0, %arg1, %c0_i32 : i32, i32, i32
  }
}

module attributes {stable_mosaic.version = 11 : i64} {
  func.func @_ffn_block_kernel(%arg0: i32, %arg1: memref<12x32xf32, #tpu.memory_space<vmem>>, %arg2: memref<1x32xf32, #tpu.memory_space<vmem>>, %arg3: memref<1x32xf32, #tpu.memory_space<vmem>>, %arg4: memref<32x64xbf16, #tpu.memory_space<vmem>>, %arg5: memref<1x64xf32, #tpu.memory_space<vmem>>, %arg6: memref<64x32xbf16, #tpu.memory_space<vmem>>, %arg7: memref<1x32xf32, #tpu.memory_space<vmem>>, %arg8: memref<12x32xf32, #tpu.memory_space<vmem>>) attributes {dimension_semantics = [#tpu.dimension_semantics<parallel>], iteration_bounds = array<i64: 1>, scalar_prefetch = 0 : i64, scratch_operands = 0 : i64, tpu.core_type = #tpu.core_type<tc>, window_params = [{transform_indices = @transform_0, window_bounds = array<i64: 12, 32>}, {pipeline_mode = #tpu.pipeline_mode<synchronous>, transform_indices = @transform_1, window_bounds = array<i64: 1, 32>}, {pipeline_mode = #tpu.pipeline_mode<synchronous>, transform_indices = @transform_2, window_bounds = array<i64: 1, 32>}, {pipeline_mode = #tpu.pipeline_mode<synchronous>, transform_indices = @transform_3, window_bounds = array<i64: 32, 64>}, {pipeline_mode = #tpu.pipeline_mode<synchronous>, transform_indices = @transform_4, window_bounds = array<i64: 1, 64>}, {pipeline_mode = #tpu.pipeline_mode<synchronous>, transform_indices = @transform_5, window_bounds = array<i64: 64, 32>}, {pipeline_mode = #tpu.pipeline_mode<synchronous>, transform_indices = @transform_6, window_bounds = array<i64: 1, 32>}, {transform_indices = @transform_7, window_bounds = array<i64: 12, 32>}]} {
    %c0 = arith.constant 0 : index
    %c0_0 = arith.constant 0 : index
    %0 = vector.load %arg1[%c0, %c0_0] : memref<12x32xf32, #tpu.memory_space<vmem>>, vector<12x32xf32>
    %c0_1 = arith.constant 0 : index
    %c0_2 = arith.constant 0 : index
    %1 = vector.load %arg2[%c0_1, %c0_2] : memref<1x32xf32, #tpu.memory_space<vmem>>, vector<1x32xf32>
    %c0_3 = arith.constant 0 : index
    %c0_4 = arith.constant 0 : index
    %2 = vector.load %arg3[%c0_3, %c0_4] : memref<1x32xf32, #tpu.memory_space<vmem>>, vector<1x32xf32>
    %cst = arith.constant dense<0.000000e+00> : vector<12xf32>
    %3 = vector.multi_reduction <add>, %0, %cst [1] : vector<12x32xf32> to vector<12xf32>
    %4 = vector.shape_cast %3 : vector<12xf32> to vector<12x1xf32>
    %cst_5 = arith.constant 3.200000e+01 : f32
    %5 = vector.broadcast %cst_5 : f32 to vector<12x1xf32>
    %6 = arith.divf %4, %5 : vector<12x1xf32>
    %7 = vector.broadcast %6 : vector<12x1xf32> to vector<12x32xf32>
    %8 = arith.subf %0, %7 : vector<12x32xf32>
    %9 = arith.mulf %8, %8 : vector<12x32xf32>
    %cst_6 = arith.constant dense<0.000000e+00> : vector<12xf32>
    %10 = vector.multi_reduction <add>, %9, %cst_6 [1] : vector<12x32xf32> to vector<12xf32>
    %11 = vector.shape_cast %10 : vector<12xf32> to vector<12x1xf32>
    %cst_7 = arith.constant 3.200000e+01 : f32
    %12 = vector.broadcast %cst_7 : f32 to vector<12x1xf32>
    %13 = arith.divf %11, %12 : vector<12x1xf32>
    %14 = vector.broadcast %6 : vector<12x1xf32> to vector<12x32xf32>
    %15 = arith.subf %0, %14 : vector<12x32xf32>
    %cst_8 = arith.constant 9.99999974E-6 : f32
    %16 = vector.broadcast %cst_8 : f32 to vector<12x1xf32>
    %17 = arith.addf %13, %16 : vector<12x1xf32>
    %18 = math.rsqrt %17 : vector<12x1xf32>
    %19 = vector.broadcast %18 : vector<12x1xf32> to vector<12x32xf32>
    %20 = arith.mulf %15, %19 : vector<12x32xf32>
    %21 = vector.broadcast %1 : vector<1x32xf32> to vector<12x32xf32>
    %22 = arith.mulf %20, %21 : vector<12x32xf32>
    %23 = vector.broadcast %2 : vector<1x32xf32> to vector<12x32xf32>
    %24 = arith.addf %22, %23 : vector<12x32xf32>
    %25 = arith.truncf %24 : vector<12x32xf32> to vector<12x32xbf16>
    %c0_9 = arith.constant 0 : index
    %c0_10 = arith.constant 0 : index
    %26 = vector.load %arg4[%c0_9, %c0_10] : memref<32x64xbf16, #tpu.memory_space<vmem>>, vector<32x64xbf16>
    %cst_11 = arith.constant dense<0.000000e+00> : vector<12x64xf32>
    %27 = tpu.matmul %25, %26, %cst_11 {dimension_numbers = #tpu.dot_dimension_numbers<[1], [0], [0], [1], [0, 0, 1, 1], [], []>} : vector<12x32xbf16>, vector<32x64xbf16>, vector<12x64xf32> -> vector<12x64xf32>
    %c0_12 = arith.constant 0 : index
    %c0_13 = arith.constant 0 : index
    %28 = vector.load %arg5[%c0_12, %c0_13] : memref<1x64xf32, #tpu.memory_space<vmem>>, vector<1x64xf32>
    %29 = vector.broadcast %28 : vector<1x64xf32> to vector<12x64xf32>
    %30 = arith.addf %27, %29 : vector<12x64xf32>
    %cst_14 = arith.constant 5.000000e-01 : f32
    %31 = vector.broadcast %cst_14 : f32 to vector<12x64xf32>
    %32 = arith.mulf %31, %30 : vector<12x64xf32>
    %cst_15 = arith.constant 4.471500e-02 : f32
    %33 = vector.broadcast %cst_15 : f32 to vector<12x64xf32>
    %34 = arith.mulf %33, %30 : vector<12x64xf32>
    %35 = arith.mulf %34, %30 : vector<12x64xf32>
    %36 = arith.mulf %35, %30 : vector<12x64xf32>
    %37 = arith.addf %30, %36 : vector<12x64xf32>
    %cst_16 = arith.constant 0.797884583 : f32
    %38 = vector.broadcast %cst_16 : f32 to vector<12x64xf32>
    %39 = arith.mulf %38, %37 : vector<12x64xf32>
    %40 = math.tanh %39 : vector<12x64xf32>
    %cst_17 = arith.constant 1.000000e+00 : f32
    %41 = vector.broadcast %cst_17 : f32 to vector<12x64xf32>
    %42 = arith.addf %41, %40 : vector<12x64xf32>
    %43 = arith.mulf %32, %42 : vector<12x64xf32>
    %44 = arith.truncf %43 : vector<12x64xf32> to vector<12x64xbf16>
    %c0_18 = arith.constant 0 : index
    %c0_19 = arith.constant 0 : index
    %45 = vector.load %arg6[%c0_18, %c0_19] : memref<64x32xbf16, #tpu.memory_space<vmem>>, vector<64x32xbf16>
    %cst_20 = arith.constant dense<0.000000e+00> : vector<12x32xf32>
    %46 = tpu.matmul %44, %45, %cst_20 {dimension_numbers = #tpu.dot_dimension_numbers<[1], [0], [0], [1], [0, 0, 1, 1], [], []>} : vector<12x64xbf16>, vector<64x32xbf16>, vector<12x32xf32> -> vector<12x32xf32>
    %c0_21 = arith.constant 0 : index
    %c0_22 = arith.constant 0 : index
    %47 = vector.load %arg7[%c0_21, %c0_22] : memref<1x32xf32, #tpu.memory_space<vmem>>, vector<1x32xf32>
    %48 = vector.broadcast %47 : vector<1x32xf32> to vector<12x32xf32>
    %49 = arith.addf %46, %48 : vector<12x32xf32>
    %50 = arith.addf %49, %0 : vector<12x32xf32>
    %c0_23 = arith.constant 0 : index
    %c0_24 = arith.constant 0 : index
    %51 = vector.load %arg8[%c0_23, %c0_24] : memref<12x32xf32, #tpu.memory_space<vmem>>, vector<12x32xf32>
    tpu.vector_store %arg8[%c0_23, %c0_24], %50 {strides = array<i32>} : memref<12x32xf32, #tpu.memory_space<vmem>>, vector<12x32xf32>,
    return
  }
  func.func @transform_0(%arg0: i32) -> (i32, i32) {
    %c0_i32 = arith.constant 0 : i32
    %c0_i32_0 = arith.constant 0 : i32
    return %arg0, %c0_i32 : i32, i32
  }
  func.func @transform_1(%arg0: i32) -> (i32, i32) {
    %c0_i32 = arith.constant 0 : i32
    %c0_i32_0 = arith.constant 0 : i32
    %c0_i32_1 = arith.constant 0 : i32
    return %c0_i32, %c0_i32_0 : i32, i32
  }
  func.func @transform_2(%arg0: i32) -> (i32, i32) {
    %c0_i32 = arith.constant 0 : i32
    %c0_i32_0 = arith.constant 0 : i32
    %c0_i32_1 = arith.constant 0 : i32
    return %c0_i32, %c0_i32_0 : i32, i32
  }
  func.func @transform_3(%arg0: i32) -> (i32, i32) {
    %c0_i32 = arith.constant 0 : i32
    %c0_i32_0 = arith.constant 0 : i32
    %c0_i32_1 = arith.constant 0 : i32
    return %c0_i32, %c0_i32_0 : i32, i32
  }
  func.func @transform_4(%arg0: i32) -> (i32, i32) {
    %c0_i32 = arith.constant 0 : i32
    %c0_i32_0 = arith.constant 0 : i32
    %c0_i32_1 = arith.constant 0 : i32
    return %c0_i32, %c0_i32_0 : i32, i32
  }
  func.func @transform_5(%arg0: i32) -> (i32, i32) {
    %c0_i32 = arith.constant 0 : i32
    %c0_i32_0 = arith.constant 0 : i32
    %c0_i32_1 = arith.constant 0 : i32
    return %c0_i32, %c0_i32_0 : i32, i32
  }
  func.func @transform_6(%arg0: i32) -> (i32, i32) {
    %c0_i32 = arith.constant 0 : i32
    %c0_i32_0 = arith.constant 0 : i32
    %c0_i32_1 = arith.constant 0 : i32
    return %c0_i32, %c0_i32_0 : i32, i32
  }
  func.func @transform_7(%arg0: i32) -> (i32, i32) {
    %c0_i32 = arith.constant 0 : i32
    %c0_i32_0 = arith.constant 0 : i32
    return %arg0, %c0_i32 : i32, i32
  }
}

module attributes {stable_mosaic.version = 11 : i64} {
  func.func @_ffn_block_kernel(%arg0: i32, %arg1: memref<16x32xf32, #tpu.memory_space<vmem>>, %arg2: memref<1x32xf32, #tpu.memory_space<vmem>>, %arg3: memref<1x32xf32, #tpu.memory_space<vmem>>, %arg4: memref<32x64xbf16, #tpu.memory_space<vmem>>, %arg5: memref<1x64xf32, #tpu.memory_space<vmem>>, %arg6: memref<64x32xbf16, #tpu.memory_space<vmem>>, %arg7: memref<1x32xf32, #tpu.memory_space<vmem>>, %arg8: memref<16x32xf32, #tpu.memory_space<vmem>>) attributes {dimension_semantics = [#tpu.dimension_semantics<parallel>], iteration_bounds = array<i64: 1>, scalar_prefetch = 0 : i64, scratch_operands = 0 : i64, tpu.core_type = #tpu.core_type<tc>, window_params = [{transform_indices = @transform_0, window_bounds = array<i64: 16, 32>}, {pipeline_mode = #tpu.pipeline_mode<synchronous>, transform_indices = @transform_1, window_bounds = array<i64: 1, 32>}, {pipeline_mode = #tpu.pipeline_mode<synchronous>, transform_indices = @transform_2, window_bounds = array<i64: 1, 32>}, {pipeline_mode = #tpu.pipeline_mode<synchronous>, transform_indices = @transform_3, window_bounds = array<i64: 32, 64>}, {pipeline_mode = #tpu.pipeline_mode<synchronous>, transform_indices = @transform_4, window_bounds = array<i64: 1, 64>}, {pipeline_mode = #tpu.pipeline_mode<synchronous>, transform_indices = @transform_5, window_bounds = array<i64: 64, 32>}, {pipeline_mode = #tpu.pipeline_mode<synchronous>, transform_indices = @transform_6, window_bounds = array<i64: 1, 32>}, {transform_indices = @transform_7, window_bounds = array<i64: 16, 32>}]} {
    %c0 = arith.constant 0 : index
    %c0_0 = arith.constant 0 : index
    %0 = vector.load %arg1[%c0, %c0_0] : memref<16x32xf32, #tpu.memory_space<vmem>>, vector<16x32xf32>
    %c0_1 = arith.constant 0 : index
    %c0_2 = arith.constant 0 : index
    %1 = vector.load %arg2[%c0_1, %c0_2] : memref<1x32xf32, #tpu.memory_space<vmem>>, vector<1x32xf32>
    %c0_3 = arith.constant 0 : index
    %c0_4 = arith.constant 0 : index
    %2 = vector.load %arg3[%c0_3, %c0_4] : memref<1x32xf32, #tpu.memory_space<vmem>>, vector<1x32xf32>
    %cst = arith.constant dense<0.000000e+00> : vector<16xf32>
    %3 = vector.multi_reduction <add>, %0, %cst [1] : vector<16x32xf32> to vector<16xf32>
    %4 = vector.shape_cast %3 : vector<16xf32> to vector<16x1xf32>
    %cst_5 = arith.constant 3.200000e+01 : f32
    %5 = vector.broadcast %cst_5 : f32 to vector<16x1xf32>
    %6 = arith.divf %4, %5 : vector<16x1xf32>
    %7 = vector.broadcast %6 : vector<16x1xf32> to vector<16x32xf32>
    %8 = arith.subf %0, %7 : vector<16x32xf32>
    %9 = arith.mulf %8, %8 : vector<16x32xf32>
    %cst_6 = arith.constant dense<0.000000e+00> : vector<16xf32>
    %10 = vector.multi_reduction <add>, %9, %cst_6 [1] : vector<16x32xf32> to vector<16xf32>
    %11 = vector.shape_cast %10 : vector<16xf32> to vector<16x1xf32>
    %cst_7 = arith.constant 3.200000e+01 : f32
    %12 = vector.broadcast %cst_7 : f32 to vector<16x1xf32>
    %13 = arith.divf %11, %12 : vector<16x1xf32>
    %14 = vector.broadcast %6 : vector<16x1xf32> to vector<16x32xf32>
    %15 = arith.subf %0, %14 : vector<16x32xf32>
    %cst_8 = arith.constant 9.99999974E-6 : f32
    %16 = vector.broadcast %cst_8 : f32 to vector<16x1xf32>
    %17 = arith.addf %13, %16 : vector<16x1xf32>
    %18 = math.rsqrt %17 : vector<16x1xf32>
    %19 = vector.broadcast %18 : vector<16x1xf32> to vector<16x32xf32>
    %20 = arith.mulf %15, %19 : vector<16x32xf32>
    %21 = vector.broadcast %1 : vector<1x32xf32> to vector<16x32xf32>
    %22 = arith.mulf %20, %21 : vector<16x32xf32>
    %23 = vector.broadcast %2 : vector<1x32xf32> to vector<16x32xf32>
    %24 = arith.addf %22, %23 : vector<16x32xf32>
    %25 = arith.truncf %24 : vector<16x32xf32> to vector<16x32xbf16>
    %c0_9 = arith.constant 0 : index
    %c0_10 = arith.constant 0 : index
    %26 = vector.load %arg4[%c0_9, %c0_10] : memref<32x64xbf16, #tpu.memory_space<vmem>>, vector<32x64xbf16>
    %cst_11 = arith.constant dense<0.000000e+00> : vector<16x64xf32>
    %27 = tpu.matmul %25, %26, %cst_11 {dimension_numbers = #tpu.dot_dimension_numbers<[1], [0], [0], [1], [0, 0, 1, 1], [], []>} : vector<16x32xbf16>, vector<32x64xbf16>, vector<16x64xf32> -> vector<16x64xf32>
    %c0_12 = arith.constant 0 : index
    %c0_13 = arith.constant 0 : index
    %28 = vector.load %arg5[%c0_12, %c0_13] : memref<1x64xf32, #tpu.memory_space<vmem>>, vector<1x64xf32>
    %29 = vector.broadcast %28 : vector<1x64xf32> to vector<16x64xf32>
    %30 = arith.addf %27, %29 : vector<16x64xf32>
    %cst_14 = arith.constant 5.000000e-01 : f32
    %31 = vector.broadcast %cst_14 : f32 to vector<16x64xf32>
    %32 = arith.mulf %31, %30 : vector<16x64xf32>
    %cst_15 = arith.constant 4.471500e-02 : f32
    %33 = vector.broadcast %cst_15 : f32 to vector<16x64xf32>
    %34 = arith.mulf %33, %30 : vector<16x64xf32>
    %35 = arith.mulf %34, %30 : vector<16x64xf32>
    %36 = arith.mulf %35, %30 : vector<16x64xf32>
    %37 = arith.addf %30, %36 : vector<16x64xf32>
    %cst_16 = arith.constant 0.797884583 : f32
    %38 = vector.broadcast %cst_16 : f32 to vector<16x64xf32>
    %39 = arith.mulf %38, %37 : vector<16x64xf32>
    %40 = math.tanh %39 : vector<16x64xf32>
    %cst_17 = arith.constant 1.000000e+00 : f32
    %41 = vector.broadcast %cst_17 : f32 to vector<16x64xf32>
    %42 = arith.addf %41, %40 : vector<16x64xf32>
    %43 = arith.mulf %32, %42 : vector<16x64xf32>
    %44 = arith.truncf %43 : vector<16x64xf32> to vector<16x64xbf16>
    %c0_18 = arith.constant 0 : index
    %c0_19 = arith.constant 0 : index
    %45 = vector.load %arg6[%c0_18, %c0_19] : memref<64x32xbf16, #tpu.memory_space<vmem>>, vector<64x32xbf16>
    %cst_20 = arith.constant dense<0.000000e+00> : vector<16x32xf32>
    %46 = tpu.matmul %44, %45, %cst_20 {dimension_numbers = #tpu.dot_dimension_numbers<[1], [0], [0], [1], [0, 0, 1, 1], [], []>} : vector<16x64xbf16>, vector<64x32xbf16>, vector<16x32xf32> -> vector<16x32xf32>
    %c0_21 = arith.constant 0 : index
    %c0_22 = arith.constant 0 : index
    %47 = vector.load %arg7[%c0_21, %c0_22] : memref<1x32xf32, #tpu.memory_space<vmem>>, vector<1x32xf32>
    %48 = vector.broadcast %47 : vector<1x32xf32> to vector<16x32xf32>
    %49 = arith.addf %46, %48 : vector<16x32xf32>
    %50 = arith.addf %49, %0 : vector<16x32xf32>
    %c0_23 = arith.constant 0 : index
    %c0_24 = arith.constant 0 : index
    %51 = vector.load %arg8[%c0_23, %c0_24] : memref<16x32xf32, #tpu.memory_space<vmem>>, vector<16x32xf32>
    tpu.vector_store %arg8[%c0_23, %c0_24], %50 {strides = array<i32>} : memref<16x32xf32, #tpu.memory_space<vmem>>, vector<16x32xf32>,
    return
  }
  func.func @transform_0(%arg0: i32) -> (i32, i32) {
    %c0_i32 = arith.constant 0 : i32
    %c0_i32_0 = arith.constant 0 : i32
    return %arg0, %c0_i32 : i32, i32
  }
  func.func @transform_1(%arg0: i32) -> (i32, i32) {
    %c0_i32 = arith.constant 0 : i32
    %c0_i32_0 = arith.constant 0 : i32
    %c0_i32_1 = arith.constant 0 : i32
    return %c0_i32, %c0_i32_0 : i32, i32
  }
  func.func @transform_2(%arg0: i32) -> (i32, i32) {
    %c0_i32 = arith.constant 0 : i32
    %c0_i32_0 = arith.constant 0 : i32
    %c0_i32_1 = arith.constant 0 : i32
    return %c0_i32, %c0_i32_0 : i32, i32
  }
  func.func @transform_3(%arg0: i32) -> (i32, i32) {
    %c0_i32 = arith.constant 0 : i32
    %c0_i32_0 = arith.constant 0 : i32
    %c0_i32_1 = arith.constant 0 : i32
    return %c0_i32, %c0_i32_0 : i32, i32
  }
  func.func @transform_4(%arg0: i32) -> (i32, i32) {
    %c0_i32 = arith.constant 0 : i32
    %c0_i32_0 = arith.constant 0 : i32
    %c0_i32_1 = arith.constant 0 : i32
    return %c0_i32, %c0_i32_0 : i32, i32
  }
  func.func @transform_5(%arg0: i32) -> (i32, i32) {
    %c0_i32 = arith.constant 0 : i32
    %c0_i32_0 = arith.constant 0 : i32
    %c0_i32_1 = arith.constant 0 : i32
    return %c0_i32, %c0_i32_0 : i32, i32
  }
  func.func @transform_6(%arg0: i32) -> (i32, i32) {
    %c0_i32 = arith.constant 0 : i32
    %c0_i32_0 = arith.constant 0 : i32
    %c0_i32_1 = arith.constant 0 : i32
    return %c0_i32, %c0_i32_0 : i32, i32
  }
  func.func @transform_7(%arg0: i32) -> (i32, i32) {
    %c0_i32 = arith.constant 0 : i32
    %c0_i32_0 = arith.constant 0 : i32
    return %arg0, %c0_i32 : i32, i32
  }
}

module attributes {stable_mosaic.version = 11 : i64} {
  func.func @_attn_block_kernel(%arg0: i32, %arg1: i32, %arg2: memref<1x8x32xf32, #tpu.memory_space<vmem>>, %arg3: memref<1x8x32xf32, #tpu.memory_space<vmem>>, %arg4: memref<1x32xf32, #tpu.memory_space<vmem>>, %arg5: memref<1x32xf32, #tpu.memory_space<vmem>>, %arg6: memref<1x32xf32, #tpu.memory_space<vmem>>, %arg7: memref<1x32xf32, #tpu.memory_space<vmem>>, %arg8: memref<32x32xbf16, #tpu.memory_space<vmem>>, %arg9: memref<1x32xf32, #tpu.memory_space<vmem>>, %arg10: memref<32x64xbf16, #tpu.memory_space<vmem>>, %arg11: memref<1x64xf32, #tpu.memory_space<vmem>>, %arg12: memref<32x32xbf16, #tpu.memory_space<vmem>>, %arg13: memref<1x32xf32, #tpu.memory_space<vmem>>, %arg14: memref<1x2x8x8xbf16, #tpu.memory_space<vmem>>, %arg15: memref<1x8x32xf32, #tpu.memory_space<vmem>>) attributes {dimension_semantics = [#tpu.dimension_semantics<parallel>, #tpu.dimension_semantics<parallel>], iteration_bounds = array<i64: 2, 1>, scalar_prefetch = 0 : i64, scratch_operands = 0 : i64, tpu.core_type = #tpu.core_type<tc>, window_params = [{transform_indices = @transform_0, window_bounds = array<i64: 1, 8, 32>}, {transform_indices = @transform_1, window_bounds = array<i64: 1, 8, 32>}, {pipeline_mode = #tpu.pipeline_mode<synchronous>, transform_indices = @transform_2, window_bounds = array<i64: 1, 32>}, {pipeline_mode = #tpu.pipeline_mode<synchronous>, transform_indices = @transform_3, window_bounds = array<i64: 1, 32>}, {pipeline_mode = #tpu.pipeline_mode<synchronous>, transform_indices = @transform_4, window_bounds = array<i64: 1, 32>}, {pipeline_mode = #tpu.pipeline_mode<synchronous>, transform_indices = @transform_5, window_bounds = array<i64: 1, 32>}, {pipeline_mode = #tpu.pipeline_mode<synchronous>, transform_indices = @transform_6, window_bounds = array<i64: 32, 32>}, {pipeline_mode = #tpu.pipeline_mode<synchronous>, transform_indices = @transform_7, window_bounds = array<i64: 1, 32>}, {pipeline_mode = #tpu.pipeline_mode<synchronous>, transform_indices = @transform_8, window_bounds = array<i64: 32, 64>}, {pipeline_mode = #tpu.pipeline_mode<synchronous>, transform_indices = @transform_9, window_bounds = array<i64: 1, 64>}, {pipeline_mode = #tpu.pipeline_mode<synchronous>, transform_indices = @transform_10, window_bounds = array<i64: 32, 32>}, {pipeline_mode = #tpu.pipeline_mode<synchronous>, transform_indices = @transform_11, window_bounds = array<i64: 1, 32>}, {transform_indices = @transform_12, window_bounds = array<i64: 1, 2, 8, 8>}, {transform_indices = @transform_13, window_bounds = array<i64: 1, 8, 32>}]} {
    %c0 = arith.constant 0 : index
    %c0_0 = arith.constant 0 : index
    %c0_1 = arith.constant 0 : index
    %0 = vector.load %arg2[%c0, %c0_0, %c0_1] : memref<1x8x32xf32, #tpu.memory_space<vmem>>, vector<1x8x32xf32>
    %1 = vector.shape_cast %0 : vector<1x8x32xf32> to vector<8x32xf32>
    %c0_2 = arith.constant 0 : index
    %c0_3 = arith.constant 0 : index
    %c0_4 = arith.constant 0 : index
    %2 = vector.load %arg3[%c0_2, %c0_3, %c0_4] : memref<1x8x32xf32, #tpu.memory_space<vmem>>, vector<1x8x32xf32>
    %3 = vector.shape_cast %2 : vector<1x8x32xf32> to vector<8x32xf32>
    %c0_5 = arith.constant 0 : index
    %c0_6 = arith.constant 0 : index
    %4 = vector.load %arg4[%c0_5, %c0_6] : memref<1x32xf32, #tpu.memory_space<vmem>>, vector<1x32xf32>
    %c0_7 = arith.constant 0 : index
    %c0_8 = arith.constant 0 : index
    %5 = vector.load %arg5[%c0_7, %c0_8] : memref<1x32xf32, #tpu.memory_space<vmem>>, vector<1x32xf32>
    %cst = arith.constant dense<0.000000e+00> : vector<8xf32>
    %6 = vector.multi_reduction <add>, %1, %cst [1] : vector<8x32xf32> to vector<8xf32>
    %7 = vector.shape_cast %6 : vector<8xf32> to vector<8x1xf32>
    %cst_9 = arith.constant 3.200000e+01 : f32
    %8 = vector.broadcast %cst_9 : f32 to vector<8x1xf32>
    %9 = arith.divf %7, %8 : vector<8x1xf32>
    %10 = vector.broadcast %9 : vector<8x1xf32> to vector<8x32xf32>
    %11 = arith.subf %1, %10 : vector<8x32xf32>
    %12 = arith.mulf %11, %11 : vector<8x32xf32>
    %cst_10 = arith.constant dense<0.000000e+00> : vector<8xf32>
    %13 = vector.multi_reduction <add>, %12, %cst_10 [1] : vector<8x32xf32> to vector<8xf32>
    %14 = vector.shape_cast %13 : vector<8xf32> to vector<8x1xf32>
    %cst_11 = arith.constant 3.200000e+01 : f32
    %15 = vector.broadcast %cst_11 : f32 to vector<8x1xf32>
    %16 = arith.divf %14, %15 : vector<8x1xf32>
    %17 = vector.broadcast %9 : vector<8x1xf32> to vector<8x32xf32>
    %18 = arith.subf %1, %17 : vector<8x32xf32>
    %cst_12 = arith.constant 9.99999974E-6 : f32
    %19 = vector.broadcast %cst_12 : f32 to vector<8x1xf32>
    %20 = arith.addf %16, %19 : vector<8x1xf32>
    %21 = math.rsqrt %20 : vector<8x1xf32>
    %22 = vector.broadcast %21 : vector<8x1xf32> to vector<8x32xf32>
    %23 = arith.mulf %18, %22 : vector<8x32xf32>
    %24 = vector.broadcast %4 : vector<1x32xf32> to vector<8x32xf32>
    %25 = arith.mulf %23, %24 : vector<8x32xf32>
    %26 = vector.broadcast %5 : vector<1x32xf32> to vector<8x32xf32>
    %27 = arith.addf %25, %26 : vector<8x32xf32>
    %c0_13 = arith.constant 0 : index
    %c0_14 = arith.constant 0 : index
    %28 = vector.load %arg6[%c0_13, %c0_14] : memref<1x32xf32, #tpu.memory_space<vmem>>, vector<1x32xf32>
    %c0_15 = arith.constant 0 : index
    %c0_16 = arith.constant 0 : index
    %29 = vector.load %arg7[%c0_15, %c0_16] : memref<1x32xf32, #tpu.memory_space<vmem>>, vector<1x32xf32>
    %cst_17 = arith.constant dense<0.000000e+00> : vector<8xf32>
    %30 = vector.multi_reduction <add>, %3, %cst_17 [1] : vector<8x32xf32> to vector<8xf32>
    %31 = vector.shape_cast %30 : vector<8xf32> to vector<8x1xf32>
    %cst_18 = arith.constant 3.200000e+01 : f32
    %32 = vector.broadcast %cst_18 : f32 to vector<8x1xf32>
    %33 = arith.divf %31, %32 : vector<8x1xf32>
    %34 = vector.broadcast %33 : vector<8x1xf32> to vector<8x32xf32>
    %35 = arith.subf %3, %34 : vector<8x32xf32>
    %36 = arith.mulf %35, %35 : vector<8x32xf32>
    %cst_19 = arith.constant dense<0.000000e+00> : vector<8xf32>
    %37 = vector.multi_reduction <add>, %36, %cst_19 [1] : vector<8x32xf32> to vector<8xf32>
    %38 = vector.shape_cast %37 : vector<8xf32> to vector<8x1xf32>
    %cst_20 = arith.constant 3.200000e+01 : f32
    %39 = vector.broadcast %cst_20 : f32 to vector<8x1xf32>
    %40 = arith.divf %38, %39 : vector<8x1xf32>
    %41 = vector.broadcast %33 : vector<8x1xf32> to vector<8x32xf32>
    %42 = arith.subf %3, %41 : vector<8x32xf32>
    %cst_21 = arith.constant 9.99999974E-6 : f32
    %43 = vector.broadcast %cst_21 : f32 to vector<8x1xf32>
    %44 = arith.addf %40, %43 : vector<8x1xf32>
    %45 = math.rsqrt %44 : vector<8x1xf32>
    %46 = vector.broadcast %45 : vector<8x1xf32> to vector<8x32xf32>
    %47 = arith.mulf %42, %46 : vector<8x32xf32>
    %48 = vector.broadcast %28 : vector<1x32xf32> to vector<8x32xf32>
    %49 = arith.mulf %47, %48 : vector<8x32xf32>
    %50 = vector.broadcast %29 : vector<1x32xf32> to vector<8x32xf32>
    %51 = arith.addf %49, %50 : vector<8x32xf32>
    %52 = arith.truncf %27 : vector<8x32xf32> to vector<8x32xbf16>
    %c0_22 = arith.constant 0 : index
    %c0_23 = arith.constant 0 : index
    %53 = vector.load %arg8[%c0_22, %c0_23] : memref<32x32xbf16, #tpu.memory_space<vmem>>, vector<32x32xbf16>
    %cst_24 = arith.constant dense<0.000000e+00> : vector<8x32xf32>
    %54 = tpu.matmul %52, %53, %cst_24 {dimension_numbers = #tpu.dot_dimension_numbers<[1], [0], [0], [1], [0, 0, 1, 1], [], []>} : vector<8x32xbf16>, vector<32x32xbf16>, vector<8x32xf32> -> vector<8x32xf32>
    %c0_25 = arith.constant 0 : index
    %c0_26 = arith.constant 0 : index
    %55 = vector.load %arg9[%c0_25, %c0_26] : memref<1x32xf32, #tpu.memory_space<vmem>>, vector<1x32xf32>
    %56 = vector.broadcast %55 : vector<1x32xf32> to vector<8x32xf32>
    %57 = arith.addf %54, %56 : vector<8x32xf32>
    %58 = arith.truncf %51 : vector<8x32xf32> to vector<8x32xbf16>
    %c0_27 = arith.constant 0 : index
    %c0_28 = arith.constant 0 : index
    %59 = vector.load %arg10[%c0_27, %c0_28] : memref<32x64xbf16, #tpu.memory_space<vmem>>, vector<32x64xbf16>
    %cst_29 = arith.constant dense<0.000000e+00> : vector<8x64xf32>
    %60 = tpu.matmul %58, %59, %cst_29 {dimension_numbers = #tpu.dot_dimension_numbers<[1], [0], [0], [1], [0, 0, 1, 1], [], []>} : vector<8x32xbf16>, vector<32x64xbf16>, vector<8x64xf32> -> vector<8x64xf32>
    %c0_30 = arith.constant 0 : index
    %c0_31 = arith.constant 0 : index
    %61 = vector.load %arg11[%c0_30, %c0_31] : memref<1x64xf32, #tpu.memory_space<vmem>>, vector<1x64xf32>
    %62 = vector.broadcast %61 : vector<1x64xf32> to vector<8x64xf32>
    %63 = arith.addf %60, %62 : vector<8x64xf32>
    %64 = vector.extract_strided_slice %63 {offsets = [0, 0], sizes = [8, 32], strides = [1, 1]} : vector<8x64xf32> to vector<8x32xf32>
    %65 = vector.extract_strided_slice %63 {offsets = [0, 32], sizes = [8, 32], strides = [1, 1]} : vector<8x64xf32> to vector<8x32xf32>
    %66 = vector.extract_strided_slice %57 {offsets = [0, 0], sizes = [8, 16], strides = [1, 1]} : vector<8x32xf32> to vector<8x16xf32>
    %67 = arith.truncf %66 : vector<8x16xf32> to vector<8x16xbf16>
    %68 = vector.extract_strided_slice %64 {offsets = [0, 0], sizes = [8, 16], strides = [1, 1]} : vector<8x32xf32> to vector<8x16xf32>
    %69 = arith.truncf %68 : vector<8x16xf32> to vector<8x16xbf16>
    %70 = vector.extract_strided_slice %65 {offsets = [0, 0], sizes = [8, 16], strides = [1, 1]} : vector<8x32xf32> to vector<8x16xf32>
    %71 = arith.truncf %70 : vector<8x16xf32> to vector<8x16xbf16>
    %cst_32 = arith.constant dense<0.000000e+00> : vector<8x8xf32>
    %72 = tpu.matmul %67, %69, %cst_32 {dimension_numbers = #tpu.dot_dimension_numbers<[1], [1], [0], [0], [0, 0, 1, 0], [], []>} : vector<8x16xbf16>, vector<8x16xbf16>, vector<8x8xf32> -> vector<8x8xf32>
    %c0_33 = arith.constant 0 : index
    %c0_34 = arith.constant 0 : index
    %c0_35 = arith.constant 0 : index
    %c0_36 = arith.constant 0 : index
    %73 = vector.load %arg14[%c0_33, %c0_34, %c0_35, %c0_36] : memref<1x2x8x8xbf16, #tpu.memory_space<vmem>>, vector<1x1x8x8xbf16>
    %74 = vector.shape_cast %73 : vector<1x1x8x8xbf16> to vector<8x8xbf16>
    %75 = arith.extf %74 : vector<8x8xbf16> to vector<8x8xf32>
    %76 = arith.addf %72, %75 : vector<8x8xf32>
    %cst_37 = arith.constant dense<0xFF800000> : vector<8xf32>
    %77 = vector.multi_reduction <maximumf>, %76, %cst_37 [1] : vector<8x8xf32> to vector<8xf32>
    %78 = vector.shape_cast %77 : vector<8xf32> to vector<8x1xf32>
    %79 = vector.broadcast %78 : vector<8x1xf32> to vector<8x8xf32>
    %80 = arith.subf %76, %79 : vector<8x8xf32>
    %81 = math.exp %80 : vector<8x8xf32>
    %cst_38 = arith.constant dense<0.000000e+00> : vector<8xf32>
    %82 = vector.multi_reduction <add>, %81, %cst_38 [1] : vector<8x8xf32> to vector<8xf32>
    %83 = vector.shape_cast %82 : vector<8xf32> to vector<8x1xf32>
    %84 = tpu.reciprocal %83 {approx = true} : vector<8x1xf32> -> vector<8x1xf32>
    %85 = vector.broadcast %84 : vector<8x1xf32> to vector<8x8xf32>
    %86 = arith.mulf %81, %85 : vector<8x8xf32>
    %87 = arith.truncf %86 : vector<8x8xf32> to vector<8x8xbf16>
    %cst_39 = arith.constant dense<0.000000e+00> : vector<8x16xf32>
    %88 = tpu.matmul %87, %71, %cst_39 {dimension_numbers = #tpu.dot_dimension_numbers<[1], [0], [0], [1], [0, 0, 1, 1], [], []>} : vector<8x8xbf16>, vector<8x16xbf16>, vector<8x16xf32> -> vector<8x16xf32>
    %89 = vector.extract_strided_slice %57 {offsets = [0, 16], sizes = [8, 16], strides = [1, 1]} : vector<8x32xf32> to vector<8x16xf32>
    %90 = arith.truncf %89 : vector<8x16xf32> to vector<8x16xbf16>
    %91 = vector.extract_strided_slice %64 {offsets = [0, 16], sizes = [8, 16], strides = [1, 1]} : vector<8x32xf32> to vector<8x16xf32>
    %92 = arith.truncf %91 : vector<8x16xf32> to vector<8x16xbf16>
    %93 = vector.extract_strided_slice %65 {offsets = [0, 16], sizes = [8, 16], strides = [1, 1]} : vector<8x32xf32> to vector<8x16xf32>
    %94 = arith.truncf %93 : vector<8x16xf32> to vector<8x16xbf16>
    %cst_40 = arith.constant dense<0.000000e+00> : vector<8x8xf32>
    %95 = tpu.matmul %90, %92, %cst_40 {dimension_numbers = #tpu.dot_dimension_numbers<[1], [1], [0], [0], [0, 0, 1, 0], [], []>} : vector<8x16xbf16>, vector<8x16xbf16>, vector<8x8xf32> -> vector<8x8xf32>
    %c0_41 = arith.constant 0 : index
    %c1 = arith.constant 1 : index
    %c0_42 = arith.constant 0 : index
    %c0_43 = arith.constant 0 : index
    %96 = vector.load %arg14[%c0_41, %c1, %c0_42, %c0_43] : memref<1x2x8x8xbf16, #tpu.memory_space<vmem>>, vector<1x1x8x8xbf16>
    %97 = vector.shape_cast %96 : vector<1x1x8x8xbf16> to vector<8x8xbf16>
    %98 = arith.extf %97 : vector<8x8xbf16> to vector<8x8xf32>
    %99 = arith.addf %95, %98 : vector<8x8xf32>
    %cst_44 = arith.constant dense<0xFF800000> : vector<8xf32>
    %100 = vector.multi_reduction <maximumf>, %99, %cst_44 [1] : vector<8x8xf32> to vector<8xf32>
    %101 = vector.shape_cast %100 : vector<8xf32> to vector<8x1xf32>
    %102 = vector.broadcast %101 : vector<8x1xf32> to vector<8x8xf32>
    %103 = arith.subf %99, %102 : vector<8x8xf32>
    %104 = math.exp %103 : vector<8x8xf32>
    %cst_45 = arith.constant dense<0.000000e+00> : vector<8xf32>
    %105 = vector.multi_reduction <add>, %104, %cst_45 [1] : vector<8x8xf32> to vector<8xf32>
    %106 = vector.shape_cast %105 : vector<8xf32> to vector<8x1xf32>
    %107 = tpu.reciprocal %106 {approx = true} : vector<8x1xf32> -> vector<8x1xf32>
    %108 = vector.broadcast %107 : vector<8x1xf32> to vector<8x8xf32>
    %109 = arith.mulf %104, %108 : vector<8x8xf32>
    %110 = arith.truncf %109 : vector<8x8xf32> to vector<8x8xbf16>
    %cst_46 = arith.constant dense<0.000000e+00> : vector<8x16xf32>
    %111 = tpu.matmul %110, %94, %cst_46 {dimension_numbers = #tpu.dot_dimension_numbers<[1], [0], [0], [1], [0, 0, 1, 1], [], []>} : vector<8x8xbf16>, vector<8x16xbf16>, vector<8x16xf32> -> vector<8x16xf32>
    %112 = tpu.concatenate %88, %111 in 1 : vector<8x16xf32>, vector<8x16xf32> -> vector<8x32xf32>
    %113 = arith.truncf %112 : vector<8x32xf32> to vector<8x32xbf16>
    %c0_47 = arith.constant 0 : index
    %c0_48 = arith.constant 0 : index
    %114 = vector.load %arg12[%c0_47, %c0_48] : memref<32x32xbf16, #tpu.memory_space<vmem>>, vector<32x32xbf16>
    %cst_49 = arith.constant dense<0.000000e+00> : vector<8x32xf32>
    %115 = tpu.matmul %113, %114, %cst_49 {dimension_numbers = #tpu.dot_dimension_numbers<[1], [0], [0], [1], [0, 0, 1, 1], [], []>} : vector<8x32xbf16>, vector<32x32xbf16>, vector<8x32xf32> -> vector<8x32xf32>
    %c0_50 = arith.constant 0 : index
    %c0_51 = arith.constant 0 : index
    %116 = vector.load %arg13[%c0_50, %c0_51] : memref<1x32xf32, #tpu.memory_space<vmem>>, vector<1x32xf32>
    %117 = vector.broadcast %116 : vector<1x32xf32> to vector<8x32xf32>
    %118 = arith.addf %115, %117 : vector<8x32xf32>
    %119 = arith.addf %118, %1 : vector<8x32xf32>
    %c0_52 = arith.constant 0 : index
    %c0_53 = arith.constant 0 : index
    %c0_54 = arith.constant 0 : index
    %120 = vector.load %arg15[%c0_52, %c0_53, %c0_54] : memref<1x8x32xf32, #tpu.memory_space<vmem>>, vector<1x8x32xf32>
    %121 = vector.shape_cast %120 : vector<1x8x32xf32> to vector<8x32xf32>
    %122 = vector.shape_cast %119 : vector<8x32xf32> to vector<1x8x32xf32>
    tpu.vector_store %arg15[%c0_52, %c0_53, %c0_54], %122 {strides = array<i32>} : memref<1x8x32xf32, #tpu.memory_space<vmem>>, vector<1x8x32xf32>,
    return
  }
  func.func @transform_0(%arg0: i32, %arg1: i32) -> (i32, i32, i32) {
    %c0_i32 = arith.constant 0 : i32
    %c0_i32_0 = arith.constant 0 : i32
    return %arg0, %arg1, %c0_i32 : i32, i32, i32
  }
  func.func @transform_1(%arg0: i32, %arg1: i32) -> (i32, i32, i32) {
    %c0_i32 = arith.constant 0 : i32
    %c0_i32_0 = arith.constant 0 : i32
    %c0_i32_1 = arith.constant 0 : i32
    return %arg0, %c0_i32, %c0_i32_0 : i32, i32, i32
  }
  func.func @transform_2(%arg0: i32, %arg1: i32) -> (i32, i32) {
    %c0_i32 = arith.constant 0 : i32
    %c0_i32_0 = arith.constant 0 : i32
    %c0_i32_1 = arith.constant 0 : i32
    return %c0_i32, %c0_i32_0 : i32, i32
  }
  func.func @transform_3(%arg0: i32, %arg1: i32) -> (i32, i32) {
    %c0_i32 = arith.constant 0 : i32
    %c0_i32_0 = arith.constant 0 : i32
    %c0_i32_1 = arith.constant 0 : i32
    return %c0_i32, %c0_i32_0 : i32, i32
  }
  func.func @transform_4(%arg0: i32, %arg1: i32) -> (i32, i32) {
    %c0_i32 = arith.constant 0 : i32
    %c0_i32_0 = arith.constant 0 : i32
    %c0_i32_1 = arith.constant 0 : i32
    return %c0_i32, %c0_i32_0 : i32, i32
  }
  func.func @transform_5(%arg0: i32, %arg1: i32) -> (i32, i32) {
    %c0_i32 = arith.constant 0 : i32
    %c0_i32_0 = arith.constant 0 : i32
    %c0_i32_1 = arith.constant 0 : i32
    return %c0_i32, %c0_i32_0 : i32, i32
  }
  func.func @transform_6(%arg0: i32, %arg1: i32) -> (i32, i32) {
    %c0_i32 = arith.constant 0 : i32
    %c0_i32_0 = arith.constant 0 : i32
    %c0_i32_1 = arith.constant 0 : i32
    return %c0_i32, %c0_i32_0 : i32, i32
  }
  func.func @transform_7(%arg0: i32, %arg1: i32) -> (i32, i32) {
    %c0_i32 = arith.constant 0 : i32
    %c0_i32_0 = arith.constant 0 : i32
    %c0_i32_1 = arith.constant 0 : i32
    return %c0_i32, %c0_i32_0 : i32, i32
  }
  func.func @transform_8(%arg0: i32, %arg1: i32) -> (i32, i32) {
    %c0_i32 = arith.constant 0 : i32
    %c0_i32_0 = arith.constant 0 : i32
    %c0_i32_1 = arith.constant 0 : i32
    return %c0_i32, %c0_i32_0 : i32, i32
  }
  func.func @transform_9(%arg0: i32, %arg1: i32) -> (i32, i32) {
    %c0_i32 = arith.constant 0 : i32
    %c0_i32_0 = arith.constant 0 : i32
    %c0_i32_1 = arith.constant 0 : i32
    return %c0_i32, %c0_i32_0 : i32, i32
  }
  func.func @transform_10(%arg0: i32, %arg1: i32) -> (i32, i32) {
    %c0_i32 = arith.constant 0 : i32
    %c0_i32_0 = arith.constant 0 : i32
    %c0_i32_1 = arith.constant 0 : i32
    return %c0_i32, %c0_i32_0 : i32, i32
  }
  func.func @transform_11(%arg0: i32, %arg1: i32) -> (i32, i32) {
    %c0_i32 = arith.constant 0 : i32
    %c0_i32_0 = arith.constant 0 : i32
    %c0_i32_1 = arith.constant 0 : i32
    return %c0_i32, %c0_i32_0 : i32, i32
  }
  func.func @transform_12(%arg0: i32, %arg1: i32) -> (i32, i32, i32, i32) {
    %c0_i32 = arith.constant 0 : i32
    %c0_i32_0 = arith.constant 0 : i32
    %c0_i32_1 = arith.constant 0 : i32
    return %arg0, %c0_i32, %arg1, %c0_i32_0 : i32, i32, i32, i32
  }
  func.func @transform_13(%arg0: i32, %arg1: i32) -> (i32, i32, i32) {
    %c0_i32 = arith.constant 0 : i32
    %c0_i32_0 = arith.constant 0 : i32
    return %arg0, %arg1, %c0_i32 : i32, i32, i32
  }
}

module attributes {stable_mosaic.version = 11 : i64} {
  func.func @_attn_block_kernel(%arg0: i32, %arg1: i32, %arg2: memref<1x6x32xf32, #tpu.memory_space<vmem>>, %arg3: memref<1x8x32xf32, #tpu.memory_space<vmem>>, %arg4: memref<1x32xf32, #tpu.memory_space<vmem>>, %arg5: memref<1x32xf32, #tpu.memory_space<vmem>>, %arg6: memref<1x32xf32, #tpu.memory_space<vmem>>, %arg7: memref<1x32xf32, #tpu.memory_space<vmem>>, %arg8: memref<32x32xbf16, #tpu.memory_space<vmem>>, %arg9: memref<1x32xf32, #tpu.memory_space<vmem>>, %arg10: memref<32x64xbf16, #tpu.memory_space<vmem>>, %arg11: memref<1x64xf32, #tpu.memory_space<vmem>>, %arg12: memref<32x32xbf16, #tpu.memory_space<vmem>>, %arg13: memref<1x32xf32, #tpu.memory_space<vmem>>, %arg14: memref<1x2x6x8xbf16, #tpu.memory_space<vmem>>, %arg15: memref<1x6x32xf32, #tpu.memory_space<vmem>>) attributes {dimension_semantics = [#tpu.dimension_semantics<parallel>, #tpu.dimension_semantics<parallel>], iteration_bounds = array<i64: 2, 1>, scalar_prefetch = 0 : i64, scratch_operands = 0 : i64, tpu.core_type = #tpu.core_type<tc>, window_params = [{transform_indices = @transform_0, window_bounds = array<i64: 1, 6, 32>}, {transform_indices = @transform_1, window_bounds = array<i64: 1, 8, 32>}, {pipeline_mode = #tpu.pipeline_mode<synchronous>, transform_indices = @transform_2, window_bounds = array<i64: 1, 32>}, {pipeline_mode = #tpu.pipeline_mode<synchronous>, transform_indices = @transform_3, window_bounds = array<i64: 1, 32>}, {pipeline_mode = #tpu.pipeline_mode<synchronous>, transform_indices = @transform_4, window_bounds = array<i64: 1, 32>}, {pipeline_mode = #tpu.pipeline_mode<synchronous>, transform_indices = @transform_5, window_bounds = array<i64: 1, 32>}, {pipeline_mode = #tpu.pipeline_mode<synchronous>, transform_indices = @transform_6, window_bounds = array<i64: 32, 32>}, {pipeline_mode = #tpu.pipeline_mode<synchronous>, transform_indices = @transform_7, window_bounds = array<i64: 1, 32>}, {pipeline_mode = #tpu.pipeline_mode<synchronous>, transform_indices = @transform_8, window_bounds = array<i64: 32, 64>}, {pipeline_mode = #tpu.pipeline_mode<synchronous>, transform_indices = @transform_9, window_bounds = array<i64: 1, 64>}, {pipeline_mode = #tpu.pipeline_mode<synchronous>, transform_indices = @transform_10, window_bounds = array<i64: 32, 32>}, {pipeline_mode = #tpu.pipeline_mode<synchronous>, transform_indices = @transform_11, window_bounds = array<i64: 1, 32>}, {transform_indices = @transform_12, window_bounds = array<i64: 1, 2, 6, 8>}, {transform_indices = @transform_13, window_bounds = array<i64: 1, 6, 32>}]} {
    %c0 = arith.constant 0 : index
    %c0_0 = arith.constant 0 : index
    %c0_1 = arith.constant 0 : index
    %0 = vector.load %arg2[%c0, %c0_0, %c0_1] : memref<1x6x32xf32, #tpu.memory_space<vmem>>, vector<1x6x32xf32>
    %1 = vector.shape_cast %0 : vector<1x6x32xf32> to vector<6x32xf32>
    %c0_2 = arith.constant 0 : index
    %c0_3 = arith.constant 0 : index
    %c0_4 = arith.constant 0 : index
    %2 = vector.load %arg3[%c0_2, %c0_3, %c0_4] : memref<1x8x32xf32, #tpu.memory_space<vmem>>, vector<1x8x32xf32>
    %3 = vector.shape_cast %2 : vector<1x8x32xf32> to vector<8x32xf32>
    %c0_5 = arith.constant 0 : index
    %c0_6 = arith.constant 0 : index
    %4 = vector.load %arg4[%c0_5, %c0_6] : memref<1x32xf32, #tpu.memory_space<vmem>>, vector<1x32xf32>
    %c0_7 = arith.constant 0 : index
    %c0_8 = arith.constant 0 : index
    %5 = vector.load %arg5[%c0_7, %c0_8] : memref<1x32xf32, #tpu.memory_space<vmem>>, vector<1x32xf32>
    %cst = arith.constant dense<0.000000e+00> : vector<6xf32>
    %6 = vector.multi_reduction <add>, %1, %cst [1] : vector<6x32xf32> to vector<6xf32>
    %7 = vector.shape_cast %6 : vector<6xf32> to vector<6x1xf32>
    %cst_9 = arith.constant 3.200000e+01 : f32
    %8 = vector.broadcast %cst_9 : f32 to vector<6x1xf32>
    %9 = arith.divf %7, %8 : vector<6x1xf32>
    %10 = vector.broadcast %9 : vector<6x1xf32> to vector<6x32xf32>
    %11 = arith.subf %1, %10 : vector<6x32xf32>
    %12 = arith.mulf %11, %11 : vector<6x32xf32>
    %cst_10 = arith.constant dense<0.000000e+00> : vector<6xf32>
    %13 = vector.multi_reduction <add>, %12, %cst_10 [1] : vector<6x32xf32> to vector<6xf32>
    %14 = vector.shape_cast %13 : vector<6xf32> to vector<6x1xf32>
    %cst_11 = arith.constant 3.200000e+01 : f32
    %15 = vector.broadcast %cst_11 : f32 to vector<6x1xf32>
    %16 = arith.divf %14, %15 : vector<6x1xf32>
    %17 = vector.broadcast %9 : vector<6x1xf32> to vector<6x32xf32>
    %18 = arith.subf %1, %17 : vector<6x32xf32>
    %cst_12 = arith.constant 9.99999974E-6 : f32
    %19 = vector.broadcast %cst_12 : f32 to vector<6x1xf32>
    %20 = arith.addf %16, %19 : vector<6x1xf32>
    %21 = math.rsqrt %20 : vector<6x1xf32>
    %22 = vector.broadcast %21 : vector<6x1xf32> to vector<6x32xf32>
    %23 = arith.mulf %18, %22 : vector<6x32xf32>
    %24 = vector.broadcast %4 : vector<1x32xf32> to vector<6x32xf32>
    %25 = arith.mulf %23, %24 : vector<6x32xf32>
    %26 = vector.broadcast %5 : vector<1x32xf32> to vector<6x32xf32>
    %27 = arith.addf %25, %26 : vector<6x32xf32>
    %c0_13 = arith.constant 0 : index
    %c0_14 = arith.constant 0 : index
    %28 = vector.load %arg6[%c0_13, %c0_14] : memref<1x32xf32, #tpu.memory_space<vmem>>, vector<1x32xf32>
    %c0_15 = arith.constant 0 : index
    %c0_16 = arith.constant 0 : index
    %29 = vector.load %arg7[%c0_15, %c0_16] : memref<1x32xf32, #tpu.memory_space<vmem>>, vector<1x32xf32>
    %cst_17 = arith.constant dense<0.000000e+00> : vector<8xf32>
    %30 = vector.multi_reduction <add>, %3, %cst_17 [1] : vector<8x32xf32> to vector<8xf32>
    %31 = vector.shape_cast %30 : vector<8xf32> to vector<8x1xf32>
    %cst_18 = arith.constant 3.200000e+01 : f32
    %32 = vector.broadcast %cst_18 : f32 to vector<8x1xf32>
    %33 = arith.divf %31, %32 : vector<8x1xf32>
    %34 = vector.broadcast %33 : vector<8x1xf32> to vector<8x32xf32>
    %35 = arith.subf %3, %34 : vector<8x32xf32>
    %36 = arith.mulf %35, %35 : vector<8x32xf32>
    %cst_19 = arith.constant dense<0.000000e+00> : vector<8xf32>
    %37 = vector.multi_reduction <add>, %36, %cst_19 [1] : vector<8x32xf32> to vector<8xf32>
    %38 = vector.shape_cast %37 : vector<8xf32> to vector<8x1xf32>
    %cst_20 = arith.constant 3.200000e+01 : f32
    %39 = vector.broadcast %cst_20 : f32 to vector<8x1xf32>
    %40 = arith.divf %38, %39 : vector<8x1xf32>
    %41 = vector.broadcast %33 : vector<8x1xf32> to vector<8x32xf32>
    %42 = arith.subf %3, %41 : vector<8x32xf32>
    %cst_21 = arith.constant 9.99999974E-6 : f32
    %43 = vector.broadcast %cst_21 : f32 to vector<8x1xf32>
    %44 = arith.addf %40, %43 : vector<8x1xf32>
    %45 = math.rsqrt %44 : vector<8x1xf32>
    %46 = vector.broadcast %45 : vector<8x1xf32> to vector<8x32xf32>
    %47 = arith.mulf %42, %46 : vector<8x32xf32>
    %48 = vector.broadcast %28 : vector<1x32xf32> to vector<8x32xf32>
    %49 = arith.mulf %47, %48 : vector<8x32xf32>
    %50 = vector.broadcast %29 : vector<1x32xf32> to vector<8x32xf32>
    %51 = arith.addf %49, %50 : vector<8x32xf32>
    %52 = arith.truncf %27 : vector<6x32xf32> to vector<6x32xbf16>
    %c0_22 = arith.constant 0 : index
    %c0_23 = arith.constant 0 : index
    %53 = vector.load %arg8[%c0_22, %c0_23] : memref<32x32xbf16, #tpu.memory_space<vmem>>, vector<32x32xbf16>
    %cst_24 = arith.constant dense<0.000000e+00> : vector<6x32xf32>
    %54 = tpu.matmul %52, %53, %cst_24 {dimension_numbers = #tpu.dot_dimension_numbers<[1], [0], [0], [1], [0, 0, 1, 1], [], []>} : vector<6x32xbf16>, vector<32x32xbf16>, vector<6x32xf32> -> vector<6x32xf32>
    %c0_25 = arith.constant 0 : index
    %c0_26 = arith.constant 0 : index
    %55 = vector.load %arg9[%c0_25, %c0_26] : memref<1x32xf32, #tpu.memory_space<vmem>>, vector<1x32xf32>
    %56 = vector.broadcast %55 : vector<1x32xf32> to vector<6x32xf32>
    %57 = arith.addf %54, %56 : vector<6x32xf32>
    %58 = arith.truncf %51 : vector<8x32xf32> to vector<8x32xbf16>
    %c0_27 = arith.constant 0 : index
    %c0_28 = arith.constant 0 : index
    %59 = vector.load %arg10[%c0_27, %c0_28] : memref<32x64xbf16, #tpu.memory_space<vmem>>, vector<32x64xbf16>
    %cst_29 = arith.constant dense<0.000000e+00> : vector<8x64xf32>
    %60 = tpu.matmul %58, %59, %cst_29 {dimension_numbers = #tpu.dot_dimension_numbers<[1], [0], [0], [1], [0, 0, 1, 1], [], []>} : vector<8x32xbf16>, vector<32x64xbf16>, vector<8x64xf32> -> vector<8x64xf32>
    %c0_30 = arith.constant 0 : index
    %c0_31 = arith.constant 0 : index
    %61 = vector.load %arg11[%c0_30, %c0_31] : memref<1x64xf32, #tpu.memory_space<vmem>>, vector<1x64xf32>
    %62 = vector.broadcast %61 : vector<1x64xf32> to vector<8x64xf32>
    %63 = arith.addf %60, %62 : vector<8x64xf32>
    %64 = vector.extract_strided_slice %63 {offsets = [0, 0], sizes = [8, 32], strides = [1, 1]} : vector<8x64xf32> to vector<8x32xf32>
    %65 = vector.extract_strided_slice %63 {offsets = [0, 32], sizes = [8, 32], strides = [1, 1]} : vector<8x64xf32> to vector<8x32xf32>
    %66 = vector.extract_strided_slice %57 {offsets = [0, 0], sizes = [6, 16], strides = [1, 1]} : vector<6x32xf32> to vector<6x16xf32>
    %67 = arith.truncf %66 : vector<6x16xf32> to vector<6x16xbf16>
    %68 = vector.extract_strided_slice %64 {offsets = [0, 0], sizes = [8, 16], strides = [1, 1]} : vector<8x32xf32> to vector<8x16xf32>
    %69 = arith.truncf %68 : vector<8x16xf32> to vector<8x16xbf16>
    %70 = vector.extract_strided_slice %65 {offsets = [0, 0], sizes = [8, 16], strides = [1, 1]} : vector<8x32xf32> to vector<8x16xf32>
    %71 = arith.truncf %70 : vector<8x16xf32> to vector<8x16xbf16>
    %cst_32 = arith.constant dense<0.000000e+00> : vector<6x8xf32>
    %72 = tpu.matmul %67, %69, %cst_32 {dimension_numbers = #tpu.dot_dimension_numbers<[1], [1], [0], [0], [0, 0, 1, 0], [], []>} : vector<6x16xbf16>, vector<8x16xbf16>, vector<6x8xf32> -> vector<6x8xf32>
    %c0_33 = arith.constant 0 : index
    %c0_34 = arith.constant 0 : index
    %c0_35 = arith.constant 0 : index
    %c0_36 = arith.constant 0 : index
    %73 = vector.load %arg14[%c0_33, %c0_34, %c0_35, %c0_36] : memref<1x2x6x8xbf16, #tpu.memory_space<vmem>>, vector<1x1x6x8xbf16>
    %74 = vector.shape_cast %73 : vector<1x1x6x8xbf16> to vector<6x8xbf16>
    %75 = arith.extf %74 : vector<6x8xbf16> to vector<6x8xf32>
    %76 = arith.addf %72, %75 : vector<6x8xf32>
    %cst_37 = arith.constant dense<0xFF800000> : vector<6xf32>
    %77 = vector.multi_reduction <maximumf>, %76, %cst_37 [1] : vector<6x8xf32> to vector<6xf32>
    %78 = vector.shape_cast %77 : vector<6xf32> to vector<6x1xf32>
    %79 = vector.broadcast %78 : vector<6x1xf32> to vector<6x8xf32>
    %80 = arith.subf %76, %79 : vector<6x8xf32>
    %81 = math.exp %80 : vector<6x8xf32>
    %cst_38 = arith.constant dense<0.000000e+00> : vector<6xf32>
    %82 = vector.multi_reduction <add>, %81, %cst_38 [1] : vector<6x8xf32> to vector<6xf32>
    %83 = vector.shape_cast %82 : vector<6xf32> to vector<6x1xf32>
    %84 = tpu.reciprocal %83 {approx = true} : vector<6x1xf32> -> vector<6x1xf32>
    %85 = vector.broadcast %84 : vector<6x1xf32> to vector<6x8xf32>
    %86 = arith.mulf %81, %85 : vector<6x8xf32>
    %87 = arith.truncf %86 : vector<6x8xf32> to vector<6x8xbf16>
    %cst_39 = arith.constant dense<0.000000e+00> : vector<6x16xf32>
    %88 = tpu.matmul %87, %71, %cst_39 {dimension_numbers = #tpu.dot_dimension_numbers<[1], [0], [0], [1], [0, 0, 1, 1], [], []>} : vector<6x8xbf16>, vector<8x16xbf16>, vector<6x16xf32> -> vector<6x16xf32>
    %89 = vector.extract_strided_slice %57 {offsets = [0, 16], sizes = [6, 16], strides = [1, 1]} : vector<6x32xf32> to vector<6x16xf32>
    %90 = arith.truncf %89 : vector<6x16xf32> to vector<6x16xbf16>
    %91 = vector.extract_strided_slice %64 {offsets = [0, 16], sizes = [8, 16], strides = [1, 1]} : vector<8x32xf32> to vector<8x16xf32>
    %92 = arith.truncf %91 : vector<8x16xf32> to vector<8x16xbf16>
    %93 = vector.extract_strided_slice %65 {offsets = [0, 16], sizes = [8, 16], strides = [1, 1]} : vector<8x32xf32> to vector<8x16xf32>
    %94 = arith.truncf %93 : vector<8x16xf32> to vector<8x16xbf16>
    %cst_40 = arith.constant dense<0.000000e+00> : vector<6x8xf32>
    %95 = tpu.matmul %90, %92, %cst_40 {dimension_numbers = #tpu.dot_dimension_numbers<[1], [1], [0], [0], [0, 0, 1, 0], [], []>} : vector<6x16xbf16>, vector<8x16xbf16>, vector<6x8xf32> -> vector<6x8xf32>
    %c0_41 = arith.constant 0 : index
    %c1 = arith.constant 1 : index
    %c0_42 = arith.constant 0 : index
    %c0_43 = arith.constant 0 : index
    %96 = vector.load %arg14[%c0_41, %c1, %c0_42, %c0_43] : memref<1x2x6x8xbf16, #tpu.memory_space<vmem>>, vector<1x1x6x8xbf16>
    %97 = vector.shape_cast %96 : vector<1x1x6x8xbf16> to vector<6x8xbf16>
    %98 = arith.extf %97 : vector<6x8xbf16> to vector<6x8xf32>
    %99 = arith.addf %95, %98 : vector<6x8xf32>
    %cst_44 = arith.constant dense<0xFF800000> : vector<6xf32>
    %100 = vector.multi_reduction <maximumf>, %99, %cst_44 [1] : vector<6x8xf32> to vector<6xf32>
    %101 = vector.shape_cast %100 : vector<6xf32> to vector<6x1xf32>
    %102 = vector.broadcast %101 : vector<6x1xf32> to vector<6x8xf32>
    %103 = arith.subf %99, %102 : vector<6x8xf32>
    %104 = math.exp %103 : vector<6x8xf32>
    %cst_45 = arith.constant dense<0.000000e+00> : vector<6xf32>
    %105 = vector.multi_reduction <add>, %104, %cst_45 [1] : vector<6x8xf32> to vector<6xf32>
    %106 = vector.shape_cast %105 : vector<6xf32> to vector<6x1xf32>
    %107 = tpu.reciprocal %106 {approx = true} : vector<6x1xf32> -> vector<6x1xf32>
    %108 = vector.broadcast %107 : vector<6x1xf32> to vector<6x8xf32>
    %109 = arith.mulf %104, %108 : vector<6x8xf32>
    %110 = arith.truncf %109 : vector<6x8xf32> to vector<6x8xbf16>
    %cst_46 = arith.constant dense<0.000000e+00> : vector<6x16xf32>
    %111 = tpu.matmul %110, %94, %cst_46 {dimension_numbers = #tpu.dot_dimension_numbers<[1], [0], [0], [1], [0, 0, 1, 1], [], []>} : vector<6x8xbf16>, vector<8x16xbf16>, vector<6x16xf32> -> vector<6x16xf32>
    %112 = tpu.concatenate %88, %111 in 1 : vector<6x16xf32>, vector<6x16xf32> -> vector<6x32xf32>
    %113 = arith.truncf %112 : vector<6x32xf32> to vector<6x32xbf16>
    %c0_47 = arith.constant 0 : index
    %c0_48 = arith.constant 0 : index
    %114 = vector.load %arg12[%c0_47, %c0_48] : memref<32x32xbf16, #tpu.memory_space<vmem>>, vector<32x32xbf16>
    %cst_49 = arith.constant dense<0.000000e+00> : vector<6x32xf32>
    %115 = tpu.matmul %113, %114, %cst_49 {dimension_numbers = #tpu.dot_dimension_numbers<[1], [0], [0], [1], [0, 0, 1, 1], [], []>} : vector<6x32xbf16>, vector<32x32xbf16>, vector<6x32xf32> -> vector<6x32xf32>
    %c0_50 = arith.constant 0 : index
    %c0_51 = arith.constant 0 : index
    %116 = vector.load %arg13[%c0_50, %c0_51] : memref<1x32xf32, #tpu.memory_space<vmem>>, vector<1x32xf32>
    %117 = vector.broadcast %116 : vector<1x32xf32> to vector<6x32xf32>
    %118 = arith.addf %115, %117 : vector<6x32xf32>
    %119 = arith.addf %118, %1 : vector<6x32xf32>
    %c0_52 = arith.constant 0 : index
    %c0_53 = arith.constant 0 : index
    %c0_54 = arith.constant 0 : index
    %120 = vector.load %arg15[%c0_52, %c0_53, %c0_54] : memref<1x6x32xf32, #tpu.memory_space<vmem>>, vector<1x6x32xf32>
    %121 = vector.shape_cast %120 : vector<1x6x32xf32> to vector<6x32xf32>
    %122 = vector.shape_cast %119 : vector<6x32xf32> to vector<1x6x32xf32>
    tpu.vector_store %arg15[%c0_52, %c0_53, %c0_54], %122 {strides = array<i32>} : memref<1x6x32xf32, #tpu.memory_space<vmem>>, vector<1x6x32xf32>,
    return
  }
  func.func @transform_0(%arg0: i32, %arg1: i32) -> (i32, i32, i32) {
    %c0_i32 = arith.constant 0 : i32
    %c0_i32_0 = arith.constant 0 : i32
    return %arg0, %arg1, %c0_i32 : i32, i32, i32
  }
  func.func @transform_1(%arg0: i32, %arg1: i32) -> (i32, i32, i32) {
    %c0_i32 = arith.constant 0 : i32
    %c0_i32_0 = arith.constant 0 : i32
    %c0_i32_1 = arith.constant 0 : i32
    return %arg0, %c0_i32, %c0_i32_0 : i32, i32, i32
  }
  func.func @transform_2(%arg0: i32, %arg1: i32) -> (i32, i32) {
    %c0_i32 = arith.constant 0 : i32
    %c0_i32_0 = arith.constant 0 : i32
    %c0_i32_1 = arith.constant 0 : i32
    return %c0_i32, %c0_i32_0 : i32, i32
  }
  func.func @transform_3(%arg0: i32, %arg1: i32) -> (i32, i32) {
    %c0_i32 = arith.constant 0 : i32
    %c0_i32_0 = arith.constant 0 : i32
    %c0_i32_1 = arith.constant 0 : i32
    return %c0_i32, %c0_i32_0 : i32, i32
  }
  func.func @transform_4(%arg0: i32, %arg1: i32) -> (i32, i32) {
    %c0_i32 = arith.constant 0 : i32
    %c0_i32_0 = arith.constant 0 : i32
    %c0_i32_1 = arith.constant 0 : i32
    return %c0_i32, %c0_i32_0 : i32, i32
  }
  func.func @transform_5(%arg0: i32, %arg1: i32) -> (i32, i32) {
    %c0_i32 = arith.constant 0 : i32
    %c0_i32_0 = arith.constant 0 : i32
    %c0_i32_1 = arith.constant 0 : i32
    return %c0_i32, %c0_i32_0 : i32, i32
  }
  func.func @transform_6(%arg0: i32, %arg1: i32) -> (i32, i32) {
    %c0_i32 = arith.constant 0 : i32
    %c0_i32_0 = arith.constant 0 : i32
    %c0_i32_1 = arith.constant 0 : i32
    return %c0_i32, %c0_i32_0 : i32, i32
  }
  func.func @transform_7(%arg0: i32, %arg1: i32) -> (i32, i32) {
    %c0_i32 = arith.constant 0 : i32
    %c0_i32_0 = arith.constant 0 : i32
    %c0_i32_1 = arith.constant 0 : i32
    return %c0_i32, %c0_i32_0 : i32, i32
  }
  func.func @transform_8(%arg0: i32, %arg1: i32) -> (i32, i32) {
    %c0_i32 = arith.constant 0 : i32
    %c0_i32_0 = arith.constant 0 : i32
    %c0_i32_1 = arith.constant 0 : i32
    return %c0_i32, %c0_i32_0 : i32, i32
  }
  func.func @transform_9(%arg0: i32, %arg1: i32) -> (i32, i32) {
    %c0_i32 = arith.constant 0 : i32
    %c0_i32_0 = arith.constant 0 : i32
    %c0_i32_1 = arith.constant 0 : i32
    return %c0_i32, %c0_i32_0 : i32, i32
  }
  func.func @transform_10(%arg0: i32, %arg1: i32) -> (i32, i32) {
    %c0_i32 = arith.constant 0 : i32
    %c0_i32_0 = arith.constant 0 : i32
    %c0_i32_1 = arith.constant 0 : i32
    return %c0_i32, %c0_i32_0 : i32, i32
  }
  func.func @transform_11(%arg0: i32, %arg1: i32) -> (i32, i32) {
    %c0_i32 = arith.constant 0 : i32
    %c0_i32_0 = arith.constant 0 : i32
    %c0_i32_1 = arith.constant 0 : i32
    return %c0_i32, %c0_i32_0 : i32, i32
  }
  func.func @transform_12(%arg0: i32, %arg1: i32) -> (i32, i32, i32, i32) {
    %c0_i32 = arith.constant 0 : i32
    %c0_i32_0 = arith.constant 0 : i32
    %c0_i32_1 = arith.constant 0 : i32
    return %arg0, %c0_i32, %arg1, %c0_i32_0 : i32, i32, i32, i32
  }
  func.func @transform_13(%arg0: i32, %arg1: i32) -> (i32, i32, i32) {
    %c0_i32 = arith.constant 0 : i32
    %c0_i32_0 = arith.constant 0 : i32
    return %arg0, %arg1, %c0_i32 : i32, i32, i32
  }
}

module attributes {stable_mosaic.version = 11 : i64} {
  func.func @_ffn_post_ln_block_kernel(%arg0: i32, %arg1: memref<12x32xf32, #tpu.memory_space<vmem>>, %arg2: memref<1x32xf32, #tpu.memory_space<vmem>>, %arg3: memref<1x32xf32, #tpu.memory_space<vmem>>, %arg4: memref<32x64xbf16, #tpu.memory_space<vmem>>, %arg5: memref<1x64xf32, #tpu.memory_space<vmem>>, %arg6: memref<64x32xbf16, #tpu.memory_space<vmem>>, %arg7: memref<1x32xf32, #tpu.memory_space<vmem>>, %arg8: memref<1x32xf32, #tpu.memory_space<vmem>>, %arg9: memref<1x32xf32, #tpu.memory_space<vmem>>, %arg10: memref<12x32xf32, #tpu.memory_space<vmem>>) attributes {dimension_semantics = [#tpu.dimension_semantics<parallel>], iteration_bounds = array<i64: 1>, scalar_prefetch = 0 : i64, scratch_operands = 0 : i64, tpu.core_type = #tpu.core_type<tc>, window_params = [{transform_indices = @transform_0, window_bounds = array<i64: 12, 32>}, {pipeline_mode = #tpu.pipeline_mode<synchronous>, transform_indices = @transform_1, window_bounds = array<i64: 1, 32>}, {pipeline_mode = #tpu.pipeline_mode<synchronous>, transform_indices = @transform_2, window_bounds = array<i64: 1, 32>}, {pipeline_mode = #tpu.pipeline_mode<synchronous>, transform_indices = @transform_3, window_bounds = array<i64: 32, 64>}, {pipeline_mode = #tpu.pipeline_mode<synchronous>, transform_indices = @transform_4, window_bounds = array<i64: 1, 64>}, {pipeline_mode = #tpu.pipeline_mode<synchronous>, transform_indices = @transform_5, window_bounds = array<i64: 64, 32>}, {pipeline_mode = #tpu.pipeline_mode<synchronous>, transform_indices = @transform_6, window_bounds = array<i64: 1, 32>}, {pipeline_mode = #tpu.pipeline_mode<synchronous>, transform_indices = @transform_7, window_bounds = array<i64: 1, 32>}, {pipeline_mode = #tpu.pipeline_mode<synchronous>, transform_indices = @transform_8, window_bounds = array<i64: 1, 32>}, {transform_indices = @transform_9, window_bounds = array<i64: 12, 32>}]} {
    %c0 = arith.constant 0 : index
    %c0_0 = arith.constant 0 : index
    %0 = vector.load %arg1[%c0, %c0_0] : memref<12x32xf32, #tpu.memory_space<vmem>>, vector<12x32xf32>
    %c0_1 = arith.constant 0 : index
    %c0_2 = arith.constant 0 : index
    %1 = vector.load %arg2[%c0_1, %c0_2] : memref<1x32xf32, #tpu.memory_space<vmem>>, vector<1x32xf32>
    %c0_3 = arith.constant 0 : index
    %c0_4 = arith.constant 0 : index
    %2 = vector.load %arg3[%c0_3, %c0_4] : memref<1x32xf32, #tpu.memory_space<vmem>>, vector<1x32xf32>
    %cst = arith.constant dense<0.000000e+00> : vector<12xf32>
    %3 = vector.multi_reduction <add>, %0, %cst [1] : vector<12x32xf32> to vector<12xf32>
    %4 = vector.shape_cast %3 : vector<12xf32> to vector<12x1xf32>
    %cst_5 = arith.constant 3.200000e+01 : f32
    %5 = vector.broadcast %cst_5 : f32 to vector<12x1xf32>
    %6 = arith.divf %4, %5 : vector<12x1xf32>
    %7 = vector.broadcast %6 : vector<12x1xf32> to vector<12x32xf32>
    %8 = arith.subf %0, %7 : vector<12x32xf32>
    %9 = arith.mulf %8, %8 : vector<12x32xf32>
    %cst_6 = arith.constant dense<0.000000e+00> : vector<12xf32>
    %10 = vector.multi_reduction <add>, %9, %cst_6 [1] : vector<12x32xf32> to vector<12xf32>
    %11 = vector.shape_cast %10 : vector<12xf32> to vector<12x1xf32>
    %cst_7 = arith.constant 3.200000e+01 : f32
    %12 = vector.broadcast %cst_7 : f32 to vector<12x1xf32>
    %13 = arith.divf %11, %12 : vector<12x1xf32>
    %14 = vector.broadcast %6 : vector<12x1xf32> to vector<12x32xf32>
    %15 = arith.subf %0, %14 : vector<12x32xf32>
    %cst_8 = arith.constant 9.99999974E-6 : f32
    %16 = vector.broadcast %cst_8 : f32 to vector<12x1xf32>
    %17 = arith.addf %13, %16 : vector<12x1xf32>
    %18 = math.rsqrt %17 : vector<12x1xf32>
    %19 = vector.broadcast %18 : vector<12x1xf32> to vector<12x32xf32>
    %20 = arith.mulf %15, %19 : vector<12x32xf32>
    %21 = vector.broadcast %1 : vector<1x32xf32> to vector<12x32xf32>
    %22 = arith.mulf %20, %21 : vector<12x32xf32>
    %23 = vector.broadcast %2 : vector<1x32xf32> to vector<12x32xf32>
    %24 = arith.addf %22, %23 : vector<12x32xf32>
    %25 = arith.truncf %24 : vector<12x32xf32> to vector<12x32xbf16>
    %c0_9 = arith.constant 0 : index
    %c0_10 = arith.constant 0 : index
    %26 = vector.load %arg4[%c0_9, %c0_10] : memref<32x64xbf16, #tpu.memory_space<vmem>>, vector<32x64xbf16>
    %cst_11 = arith.constant dense<0.000000e+00> : vector<12x64xf32>
    %27 = tpu.matmul %25, %26, %cst_11 {dimension_numbers = #tpu.dot_dimension_numbers<[1], [0], [0], [1], [0, 0, 1, 1], [], []>} : vector<12x32xbf16>, vector<32x64xbf16>, vector<12x64xf32> -> vector<12x64xf32>
    %c0_12 = arith.constant 0 : index
    %c0_13 = arith.constant 0 : index
    %28 = vector.load %arg5[%c0_12, %c0_13] : memref<1x64xf32, #tpu.memory_space<vmem>>, vector<1x64xf32>
    %29 = vector.broadcast %28 : vector<1x64xf32> to vector<12x64xf32>
    %30 = arith.addf %27, %29 : vector<12x64xf32>
    %cst_14 = arith.constant 5.000000e-01 : f32
    %31 = vector.broadcast %cst_14 : f32 to vector<12x64xf32>
    %32 = arith.mulf %31, %30 : vector<12x64xf32>
    %cst_15 = arith.constant 4.471500e-02 : f32
    %33 = vector.broadcast %cst_15 : f32 to vector<12x64xf32>
    %34 = arith.mulf %33, %30 : vector<12x64xf32>
    %35 = arith.mulf %34, %30 : vector<12x64xf32>
    %36 = arith.mulf %35, %30 : vector<12x64xf32>
    %37 = arith.addf %30, %36 : vector<12x64xf32>
    %cst_16 = arith.constant 0.797884583 : f32
    %38 = vector.broadcast %cst_16 : f32 to vector<12x64xf32>
    %39 = arith.mulf %38, %37 : vector<12x64xf32>
    %40 = math.tanh %39 : vector<12x64xf32>
    %cst_17 = arith.constant 1.000000e+00 : f32
    %41 = vector.broadcast %cst_17 : f32 to vector<12x64xf32>
    %42 = arith.addf %41, %40 : vector<12x64xf32>
    %43 = arith.mulf %32, %42 : vector<12x64xf32>
    %44 = arith.truncf %43 : vector<12x64xf32> to vector<12x64xbf16>
    %c0_18 = arith.constant 0 : index
    %c0_19 = arith.constant 0 : index
    %45 = vector.load %arg6[%c0_18, %c0_19] : memref<64x32xbf16, #tpu.memory_space<vmem>>, vector<64x32xbf16>
    %cst_20 = arith.constant dense<0.000000e+00> : vector<12x32xf32>
    %46 = tpu.matmul %44, %45, %cst_20 {dimension_numbers = #tpu.dot_dimension_numbers<[1], [0], [0], [1], [0, 0, 1, 1], [], []>} : vector<12x64xbf16>, vector<64x32xbf16>, vector<12x32xf32> -> vector<12x32xf32>
    %c0_21 = arith.constant 0 : index
    %c0_22 = arith.constant 0 : index
    %47 = vector.load %arg7[%c0_21, %c0_22] : memref<1x32xf32, #tpu.memory_space<vmem>>, vector<1x32xf32>
    %48 = vector.broadcast %47 : vector<1x32xf32> to vector<12x32xf32>
    %49 = arith.addf %46, %48 : vector<12x32xf32>
    %50 = arith.addf %49, %0 : vector<12x32xf32>
    %c0_23 = arith.constant 0 : index
    %c0_24 = arith.constant 0 : index
    %51 = vector.load %arg8[%c0_23, %c0_24] : memref<1x32xf32, #tpu.memory_space<vmem>>, vector<1x32xf32>
    %c0_25 = arith.constant 0 : index
    %c0_26 = arith.constant 0 : index
    %52 = vector.load %arg9[%c0_25, %c0_26] : memref<1x32xf32, #tpu.memory_space<vmem>>, vector<1x32xf32>
    %cst_27 = arith.constant dense<0.000000e+00> : vector<12xf32>
    %53 = vector.multi_reduction <add>, %50, %cst_27 [1] : vector<12x32xf32> to vector<12xf32>
    %54 = vector.shape_cast %53 : vector<12xf32> to vector<12x1xf32>
    %cst_28 = arith.constant 3.200000e+01 : f32
    %55 = vector.broadcast %cst_28 : f32 to vector<12x1xf32>
    %56 = arith.divf %54, %55 : vector<12x1xf32>
    %57 = vector.broadcast %56 : vector<12x1xf32> to vector<12x32xf32>
    %58 = arith.subf %50, %57 : vector<12x32xf32>
    %59 = arith.mulf %58, %58 : vector<12x32xf32>
    %cst_29 = arith.constant dense<0.000000e+00> : vector<12xf32>
    %60 = vector.multi_reduction <add>, %59, %cst_29 [1] : vector<12x32xf32> to vector<12xf32>
    %61 = vector.shape_cast %60 : vector<12xf32> to vector<12x1xf32>
    %cst_30 = arith.constant 3.200000e+01 : f32
    %62 = vector.broadcast %cst_30 : f32 to vector<12x1xf32>
    %63 = arith.divf %61, %62 : vector<12x1xf32>
    %64 = vector.broadcast %56 : vector<12x1xf32> to vector<12x32xf32>
    %65 = arith.subf %50, %64 : vector<12x32xf32>
    %cst_31 = arith.constant 9.99999974E-6 : f32
    %66 = vector.broadcast %cst_31 : f32 to vector<12x1xf32>
    %67 = arith.addf %63, %66 : vector<12x1xf32>
    %68 = math.rsqrt %67 : vector<12x1xf32>
    %69 = vector.broadcast %68 : vector<12x1xf32> to vector<12x32xf32>
    %70 = arith.mulf %65, %69 : vector<12x32xf32>
    %71 = vector.broadcast %51 : vector<1x32xf32> to vector<12x32xf32>
    %72 = arith.mulf %70, %71 : vector<12x32xf32>
    %73 = vector.broadcast %52 : vector<1x32xf32> to vector<12x32xf32>
    %74 = arith.addf %72, %73 : vector<12x32xf32>
    %c0_32 = arith.constant 0 : index
    %c0_33 = arith.constant 0 : index
    %75 = vector.load %arg10[%c0_32, %c0_33] : memref<12x32xf32, #tpu.memory_space<vmem>>, vector<12x32xf32>
    tpu.vector_store %arg10[%c0_32, %c0_33], %74 {strides = array<i32>} : memref<12x32xf32, #tpu.memory_space<vmem>>, vector<12x32xf32>,
    return
  }
  func.func @transform_0(%arg0: i32) -> (i32, i32) {
    %c0_i32 = arith.constant 0 : i32
    %c0_i32_0 = arith.constant 0 : i32
    return %arg0, %c0_i32 : i32, i32
  }
  func.func @transform_1(%arg0: i32) -> (i32, i32) {
    %c0_i32 = arith.constant 0 : i32
    %c0_i32_0 = arith.constant 0 : i32
    %c0_i32_1 = arith.constant 0 : i32
    return %c0_i32, %c0_i32_0 : i32, i32
  }
  func.func @transform_2(%arg0: i32) -> (i32, i32) {
    %c0_i32 = arith.constant 0 : i32
    %c0_i32_0 = arith.constant 0 : i32
    %c0_i32_1 = arith.constant 0 : i32
    return %c0_i32, %c0_i32_0 : i32, i32
  }
  func.func @transform_3(%arg0: i32) -> (i32, i32) {
    %c0_i32 = arith.constant 0 : i32
    %c0_i32_0 = arith.constant 0 : i32
    %c0_i32_1 = arith.constant 0 : i32
    return %c0_i32, %c0_i32_0 : i32, i32
  }
  func.func @transform_4(%arg0: i32) -> (i32, i32) {
    %c0_i32 = arith.constant 0 : i32
    %c0_i32_0 = arith.constant 0 : i32
    %c0_i32_1 = arith.constant 0 : i32
    return %c0_i32, %c0_i32_0 : i32, i32
  }
  func.func @transform_5(%arg0: i32) -> (i32, i32) {
    %c0_i32 = arith.constant 0 : i32
    %c0_i32_0 = arith.constant 0 : i32
    %c0_i32_1 = arith.constant 0 : i32
    return %c0_i32, %c0_i32_0 : i32, i32
  }
  func.func @transform_6(%arg0: i32) -> (i32, i32) {
    %c0_i32 = arith.constant 0 : i32
    %c0_i32_0 = arith.constant 0 : i32
    %c0_i32_1 = arith.constant 0 : i32
    return %c0_i32, %c0_i32_0 : i32, i32
  }
  func.func @transform_7(%arg0: i32) -> (i32, i32) {
    %c0_i32 = arith.constant 0 : i32
    %c0_i32_0 = arith.constant 0 : i32
    %c0_i32_1 = arith.constant 0 : i32
    return %c0_i32, %c0_i32_0 : i32, i32
  }
  func.func @transform_8(%arg0: i32) -> (i32, i32) {
    %c0_i32 = arith.constant 0 : i32
    %c0_i32_0 = arith.constant 0 : i32
    %c0_i32_1 = arith.constant 0 : i32
    return %c0_i32, %c0_i32_0 : i32, i32
  }
  func.func @transform_9(%arg0: i32) -> (i32, i32) {
    %c0_i32 = arith.constant 0 : i32
    %c0_i32_0 = arith.constant 0 : i32
    return %arg0, %c0_i32 : i32, i32
  }
}

module attributes {stable_mosaic.version = 11 : i64} {
  func.func @_attn_block_kernel(%arg0: i32, %arg1: i32, %arg2: memref<1x8x32xf32, #tpu.memory_space<vmem>>, %arg3: memref<1x6x32xf32, #tpu.memory_space<vmem>>, %arg4: memref<1x32xf32, #tpu.memory_space<vmem>>, %arg5: memref<1x32xf32, #tpu.memory_space<vmem>>, %arg6: memref<1x32xf32, #tpu.memory_space<vmem>>, %arg7: memref<1x32xf32, #tpu.memory_space<vmem>>, %arg8: memref<32x32xbf16, #tpu.memory_space<vmem>>, %arg9: memref<1x32xf32, #tpu.memory_space<vmem>>, %arg10: memref<32x64xbf16, #tpu.memory_space<vmem>>, %arg11: memref<1x64xf32, #tpu.memory_space<vmem>>, %arg12: memref<32x32xbf16, #tpu.memory_space<vmem>>, %arg13: memref<1x32xf32, #tpu.memory_space<vmem>>, %arg14: memref<1x2x8x6xbf16, #tpu.memory_space<vmem>>, %arg15: memref<1x8x32xf32, #tpu.memory_space<vmem>>) attributes {dimension_semantics = [#tpu.dimension_semantics<parallel>, #tpu.dimension_semantics<parallel>], iteration_bounds = array<i64: 2, 1>, scalar_prefetch = 0 : i64, scratch_operands = 0 : i64, tpu.core_type = #tpu.core_type<tc>, window_params = [{transform_indices = @transform_0, window_bounds = array<i64: 1, 8, 32>}, {transform_indices = @transform_1, window_bounds = array<i64: 1, 6, 32>}, {pipeline_mode = #tpu.pipeline_mode<synchronous>, transform_indices = @transform_2, window_bounds = array<i64: 1, 32>}, {pipeline_mode = #tpu.pipeline_mode<synchronous>, transform_indices = @transform_3, window_bounds = array<i64: 1, 32>}, {pipeline_mode = #tpu.pipeline_mode<synchronous>, transform_indices = @transform_4, window_bounds = array<i64: 1, 32>}, {pipeline_mode = #tpu.pipeline_mode<synchronous>, transform_indices = @transform_5, window_bounds = array<i64: 1, 32>}, {pipeline_mode = #tpu.pipeline_mode<synchronous>, transform_indices = @transform_6, window_bounds = array<i64: 32, 32>}, {pipeline_mode = #tpu.pipeline_mode<synchronous>, transform_indices = @transform_7, window_bounds = array<i64: 1, 32>}, {pipeline_mode = #tpu.pipeline_mode<synchronous>, transform_indices = @transform_8, window_bounds = array<i64: 32, 64>}, {pipeline_mode = #tpu.pipeline_mode<synchronous>, transform_indices = @transform_9, window_bounds = array<i64: 1, 64>}, {pipeline_mode = #tpu.pipeline_mode<synchronous>, transform_indices = @transform_10, window_bounds = array<i64: 32, 32>}, {pipeline_mode = #tpu.pipeline_mode<synchronous>, transform_indices = @transform_11, window_bounds = array<i64: 1, 32>}, {transform_indices = @transform_12, window_bounds = array<i64: 1, 2, 8, 6>}, {transform_indices = @transform_13, window_bounds = array<i64: 1, 8, 32>}]} {
    %c0 = arith.constant 0 : index
    %c0_0 = arith.constant 0 : index
    %c0_1 = arith.constant 0 : index
    %0 = vector.load %arg2[%c0, %c0_0, %c0_1] : memref<1x8x32xf32, #tpu.memory_space<vmem>>, vector<1x8x32xf32>
    %1 = vector.shape_cast %0 : vector<1x8x32xf32> to vector<8x32xf32>
    %c0_2 = arith.constant 0 : index
    %c0_3 = arith.constant 0 : index
    %c0_4 = arith.constant 0 : index
    %2 = vector.load %arg3[%c0_2, %c0_3, %c0_4] : memref<1x6x32xf32, #tpu.memory_space<vmem>>, vector<1x6x32xf32>
    %3 = vector.shape_cast %2 : vector<1x6x32xf32> to vector<6x32xf32>
    %c0_5 = arith.constant 0 : index
    %c0_6 = arith.constant 0 : index
    %4 = vector.load %arg4[%c0_5, %c0_6] : memref<1x32xf32, #tpu.memory_space<vmem>>, vector<1x32xf32>
    %c0_7 = arith.constant 0 : index
    %c0_8 = arith.constant 0 : index
    %5 = vector.load %arg5[%c0_7, %c0_8] : memref<1x32xf32, #tpu.memory_space<vmem>>, vector<1x32xf32>
    %cst = arith.constant dense<0.000000e+00> : vector<8xf32>
    %6 = vector.multi_reduction <add>, %1, %cst [1] : vector<8x32xf32> to vector<8xf32>
    %7 = vector.shape_cast %6 : vector<8xf32> to vector<8x1xf32>
    %cst_9 = arith.constant 3.200000e+01 : f32
    %8 = vector.broadcast %cst_9 : f32 to vector<8x1xf32>
    %9 = arith.divf %7, %8 : vector<8x1xf32>
    %10 = vector.broadcast %9 : vector<8x1xf32> to vector<8x32xf32>
    %11 = arith.subf %1, %10 : vector<8x32xf32>
    %12 = arith.mulf %11, %11 : vector<8x32xf32>
    %cst_10 = arith.constant dense<0.000000e+00> : vector<8xf32>
    %13 = vector.multi_reduction <add>, %12, %cst_10 [1] : vector<8x32xf32> to vector<8xf32>
    %14 = vector.shape_cast %13 : vector<8xf32> to vector<8x1xf32>
    %cst_11 = arith.constant 3.200000e+01 : f32
    %15 = vector.broadcast %cst_11 : f32 to vector<8x1xf32>
    %16 = arith.divf %14, %15 : vector<8x1xf32>
    %17 = vector.broadcast %9 : vector<8x1xf32> to vector<8x32xf32>
    %18 = arith.subf %1, %17 : vector<8x32xf32>
    %cst_12 = arith.constant 9.99999974E-6 : f32
    %19 = vector.broadcast %cst_12 : f32 to vector<8x1xf32>
    %20 = arith.addf %16, %19 : vector<8x1xf32>
    %21 = math.rsqrt %20 : vector<8x1xf32>
    %22 = vector.broadcast %21 : vector<8x1xf32> to vector<8x32xf32>
    %23 = arith.mulf %18, %22 : vector<8x32xf32>
    %24 = vector.broadcast %4 : vector<1x32xf32> to vector<8x32xf32>
    %25 = arith.mulf %23, %24 : vector<8x32xf32>
    %26 = vector.broadcast %5 : vector<1x32xf32> to vector<8x32xf32>
    %27 = arith.addf %25, %26 : vector<8x32xf32>
    %c0_13 = arith.constant 0 : index
    %c0_14 = arith.constant 0 : index
    %28 = vector.load %arg6[%c0_13, %c0_14] : memref<1x32xf32, #tpu.memory_space<vmem>>, vector<1x32xf32>
    %c0_15 = arith.constant 0 : index
    %c0_16 = arith.constant 0 : index
    %29 = vector.load %arg7[%c0_15, %c0_16] : memref<1x32xf32, #tpu.memory_space<vmem>>, vector<1x32xf32>
    %cst_17 = arith.constant dense<0.000000e+00> : vector<6xf32>
    %30 = vector.multi_reduction <add>, %3, %cst_17 [1] : vector<6x32xf32> to vector<6xf32>
    %31 = vector.shape_cast %30 : vector<6xf32> to vector<6x1xf32>
    %cst_18 = arith.constant 3.200000e+01 : f32
    %32 = vector.broadcast %cst_18 : f32 to vector<6x1xf32>
    %33 = arith.divf %31, %32 : vector<6x1xf32>
    %34 = vector.broadcast %33 : vector<6x1xf32> to vector<6x32xf32>
    %35 = arith.subf %3, %34 : vector<6x32xf32>
    %36 = arith.mulf %35, %35 : vector<6x32xf32>
    %cst_19 = arith.constant dense<0.000000e+00> : vector<6xf32>
    %37 = vector.multi_reduction <add>, %36, %cst_19 [1] : vector<6x32xf32> to vector<6xf32>
    %38 = vector.shape_cast %37 : vector<6xf32> to vector<6x1xf32>
    %cst_20 = arith.constant 3.200000e+01 : f32
    %39 = vector.broadcast %cst_20 : f32 to vector<6x1xf32>
    %40 = arith.divf %38, %39 : vector<6x1xf32>
    %41 = vector.broadcast %33 : vector<6x1xf32> to vector<6x32xf32>
    %42 = arith.subf %3, %41 : vector<6x32xf32>
    %cst_21 = arith.constant 9.99999974E-6 : f32
    %43 = vector.broadcast %cst_21 : f32 to vector<6x1xf32>
    %44 = arith.addf %40, %43 : vector<6x1xf32>
    %45 = math.rsqrt %44 : vector<6x1xf32>
    %46 = vector.broadcast %45 : vector<6x1xf32> to vector<6x32xf32>
    %47 = arith.mulf %42, %46 : vector<6x32xf32>
    %48 = vector.broadcast %28 : vector<1x32xf32> to vector<6x32xf32>
    %49 = arith.mulf %47, %48 : vector<6x32xf32>
    %50 = vector.broadcast %29 : vector<1x32xf32> to vector<6x32xf32>
    %51 = arith.addf %49, %50 : vector<6x32xf32>
    %52 = arith.truncf %27 : vector<8x32xf32> to vector<8x32xbf16>
    %c0_22 = arith.constant 0 : index
    %c0_23 = arith.constant 0 : index
    %53 = vector.load %arg8[%c0_22, %c0_23] : memref<32x32xbf16, #tpu.memory_space<vmem>>, vector<32x32xbf16>
    %cst_24 = arith.constant dense<0.000000e+00> : vector<8x32xf32>
    %54 = tpu.matmul %52, %53, %cst_24 {dimension_numbers = #tpu.dot_dimension_numbers<[1], [0], [0], [1], [0, 0, 1, 1], [], []>} : vector<8x32xbf16>, vector<32x32xbf16>, vector<8x32xf32> -> vector<8x32xf32>
    %c0_25 = arith.constant 0 : index
    %c0_26 = arith.constant 0 : index
    %55 = vector.load %arg9[%c0_25, %c0_26] : memref<1x32xf32, #tpu.memory_space<vmem>>, vector<1x32xf32>
    %56 = vector.broadcast %55 : vector<1x32xf32> to vector<8x32xf32>
    %57 = arith.addf %54, %56 : vector<8x32xf32>
    %58 = arith.truncf %51 : vector<6x32xf32> to vector<6x32xbf16>
    %c0_27 = arith.constant 0 : index
    %c0_28 = arith.constant 0 : index
    %59 = vector.load %arg10[%c0_27, %c0_28] : memref<32x64xbf16, #tpu.memory_space<vmem>>, vector<32x64xbf16>
    %cst_29 = arith.constant dense<0.000000e+00> : vector<6x64xf32>
    %60 = tpu.matmul %58, %59, %cst_29 {dimension_numbers = #tpu.dot_dimension_numbers<[1], [0], [0], [1], [0, 0, 1, 1], [], []>} : vector<6x32xbf16>, vector<32x64xbf16>, vector<6x64xf32> -> vector<6x64xf32>
    %c0_30 = arith.constant 0 : index
    %c0_31 = arith.constant 0 : index
    %61 = vector.load %arg11[%c0_30, %c0_31] : memref<1x64xf32, #tpu.memory_space<vmem>>, vector<1x64xf32>
    %62 = vector.broadcast %61 : vector<1x64xf32> to vector<6x64xf32>
    %63 = arith.addf %60, %62 : vector<6x64xf32>
    %64 = vector.extract_strided_slice %63 {offsets = [0, 0], sizes = [6, 32], strides = [1, 1]} : vector<6x64xf32> to vector<6x32xf32>
    %65 = vector.extract_strided_slice %63 {offsets = [0, 32], sizes = [6, 32], strides = [1, 1]} : vector<6x64xf32> to vector<6x32xf32>
    %66 = vector.extract_strided_slice %57 {offsets = [0, 0], sizes = [8, 16], strides = [1, 1]} : vector<8x32xf32> to vector<8x16xf32>
    %67 = arith.truncf %66 : vector<8x16xf32> to vector<8x16xbf16>
    %68 = vector.extract_strided_slice %64 {offsets = [0, 0], sizes = [6, 16], strides = [1, 1]} : vector<6x32xf32> to vector<6x16xf32>
    %69 = arith.truncf %68 : vector<6x16xf32> to vector<6x16xbf16>
    %70 = vector.extract_strided_slice %65 {offsets = [0, 0], sizes = [6, 16], strides = [1, 1]} : vector<6x32xf32> to vector<6x16xf32>
    %71 = arith.truncf %70 : vector<6x16xf32> to vector<6x16xbf16>
    %cst_32 = arith.constant dense<0.000000e+00> : vector<8x6xf32>
    %72 = tpu.matmul %67, %69, %cst_32 {dimension_numbers = #tpu.dot_dimension_numbers<[1], [1], [0], [0], [0, 0, 1, 0], [], []>} : vector<8x16xbf16>, vector<6x16xbf16>, vector<8x6xf32> -> vector<8x6xf32>
    %c0_33 = arith.constant 0 : index
    %c0_34 = arith.constant 0 : index
    %c0_35 = arith.constant 0 : index
    %c0_36 = arith.constant 0 : index
    %73 = vector.load %arg14[%c0_33, %c0_34, %c0_35, %c0_36] : memref<1x2x8x6xbf16, #tpu.memory_space<vmem>>, vector<1x1x8x6xbf16>
    %74 = vector.shape_cast %73 : vector<1x1x8x6xbf16> to vector<8x6xbf16>
    %75 = arith.extf %74 : vector<8x6xbf16> to vector<8x6xf32>
    %76 = arith.addf %72, %75 : vector<8x6xf32>
    %cst_37 = arith.constant dense<0xFF800000> : vector<8xf32>
    %77 = vector.multi_reduction <maximumf>, %76, %cst_37 [1] : vector<8x6xf32> to vector<8xf32>
    %78 = vector.shape_cast %77 : vector<8xf32> to vector<8x1xf32>
    %79 = vector.broadcast %78 : vector<8x1xf32> to vector<8x6xf32>
    %80 = arith.subf %76, %79 : vector<8x6xf32>
    %81 = math.exp %80 : vector<8x6xf32>
    %cst_38 = arith.constant dense<0.000000e+00> : vector<8xf32>
    %82 = vector.multi_reduction <add>, %81, %cst_38 [1] : vector<8x6xf32> to vector<8xf32>
    %83 = vector.shape_cast %82 : vector<8xf32> to vector<8x1xf32>
    %84 = tpu.reciprocal %83 {approx = true} : vector<8x1xf32> -> vector<8x1xf32>
    %85 = vector.broadcast %84 : vector<8x1xf32> to vector<8x6xf32>
    %86 = arith.mulf %81, %85 : vector<8x6xf32>
    %87 = arith.truncf %86 : vector<8x6xf32> to vector<8x6xbf16>
    %cst_39 = arith.constant dense<0.000000e+00> : vector<8x16xf32>
    %88 = tpu.matmul %87, %71, %cst_39 {dimension_numbers = #tpu.dot_dimension_numbers<[1], [0], [0], [1], [0, 0, 1, 1], [], []>} : vector<8x6xbf16>, vector<6x16xbf16>, vector<8x16xf32> -> vector<8x16xf32>
    %89 = vector.extract_strided_slice %57 {offsets = [0, 16], sizes = [8, 16], strides = [1, 1]} : vector<8x32xf32> to vector<8x16xf32>
    %90 = arith.truncf %89 : vector<8x16xf32> to vector<8x16xbf16>
    %91 = vector.extract_strided_slice %64 {offsets = [0, 16], sizes = [6, 16], strides = [1, 1]} : vector<6x32xf32> to vector<6x16xf32>
    %92 = arith.truncf %91 : vector<6x16xf32> to vector<6x16xbf16>
    %93 = vector.extract_strided_slice %65 {offsets = [0, 16], sizes = [6, 16], strides = [1, 1]} : vector<6x32xf32> to vector<6x16xf32>
    %94 = arith.truncf %93 : vector<6x16xf32> to vector<6x16xbf16>
    %cst_40 = arith.constant dense<0.000000e+00> : vector<8x6xf32>
    %95 = tpu.matmul %90, %92, %cst_40 {dimension_numbers = #tpu.dot_dimension_numbers<[1], [1], [0], [0], [0, 0, 1, 0], [], []>} : vector<8x16xbf16>, vector<6x16xbf16>, vector<8x6xf32> -> vector<8x6xf32>
    %c0_41 = arith.constant 0 : index
    %c1 = arith.constant 1 : index
    %c0_42 = arith.constant 0 : index
    %c0_43 = arith.constant 0 : index
    %96 = vector.load %arg14[%c0_41, %c1, %c0_42, %c0_43] : memref<1x2x8x6xbf16, #tpu.memory_space<vmem>>, vector<1x1x8x6xbf16>
    %97 = vector.shape_cast %96 : vector<1x1x8x6xbf16> to vector<8x6xbf16>
    %98 = arith.extf %97 : vector<8x6xbf16> to vector<8x6xf32>
    %99 = arith.addf %95, %98 : vector<8x6xf32>
    %cst_44 = arith.constant dense<0xFF800000> : vector<8xf32>
    %100 = vector.multi_reduction <maximumf>, %99, %cst_44 [1] : vector<8x6xf32> to vector<8xf32>
    %101 = vector.shape_cast %100 : vector<8xf32> to vector<8x1xf32>
    %102 = vector.broadcast %101 : vector<8x1xf32> to vector<8x6xf32>
    %103 = arith.subf %99, %102 : vector<8x6xf32>
    %104 = math.exp %103 : vector<8x6xf32>
    %cst_45 = arith.constant dense<0.000000e+00> : vector<8xf32>
    %105 = vector.multi_reduction <add>, %104, %cst_45 [1] : vector<8x6xf32> to vector<8xf32>
    %106 = vector.shape_cast %105 : vector<8xf32> to vector<8x1xf32>
    %107 = tpu.reciprocal %106 {approx = true} : vector<8x1xf32> -> vector<8x1xf32>
    %108 = vector.broadcast %107 : vector<8x1xf32> to vector<8x6xf32>
    %109 = arith.mulf %104, %108 : vector<8x6xf32>
    %110 = arith.truncf %109 : vector<8x6xf32> to vector<8x6xbf16>
    %cst_46 = arith.constant dense<0.000000e+00> : vector<8x16xf32>
    %111 = tpu.matmul %110, %94, %cst_46 {dimension_numbers = #tpu.dot_dimension_numbers<[1], [0], [0], [1], [0, 0, 1, 1], [], []>} : vector<8x6xbf16>, vector<6x16xbf16>, vector<8x16xf32> -> vector<8x16xf32>
    %112 = tpu.concatenate %88, %111 in 1 : vector<8x16xf32>, vector<8x16xf32> -> vector<8x32xf32>
    %113 = arith.truncf %112 : vector<8x32xf32> to vector<8x32xbf16>
    %c0_47 = arith.constant 0 : index
    %c0_48 = arith.constant 0 : index
    %114 = vector.load %arg12[%c0_47, %c0_48] : memref<32x32xbf16, #tpu.memory_space<vmem>>, vector<32x32xbf16>
    %cst_49 = arith.constant dense<0.000000e+00> : vector<8x32xf32>
    %115 = tpu.matmul %113, %114, %cst_49 {dimension_numbers = #tpu.dot_dimension_numbers<[1], [0], [0], [1], [0, 0, 1, 1], [], []>} : vector<8x32xbf16>, vector<32x32xbf16>, vector<8x32xf32> -> vector<8x32xf32>
    %c0_50 = arith.constant 0 : index
    %c0_51 = arith.constant 0 : index
    %116 = vector.load %arg13[%c0_50, %c0_51] : memref<1x32xf32, #tpu.memory_space<vmem>>, vector<1x32xf32>
    %117 = vector.broadcast %116 : vector<1x32xf32> to vector<8x32xf32>
    %118 = arith.addf %115, %117 : vector<8x32xf32>
    %119 = arith.addf %118, %1 : vector<8x32xf32>
    %c0_52 = arith.constant 0 : index
    %c0_53 = arith.constant 0 : index
    %c0_54 = arith.constant 0 : index
    %120 = vector.load %arg15[%c0_52, %c0_53, %c0_54] : memref<1x8x32xf32, #tpu.memory_space<vmem>>, vector<1x8x32xf32>
    %121 = vector.shape_cast %120 : vector<1x8x32xf32> to vector<8x32xf32>
    %122 = vector.shape_cast %119 : vector<8x32xf32> to vector<1x8x32xf32>
    tpu.vector_store %arg15[%c0_52, %c0_53, %c0_54], %122 {strides = array<i32>} : memref<1x8x32xf32, #tpu.memory_space<vmem>>, vector<1x8x32xf32>,
    return
  }
  func.func @transform_0(%arg0: i32, %arg1: i32) -> (i32, i32, i32) {
    %c0_i32 = arith.constant 0 : i32
    %c0_i32_0 = arith.constant 0 : i32
    return %arg0, %arg1, %c0_i32 : i32, i32, i32
  }
  func.func @transform_1(%arg0: i32, %arg1: i32) -> (i32, i32, i32) {
    %c0_i32 = arith.constant 0 : i32
    %c0_i32_0 = arith.constant 0 : i32
    %c0_i32_1 = arith.constant 0 : i32
    return %arg0, %c0_i32, %c0_i32_0 : i32, i32, i32
  }
  func.func @transform_2(%arg0: i32, %arg1: i32) -> (i32, i32) {
    %c0_i32 = arith.constant 0 : i32
    %c0_i32_0 = arith.constant 0 : i32
    %c0_i32_1 = arith.constant 0 : i32
    return %c0_i32, %c0_i32_0 : i32, i32
  }
  func.func @transform_3(%arg0: i32, %arg1: i32) -> (i32, i32) {
    %c0_i32 = arith.constant 0 : i32
    %c0_i32_0 = arith.constant 0 : i32
    %c0_i32_1 = arith.constant 0 : i32
    return %c0_i32, %c0_i32_0 : i32, i32
  }
  func.func @transform_4(%arg0: i32, %arg1: i32) -> (i32, i32) {
    %c0_i32 = arith.constant 0 : i32
    %c0_i32_0 = arith.constant 0 : i32
    %c0_i32_1 = arith.constant 0 : i32
    return %c0_i32, %c0_i32_0 : i32, i32
  }
  func.func @transform_5(%arg0: i32, %arg1: i32) -> (i32, i32) {
    %c0_i32 = arith.constant 0 : i32
    %c0_i32_0 = arith.constant 0 : i32
    %c0_i32_1 = arith.constant 0 : i32
    return %c0_i32, %c0_i32_0 : i32, i32
  }
  func.func @transform_6(%arg0: i32, %arg1: i32) -> (i32, i32) {
    %c0_i32 = arith.constant 0 : i32
    %c0_i32_0 = arith.constant 0 : i32
    %c0_i32_1 = arith.constant 0 : i32
    return %c0_i32, %c0_i32_0 : i32, i32
  }
  func.func @transform_7(%arg0: i32, %arg1: i32) -> (i32, i32) {
    %c0_i32 = arith.constant 0 : i32
    %c0_i32_0 = arith.constant 0 : i32
    %c0_i32_1 = arith.constant 0 : i32
    return %c0_i32, %c0_i32_0 : i32, i32
  }
  func.func @transform_8(%arg0: i32, %arg1: i32) -> (i32, i32) {
    %c0_i32 = arith.constant 0 : i32
    %c0_i32_0 = arith.constant 0 : i32
    %c0_i32_1 = arith.constant 0 : i32
    return %c0_i32, %c0_i32_0 : i32, i32
  }
  func.func @transform_9(%arg0: i32, %arg1: i32) -> (i32, i32) {
    %c0_i32 = arith.constant 0 : i32
    %c0_i32_0 = arith.constant 0 : i32
    %c0_i32_1 = arith.constant 0 : i32
    return %c0_i32, %c0_i32_0 : i32, i32
  }
  func.func @transform_10(%arg0: i32, %arg1: i32) -> (i32, i32) {
    %c0_i32 = arith.constant 0 : i32
    %c0_i32_0 = arith.constant 0 : i32
    %c0_i32_1 = arith.constant 0 : i32
    return %c0_i32, %c0_i32_0 : i32, i32
  }
  func.func @transform_11(%arg0: i32, %arg1: i32) -> (i32, i32) {
    %c0_i32 = arith.constant 0 : i32
    %c0_i32_0 = arith.constant 0 : i32
    %c0_i32_1 = arith.constant 0 : i32
    return %c0_i32, %c0_i32_0 : i32, i32
  }
  func.func @transform_12(%arg0: i32, %arg1: i32) -> (i32, i32, i32, i32) {
    %c0_i32 = arith.constant 0 : i32
    %c0_i32_0 = arith.constant 0 : i32
    %c0_i32_1 = arith.constant 0 : i32
    return %arg0, %c0_i32, %arg1, %c0_i32_0 : i32, i32, i32, i32
  }
  func.func @transform_13(%arg0: i32, %arg1: i32) -> (i32, i32, i32) {
    %c0_i32 = arith.constant 0 : i32
    %c0_i32_0 = arith.constant 0 : i32
    return %arg0, %arg1, %c0_i32 : i32, i32, i32
  }
}

module attributes {stable_mosaic.version = 11 : i64} {
  func.func @_ffn_post_ln_block_kernel(%arg0: i32, %arg1: memref<16x32xf32, #tpu.memory_space<vmem>>, %arg2: memref<1x32xf32, #tpu.memory_space<vmem>>, %arg3: memref<1x32xf32, #tpu.memory_space<vmem>>, %arg4: memref<32x64xbf16, #tpu.memory_space<vmem>>, %arg5: memref<1x64xf32, #tpu.memory_space<vmem>>, %arg6: memref<64x32xbf16, #tpu.memory_space<vmem>>, %arg7: memref<1x32xf32, #tpu.memory_space<vmem>>, %arg8: memref<1x32xf32, #tpu.memory_space<vmem>>, %arg9: memref<1x32xf32, #tpu.memory_space<vmem>>, %arg10: memref<16x32xf32, #tpu.memory_space<vmem>>) attributes {dimension_semantics = [#tpu.dimension_semantics<parallel>], iteration_bounds = array<i64: 1>, scalar_prefetch = 0 : i64, scratch_operands = 0 : i64, tpu.core_type = #tpu.core_type<tc>, window_params = [{transform_indices = @transform_0, window_bounds = array<i64: 16, 32>}, {pipeline_mode = #tpu.pipeline_mode<synchronous>, transform_indices = @transform_1, window_bounds = array<i64: 1, 32>}, {pipeline_mode = #tpu.pipeline_mode<synchronous>, transform_indices = @transform_2, window_bounds = array<i64: 1, 32>}, {pipeline_mode = #tpu.pipeline_mode<synchronous>, transform_indices = @transform_3, window_bounds = array<i64: 32, 64>}, {pipeline_mode = #tpu.pipeline_mode<synchronous>, transform_indices = @transform_4, window_bounds = array<i64: 1, 64>}, {pipeline_mode = #tpu.pipeline_mode<synchronous>, transform_indices = @transform_5, window_bounds = array<i64: 64, 32>}, {pipeline_mode = #tpu.pipeline_mode<synchronous>, transform_indices = @transform_6, window_bounds = array<i64: 1, 32>}, {pipeline_mode = #tpu.pipeline_mode<synchronous>, transform_indices = @transform_7, window_bounds = array<i64: 1, 32>}, {pipeline_mode = #tpu.pipeline_mode<synchronous>, transform_indices = @transform_8, window_bounds = array<i64: 1, 32>}, {transform_indices = @transform_9, window_bounds = array<i64: 16, 32>}]} {
    %c0 = arith.constant 0 : index
    %c0_0 = arith.constant 0 : index
    %0 = vector.load %arg1[%c0, %c0_0] : memref<16x32xf32, #tpu.memory_space<vmem>>, vector<16x32xf32>
    %c0_1 = arith.constant 0 : index
    %c0_2 = arith.constant 0 : index
    %1 = vector.load %arg2[%c0_1, %c0_2] : memref<1x32xf32, #tpu.memory_space<vmem>>, vector<1x32xf32>
    %c0_3 = arith.constant 0 : index
    %c0_4 = arith.constant 0 : index
    %2 = vector.load %arg3[%c0_3, %c0_4] : memref<1x32xf32, #tpu.memory_space<vmem>>, vector<1x32xf32>
    %cst = arith.constant dense<0.000000e+00> : vector<16xf32>
    %3 = vector.multi_reduction <add>, %0, %cst [1] : vector<16x32xf32> to vector<16xf32>
    %4 = vector.shape_cast %3 : vector<16xf32> to vector<16x1xf32>
    %cst_5 = arith.constant 3.200000e+01 : f32
    %5 = vector.broadcast %cst_5 : f32 to vector<16x1xf32>
    %6 = arith.divf %4, %5 : vector<16x1xf32>
    %7 = vector.broadcast %6 : vector<16x1xf32> to vector<16x32xf32>
    %8 = arith.subf %0, %7 : vector<16x32xf32>
    %9 = arith.mulf %8, %8 : vector<16x32xf32>
    %cst_6 = arith.constant dense<0.000000e+00> : vector<16xf32>
    %10 = vector.multi_reduction <add>, %9, %cst_6 [1] : vector<16x32xf32> to vector<16xf32>
    %11 = vector.shape_cast %10 : vector<16xf32> to vector<16x1xf32>
    %cst_7 = arith.constant 3.200000e+01 : f32
    %12 = vector.broadcast %cst_7 : f32 to vector<16x1xf32>
    %13 = arith.divf %11, %12 : vector<16x1xf32>
    %14 = vector.broadcast %6 : vector<16x1xf32> to vector<16x32xf32>
    %15 = arith.subf %0, %14 : vector<16x32xf32>
    %cst_8 = arith.constant 9.99999974E-6 : f32
    %16 = vector.broadcast %cst_8 : f32 to vector<16x1xf32>
    %17 = arith.addf %13, %16 : vector<16x1xf32>
    %18 = math.rsqrt %17 : vector<16x1xf32>
    %19 = vector.broadcast %18 : vector<16x1xf32> to vector<16x32xf32>
    %20 = arith.mulf %15, %19 : vector<16x32xf32>
    %21 = vector.broadcast %1 : vector<1x32xf32> to vector<16x32xf32>
    %22 = arith.mulf %20, %21 : vector<16x32xf32>
    %23 = vector.broadcast %2 : vector<1x32xf32> to vector<16x32xf32>
    %24 = arith.addf %22, %23 : vector<16x32xf32>
    %25 = arith.truncf %24 : vector<16x32xf32> to vector<16x32xbf16>
    %c0_9 = arith.constant 0 : index
    %c0_10 = arith.constant 0 : index
    %26 = vector.load %arg4[%c0_9, %c0_10] : memref<32x64xbf16, #tpu.memory_space<vmem>>, vector<32x64xbf16>
    %cst_11 = arith.constant dense<0.000000e+00> : vector<16x64xf32>
    %27 = tpu.matmul %25, %26, %cst_11 {dimension_numbers = #tpu.dot_dimension_numbers<[1], [0], [0], [1], [0, 0, 1, 1], [], []>} : vector<16x32xbf16>, vector<32x64xbf16>, vector<16x64xf32> -> vector<16x64xf32>
    %c0_12 = arith.constant 0 : index
    %c0_13 = arith.constant 0 : index
    %28 = vector.load %arg5[%c0_12, %c0_13] : memref<1x64xf32, #tpu.memory_space<vmem>>, vector<1x64xf32>
    %29 = vector.broadcast %28 : vector<1x64xf32> to vector<16x64xf32>
    %30 = arith.addf %27, %29 : vector<16x64xf32>
    %cst_14 = arith.constant 5.000000e-01 : f32
    %31 = vector.broadcast %cst_14 : f32 to vector<16x64xf32>
    %32 = arith.mulf %31, %30 : vector<16x64xf32>
    %cst_15 = arith.constant 4.471500e-02 : f32
    %33 = vector.broadcast %cst_15 : f32 to vector<16x64xf32>
    %34 = arith.mulf %33, %30 : vector<16x64xf32>
    %35 = arith.mulf %34, %30 : vector<16x64xf32>
    %36 = arith.mulf %35, %30 : vector<16x64xf32>
    %37 = arith.addf %30, %36 : vector<16x64xf32>
    %cst_16 = arith.constant 0.797884583 : f32
    %38 = vector.broadcast %cst_16 : f32 to vector<16x64xf32>
    %39 = arith.mulf %38, %37 : vector<16x64xf32>
    %40 = math.tanh %39 : vector<16x64xf32>
    %cst_17 = arith.constant 1.000000e+00 : f32
    %41 = vector.broadcast %cst_17 : f32 to vector<16x64xf32>
    %42 = arith.addf %41, %40 : vector<16x64xf32>
    %43 = arith.mulf %32, %42 : vector<16x64xf32>
    %44 = arith.truncf %43 : vector<16x64xf32> to vector<16x64xbf16>
    %c0_18 = arith.constant 0 : index
    %c0_19 = arith.constant 0 : index
    %45 = vector.load %arg6[%c0_18, %c0_19] : memref<64x32xbf16, #tpu.memory_space<vmem>>, vector<64x32xbf16>
    %cst_20 = arith.constant dense<0.000000e+00> : vector<16x32xf32>
    %46 = tpu.matmul %44, %45, %cst_20 {dimension_numbers = #tpu.dot_dimension_numbers<[1], [0], [0], [1], [0, 0, 1, 1], [], []>} : vector<16x64xbf16>, vector<64x32xbf16>, vector<16x32xf32> -> vector<16x32xf32>
    %c0_21 = arith.constant 0 : index
    %c0_22 = arith.constant 0 : index
    %47 = vector.load %arg7[%c0_21, %c0_22] : memref<1x32xf32, #tpu.memory_space<vmem>>, vector<1x32xf32>
    %48 = vector.broadcast %47 : vector<1x32xf32> to vector<16x32xf32>
    %49 = arith.addf %46, %48 : vector<16x32xf32>
    %50 = arith.addf %49, %0 : vector<16x32xf32>
    %c0_23 = arith.constant 0 : index
    %c0_24 = arith.constant 0 : index
    %51 = vector.load %arg8[%c0_23, %c0_24] : memref<1x32xf32, #tpu.memory_space<vmem>>, vector<1x32xf32>
    %c0_25 = arith.constant 0 : index
    %c0_26 = arith.constant 0 : index
    %52 = vector.load %arg9[%c0_25, %c0_26] : memref<1x32xf32, #tpu.memory_space<vmem>>, vector<1x32xf32>
    %cst_27 = arith.constant dense<0.000000e+00> : vector<16xf32>
    %53 = vector.multi_reduction <add>, %50, %cst_27 [1] : vector<16x32xf32> to vector<16xf32>
    %54 = vector.shape_cast %53 : vector<16xf32> to vector<16x1xf32>
    %cst_28 = arith.constant 3.200000e+01 : f32
    %55 = vector.broadcast %cst_28 : f32 to vector<16x1xf32>
    %56 = arith.divf %54, %55 : vector<16x1xf32>
    %57 = vector.broadcast %56 : vector<16x1xf32> to vector<16x32xf32>
    %58 = arith.subf %50, %57 : vector<16x32xf32>
    %59 = arith.mulf %58, %58 : vector<16x32xf32>
    %cst_29 = arith.constant dense<0.000000e+00> : vector<16xf32>
    %60 = vector.multi_reduction <add>, %59, %cst_29 [1] : vector<16x32xf32> to vector<16xf32>
    %61 = vector.shape_cast %60 : vector<16xf32> to vector<16x1xf32>
    %cst_30 = arith.constant 3.200000e+01 : f32
    %62 = vector.broadcast %cst_30 : f32 to vector<16x1xf32>
    %63 = arith.divf %61, %62 : vector<16x1xf32>
    %64 = vector.broadcast %56 : vector<16x1xf32> to vector<16x32xf32>
    %65 = arith.subf %50, %64 : vector<16x32xf32>
    %cst_31 = arith.constant 9.99999974E-6 : f32
    %66 = vector.broadcast %cst_31 : f32 to vector<16x1xf32>
    %67 = arith.addf %63, %66 : vector<16x1xf32>
    %68 = math.rsqrt %67 : vector<16x1xf32>
    %69 = vector.broadcast %68 : vector<16x1xf32> to vector<16x32xf32>
    %70 = arith.mulf %65, %69 : vector<16x32xf32>
    %71 = vector.broadcast %51 : vector<1x32xf32> to vector<16x32xf32>
    %72 = arith.mulf %70, %71 : vector<16x32xf32>
    %73 = vector.broadcast %52 : vector<1x32xf32> to vector<16x32xf32>
    %74 = arith.addf %72, %73 : vector<16x32xf32>
    %c0_32 = arith.constant 0 : index
    %c0_33 = arith.constant 0 : index
    %75 = vector.load %arg10[%c0_32, %c0_33] : memref<16x32xf32, #tpu.memory_space<vmem>>, vector<16x32xf32>
    tpu.vector_store %arg10[%c0_32, %c0_33], %74 {strides = array<i32>} : memref<16x32xf32, #tpu.memory_space<vmem>>, vector<16x32xf32>,
    return
  }
  func.func @transform_0(%arg0: i32) -> (i32, i32) {
    %c0_i32 = arith.constant 0 : i32
    %c0_i32_0 = arith.constant 0 : i32
    return %arg0, %c0_i32 : i32, i32
  }
  func.func @transform_1(%arg0: i32) -> (i32, i32) {
    %c0_i32 = arith.constant 0 : i32
    %c0_i32_0 = arith.constant 0 : i32
    %c0_i32_1 = arith.constant 0 : i32
    return %c0_i32, %c0_i32_0 : i32, i32
  }
  func.func @transform_2(%arg0: i32) -> (i32, i32) {
    %c0_i32 = arith.constant 0 : i32
    %c0_i32_0 = arith.constant 0 : i32
    %c0_i32_1 = arith.constant 0 : i32
    return %c0_i32, %c0_i32_0 : i32, i32
  }
  func.func @transform_3(%arg0: i32) -> (i32, i32) {
    %c0_i32 = arith.constant 0 : i32
    %c0_i32_0 = arith.constant 0 : i32
    %c0_i32_1 = arith.constant 0 : i32
    return %c0_i32, %c0_i32_0 : i32, i32
  }
  func.func @transform_4(%arg0: i32) -> (i32, i32) {
    %c0_i32 = arith.constant 0 : i32
    %c0_i32_0 = arith.constant 0 : i32
    %c0_i32_1 = arith.constant 0 : i32
    return %c0_i32, %c0_i32_0 : i32, i32
  }
  func.func @transform_5(%arg0: i32) -> (i32, i32) {
    %c0_i32 = arith.constant 0 : i32
    %c0_i32_0 = arith.constant 0 : i32
    %c0_i32_1 = arith.constant 0 : i32
    return %c0_i32, %c0_i32_0 : i32, i32
  }
  func.func @transform_6(%arg0: i32) -> (i32, i32) {
    %c0_i32 = arith.constant 0 : i32
    %c0_i32_0 = arith.constant 0 : i32
    %c0_i32_1 = arith.constant 0 : i32
    return %c0_i32, %c0_i32_0 : i32, i32
  }
  func.func @transform_7(%arg0: i32) -> (i32, i32) {
    %c0_i32 = arith.constant 0 : i32
    %c0_i32_0 = arith.constant 0 : i32
    %c0_i32_1 = arith.constant 0 : i32
    return %c0_i32, %c0_i32_0 : i32, i32
  }
  func.func @transform_8(%arg0: i32) -> (i32, i32) {
    %c0_i32 = arith.constant 0 : i32
    %c0_i32_0 = arith.constant 0 : i32
    %c0_i32_1 = arith.constant 0 : i32
    return %c0_i32, %c0_i32_0 : i32, i32
  }
  func.func @transform_9(%arg0: i32) -> (i32, i32) {
    %c0_i32 = arith.constant 0 : i32
    %c0_i32_0 = arith.constant 0 : i32
    return %arg0, %c0_i32 : i32, i32
  }
}

</mosaic_0001>

<bundles_post_ra>
// kernel: encoder_forward.15
= control target key start
LH: loop header
LB: loop body
LE: loop exit
PB: predicated region body
PF: predicated region fallthrough
CT: control target
= control target key end

     0   :  { %vm31_vm0 = vcmask 261120   ;;  %vm35_vm1 = vcmask 257024   ;;  %v260_v4 = vmov 32.0   ;;  %vm187_vm9 = vcmask 523264   ;;  %s360_s0 = inlined_call_operand.vmem [shape: f32[12,32], index: 0, kind: input, shape index: {}]   ;;  %s361_s1 = inlined_call_operand.vmem [shape: f32[1,32], index: 1, kind: input, shape index: {}]   ;;  %s362_s2 = inlined_call_operand.vmem [shape: f32[1,32], index: 2, kind: input, shape index: {}]   ;;  %s363_s4 = inlined_call_operand.vmem [shape: f32[1,64], index: 4, kind: input, shape index: {}]   ;;  %s364_s3 = inlined_call_operand.vmem [shape: bf16[32,64], index: 3, kind: input, shape index: {}]   ;;  %s365_s6 = inlined_call_operand.vmem [shape: f32[1,32], index: 6, kind: input, shape index: {}]   ;;  %s366_s5 = inlined_call_operand.vmem [shape: bf16[64,32], index: 5, kind: input, shape index: {}]   ;;  %s367_s7 = inlined_call_operand.vmem [shape: f32[12,32], index: 7, kind: output, shape index: {}]  }
   0x1   :  { %v304_v0 = vld [vmem:[%s360_s0] sm:$0xff]  ;;  %v311_v2 = vld [vmem:[%s360_s0 + $0x8] sm:$0xf]  ;;  %250 = vrcp.f32 %v260_v4  ;;  %v244_v52 = vld [vmem:[%s366_s5 + $0x18] sm:$0xff] }
   0x2   :  { %v32_v1 = vsel %vm31_vm0, %v304_v0, 0.0  ;;  %v36_v3 = vsel %vm35_vm1, %v311_v2, 0.0  ;;  %v240_v21 = vld [vmem:[%s364_s3 + $0x8] sm:$0xff]  ;;  %v239_v23 = vld [vmem:[%s364_s3] sm:$0xff]  ;;  %195 = vmatpush.bf16.msra.mxu1 %v244_v52  ;;  %v243_v53 = vld [vmem:[%s366_s5 + $0x10] sm:$0xff] }
   0x3   :  { %33 = vadd.xlane.f32.xlu0 %v32_v1  ;;  %124 = vmatpush.bf16.msra.mxu0 %v240_v21  ;;  %v246_v42 = vld [vmem:[%s361_s1] ss:$0 sm:$0xff]  ;;  %v242_v54 = vld [vmem:[%s366_s5 + $0x8] sm:$0xff] }
   0x4   :  { %v247_v47 = vld [vmem:[%s362_s2] ss:$0 sm:$0xff] }
   0x5   :  { %v241_v55 = vld [vmem:[%s366_s5] sm:$0xff] }
   0x6   :  { %196 = vmatpush.bf16.msra.mxu1 %v243_v53  ;;  %v248_v56 = vld [vmem:[%s363_s4] ss:$0 sm:$0xff] }
   0x7   :  { %v251_v5 = vpop.eup %250  ;;  %125 = vmatpush.bf16.msra.mxu0 %v239_v23 }
   0x8   :  { %v40_v6 = vmul.f32 32.0, %v251_v5  ;;  %vm44_vm2 = vweird.f32 %v251_v5 }
   0xa   :  { %v41_v7 = vsub.f32 1.0, %v40_v6  ;;  %197 = vmatpush.bf16.msra.mxu1 %v242_v54 }
   0xb   :  { %37 = vadd.xlane.f32.xlu0 %v36_v3 }
   0xc   :  { %v42_v8 = vmul.f32 %v251_v5, %v41_v7 }
   0xe   :  { %v43_v9 = vadd.f32 %v251_v5, %v42_v8  ;;  %198 = vmatpush.bf16.msra.mxu1 %v241_v55 }
  0x10   :  { %v45_v10 = vsel %vm44_vm2, %v251_v5, %v43_v9 }
  0x76   :  { %v34_v11 = vpop.xlane.xlu0 %33 }
  0x77   :  { %v46_v12 = vmul.f32 %v45_v10, %v34_v11 }
  0x79   :  { %v48_v13 = vsub.f32 %v304_v0, %v46_v12 }
  0x7b   :  { %v50_v14 = vmul.f32 %v48_v13, %v48_v13 }
  0x7d   :  { %v52_v15 = vsel %vm31_vm0, %v50_v14, 0.0 }
  0x7e   :  { %53 = vadd.xlane.f32.xlu1 %v52_v15  ;;  %v38_v16 = vpop.xlane.xlu0 %37 }
  0x7f   :  { %v47_v17 = vmul.f32 %v45_v10, %v38_v16 }
  0x81   :  { %v49_v18 = vsub.f32 %v311_v2, %v47_v17 }
  0x83   :  { %v51_v19 = vmul.f32 %v49_v18, %v49_v18 }
  0x85   :  { %v55_v20 = vsel %vm35_vm1, %v51_v19, 0.0 }
  0x86   :  { %56 = vadd.xlane.f32.xlu1 %v55_v20 }
  0xf1   :  { %v54_v22 = vpop.xlane.xlu1 %53 }
  0xf2   :  { %v58_v24 = vmul.f32 %v54_v22, %v45_v10 }
  0xf4   :  { %v60_v25 = vadd.f32 1e-05, %v58_v24 }
  0xf6   :  { %252 = vrsqrt.f32 %v60_v25  ;;  %vm68_vm4 = vweird.f32 %v60_v25 }
  0xf9   :  { %v57_v26 = vpop.xlane.xlu1 %56 }
  0xfa   :  { %v59_v27 = vmul.f32 %v57_v26, %v45_v10 }
  0xfc   :  { %v253_v28 = vpop.eup %252  ;;  %v61_v29 = vadd.f32 1e-05, %v59_v27 }
  0xfd   :  { %v63_v30 = vmul.f32 %v253_v28, %v60_v25  ;;  %vm69_vm3 = vweird.f32 %v253_v28 }
  0xfe   :  { %254 = vrsqrt.f32 %v61_v29  ;;  %vm70_vm5 = vmor %vm68_vm4, %vm69_vm3  ;;  %vm78_vm7 = vweird.f32 %v61_v29 }
  0xff   :  { %v64_v31 = vmul.f32 %v253_v28, %v63_v30 }
 0x101   :  { %v65_v32 = vmul.f32 0.5, %v64_v31 }
 0x103   :  { %v66_v33 = vsub.f32 1.5, %v65_v32 }
 0x104   :  { %v255_v34 = vpop.eup %254 }
 0x105   :  { %v67_v35 = vmul.f32 %v253_v28, %v66_v33  ;;  %v73_v36 = vmul.f32 %v255_v34, %v61_v29  ;;  %vm79_vm6 = vweird.f32 %v255_v34 }
 0x106   :  { %vm80_vm8 = vmor %vm78_vm7, %vm79_vm6 }
 0x107   :  { %v74_v37 = vmul.f32 %v255_v34, %v73_v36  ;;  %v71_v38 = vsel %vm70_vm5, %v253_v28, %v67_v35 }
 0x108   :  { %v82_v41 = vmul.f32 %v71_v38, %v48_v13 }
 0x109   :  { %v75_v39 = vmul.f32 0.5, %v74_v37 }
 0x10a   :  { %v87_v46 = vmul.f32 %v246_v42, %v82_v41 }
 0x10b   :  { %v76_v40 = vsub.f32 1.5, %v75_v39 }
 0x10c   :  { %v92_v49 = vadd.f32 %v247_v47, %v87_v46 }
 0x10d   :  { %v77_v43 = vmul.f32 %v255_v34, %v76_v40 }
 0x10f   :  { %v81_v44 = vsel %vm80_vm8, %v255_v34, %v77_v43 }
 0x110   :  { %v83_v45 = vmul.f32 %v81_v44, %v49_v18  ;;  %v249_v18 = vld [vmem:[%s365_s6] ss:$0 sm:$0xff] }
 0x112   :  { %v88_v48 = vmul.f32 %v246_v42, %v83_v45 }
 0x114   :  { %v93_v50 = vadd.f32 %v247_v47, %v88_v48 }
 0x116   :  { %v94_v51 = vpack.c.bf16 %v93_v50, %v92_v49 }
 0x118   :  { %221 = vmatmul.msk.bf16.vlgmr.msra.gmra.mxu0 %vm31_vm0, %v94_v51 }
 0x195   :  { %v127_v57 = vpop.f32.mrf.mxu0 }
 0x196   :  { %v128_v58 = vadd.f32 %v248_v56, %v127_v57 }
 0x198   :  { %v134_v59 = vmul.f32 0.044715, %v128_v58  ;;  %v132_v12 = vmul.f32 0.5, %v128_v58 }
 0x19a   :  { %v136_v60 = vmul.f32 %v134_v59, %v128_v58 }
 0x19c   :  { %v138_v61 = vmul.f32 %v136_v60, %v128_v58 }
 0x19d   :  { %v129_v62 = vpop.f32.mrf.mxu0 }
 0x19e   :  { %v130_v63 = vadd.f32 %v248_v56, %v129_v62  ;;  %v140_v1 = vadd.f32 %v138_v61, %v128_v58 }
 0x1a0   :  { %v135_v3 = vmul.f32 0.044715, %v130_v63  ;;  %v142_v5 = vmul.f32 0.7978846, %v140_v1  ;;  %v133_v13 = vmul.f32 0.5, %v130_v63 }
 0x1a2   :  { %v137_v4 = vmul.f32 %v135_v3, %v130_v63  ;;  %256 = vtanh.f32 %v142_v5 }
 0x1a4   :  { %v139_v6 = vmul.f32 %v137_v4, %v130_v63 }
 0x1a6   :  { %v141_v7 = vadd.f32 %v139_v6, %v130_v63 }
 0x1a8   :  { %v143_v8 = vmul.f32 0.7978846, %v141_v7  ;;  %v257_v9 = vpop.eup %256 }
 0x1a9   :  { %v146_v10 = vadd.f32 1.0, %v257_v9 }
 0x1aa   :  { %258 = vtanh.f32 %v143_v8 }
 0x1ab   :  { %v148_v15 = vmul.f32 %v146_v10, %v132_v12 }
 0x1b0   :  { %v259_v11 = vpop.eup %258 }
 0x1b1   :  { %v147_v14 = vadd.f32 1.0, %v259_v11 }
 0x1b3   :  { %v149_v16 = vmul.f32 %v147_v14, %v133_v13 }
 0x1b5   :  { %v150_v17 = vpack.c.bf16 %v149_v16, %v148_v15 }
 0x1b7   :  { %238 = vmatmul.msk.bf16.vlgmr.msra.gmra.mxu1 %vm187_vm9, %v150_v17 }
 0x234   :  { %v200_v19 = vpop.f32.mrf.mxu1 }
 0x235   :  { %v201_v20 = vadd.f32 %v249_v18, %v200_v19 }
 0x237   :  { %v205_v21 = vadd.f32 %v201_v20, %v304_v0 }
 0x239   :  { %207 = vst.msk [vmem:[%s367_s7] sm:$0xff] %vm31_vm0, %v205_v21 }
 0x23c   :  { %v202_v22 = vpop.f32.mrf.mxu1 }
 0x23d   :  { %v203_v23 = vadd.f32 %v249_v18, %v202_v22 }
 0x23f   :  { %v206_v24 = vadd.f32 %v203_v23, %v311_v2 }
 0x241   :  { %208 = vst.msk [vmem:[%s367_s7 + $0x8] sm:$0xf] %vm35_vm1, %v206_v24 }

// kernel: encoder_forward.14
= control target key start
LH: loop header
LB: loop body
LE: loop exit
PB: predicated region body
PF: predicated region fallthrough
CT: control target
= control target key end

     0   :  { %s1134_s25 = smov 0   ;;  %s1136_s26 = smov 0   ;;  %s1244_s0 = inlined_call_operand.vmem [shape: f32[2,6,32], index: 0, kind: input, shape index: {}, may-alias: {0,1}]   ;;  %s1245_s1 = inlined_call_operand.vmem [shape: f32[2,6,32], index: 1, kind: input, shape index: {}, may-alias: {0,1}]   ;;  %s1246_s2 = inlined_call_operand.vmem [shape: f32[1,32], index: 2, kind: input, shape index: {}]   ;;  %s1247_s3 = inlined_call_operand.vmem [shape: f32[1,32], index: 3, kind: input, shape index: {}]   ;;  %s1248_s4 = inlined_call_operand.vmem [shape: f32[1,32], index: 4, kind: input, shape index: {}]   ;;  %s1249_s5 = inlined_call_operand.vmem [shape: f32[1,32], index: 5, kind: input, shape index: {}]   ;;  %s1250_s6 = inlined_call_operand.vmem [shape: bf16[32,32], index: 6, kind: input, shape index: {}]   ;;  %s1251_s7 = inlined_call_operand.vmem [shape: f32[1,32], index: 7, kind: input, shape index: {}]   ;;  %s1252_s8 = inlined_call_operand.vmem [shape: bf16[32,64], index: 8, kind: input, shape index: {}]   ;;  %s1253_s9 = inlined_call_operand.vmem [shape: f32[1,64], index: 9, kind: input, shape index: {}]   ;;  %s1254_s10 = inlined_call_operand.vmem [shape: bf16[32,32], index: 10, kind: input, shape index: {}]   ;;  %s1255_s11 = inlined_call_operand.vmem [shape: f32[1,32], index: 11, kind: input, shape index: {}]   ;;  %s1256_s12 = inlined_call_operand.vmem [shape: bf16[2,2,6,6], index: 12, kind: input, shape index: {}]   ;;  %s1257_s13 = inlined_call_operand.vmem [shape: f32[2,6,32], index: 13, kind: output, shape index: {}]  }
   0x1   :  { %s1138_s27 = smov 0  }
   0x2 LB: > { %s35_s28 = sadd.s32 1, %s1053_s26  ;;  %p938_p0 = scmp.ge.s32.totalorder %s1057_s27, 1  ;;  %s1057_s27 = sphi %s1138_s27, %s23_s27   ;;  %s1053_s26 = sphi %s1136_s26, %s1259_s26   ;;  %s1049_s25 = sphi %s1134_s25, %s1258_s25  }
   0x3   : > { %p37_p1 = scmp.ge.s32.totalorder %s35_s28, 2  ;;  %p429_p2 = scmp.lt.s32.totalorder %s1057_s27, 3 }
   0x5   : > { %s1261_s28 = smov (%p37_p1, %s35_s28), 0  ;;  %p430_p3 = pnand %p938_p0, %p429_p2 }
   0x6   : > { %p489_p4 = scmp.lt.s32.totalorder (!%p430_p3), %s1049_s25, 1  ;;  %s1060_s24 = smov (!%p430_p3), 96  }
   0x7   : > { %433 = sbr.rel (%p430_p3) target bundleno = 1598 (0x63e), region = 72  ;;  %s1063_s23 = smov (!%p430_p3), 16  }
   0xc   : > { %s1263_s25 = smov (!%p489_p4, %s1049_s25), 1  ;;  %vm520_vm0 = vcmask 259072   ;;  %v1059_v4 = vmov 32.0   ;;  %v982_v21 = vld [vmem:[%s1252_s8 + $0x8] sm:$0xff]  ;;  %v981_v22 = vld [vmem:[%s1252_s8] sm:$0xff]  ;;  %vm611_vm7 = vcmask 261120  }
   0xd   : > { %s1152_s29 = sshll.u32 %s1263_s25, 3  ;;  %1021 = vrcp.f32 %v1059_v4  ;;  %658 = vmatpush.bf16.msra.mxu1 %v982_v21  ;;  %v980_v23 = vld [vmem:[%s1250_s6 + $0x8] sm:$0xff]  ;;  %v979_v25 = vld [vmem:[%s1250_s6] sm:$0xff]  ;;  %vm669_vm9 = vcmask 130048   ;;  %s1061_s25 = smov 112   ;;  %vm709_vm10 = vcmask 1042432  }
   0xe   : > { %s499_s15 = scalar_lea.vmem %s1245_s1, %s1152_s29  ;;  %s495_s18 = scalar_lea.vmem %s1244_s0, %s1152_s29  ;;  %621 = vmatpush.bf16.msra.mxu0 %v980_v23  ;;  %v1014_v39 = vld [vmem:[%s1248_s4] ss:$0 sm:$0xff]  ;;  %vm689_vm11 = vcmask 46080   ;;  %vm705_vm12 = vcmask 48128  }
   0xf   : > { %v517_v0 = vld [vmem:[%s499_s15] sm:$0x3f]  ;;  %s1062_s15 = smov 80  }
  0x10   : > { %v560_v1 = vsel %vm520_vm0, %v517_v0, 0.0  ;;  %v1163_v2 = vld [vmem:[%s495_s18] sm:$0x3f]  ;;  %s507_s18 = scalar_lea.vmem %s1256_s12, %s1152_s29 }
  0x11   : > { %561 = vadd.xlane.f32.xlu0 %v560_v1  ;;  %v521_v3 = vsel %vm520_vm0, %v1163_v2, 0.0  ;;  %659 = vmatpush.bf16.msra.mxu1 %v981_v22  ;;  %v1015_v43 = vld [vmem:[%s1249_s5] ss:$0 sm:$0xff] }
  0x12   : > { %622 = vmatpush.bf16.msra.mxu0 %v979_v25  ;;  %v1016_v50 = vld [vmem:[%s1246_s2] ss:$0 sm:$0xff] }
  0x13   : > { %v1022_v5 = vpop.eup %1021  ;;  %v1017_v53 = vld [vmem:[%s1247_s3] ss:$0 sm:$0xff] }
  0x14   : > { %v525_v6 = vmul.f32 32.0, %v1022_v5  ;;  %vm529_vm1 = vweird.f32 %v1022_v5  ;;  %v1018_v57 = vld [vmem:[%s1253_s9] ss:$0 sm:$0xff] }
  0x15   : > { %v1019_v62 = vld [vmem:[%s1251_s7] ss:$0 sm:$0xff] }
  0x16   : > { %v526_v7 = vsub.f32 1.0, %v525_v6 }
  0x18   : > { %v527_v8 = vmul.f32 %v1022_v5, %v526_v7 }
  0x19   : > { %522 = vadd.xlane.f32.xlu0 %v521_v3 }
  0x1a   : > { %v528_v9 = vadd.f32 %v1022_v5, %v527_v8 }
  0x1c   : > { %v530_v10 = vsel %vm529_vm1, %v1022_v5, %v528_v9 }
  0x84   : > { %v562_v11 = vpop.xlane.xlu0 %561 }
  0x85   : > { %v563_v12 = vmul.f32 %v562_v11, %v530_v10  ;;  %v667_v11 = vld [vmem:[%s507_s18] sm:$0x7] }
  0x87   : > { %v564_v13 = vsub.f32 %v517_v0, %v563_v12  ;;  %v668_v12 = vunpack.c.l.bf16 %v667_v11 }
  0x89   : > { %v565_v14 = vmul.f32 %v564_v13, %v564_v13 }
  0x8b   : > { %v566_v15 = vsel %vm520_vm0, %v565_v14, 0.0 }
  0x8c   : > { %567 = vadd.xlane.f32.xlu1 %v566_v15  ;;  %v523_v16 = vpop.xlane.xlu0 %522 }
  0x8d   : > { %v531_v17 = vmul.f32 %v530_v10, %v523_v16 }
  0x8f   : > { %v532_v18 = vsub.f32 %v1163_v2, %v531_v17 }
  0x91   : > { %v533_v19 = vmul.f32 %v532_v18, %v532_v18 }
  0x93   : > { %v534_v20 = vsel %vm520_vm0, %v533_v19, 0.0 }
  0x94   : > { %535 = vadd.xlane.f32.xlu1 %v534_v20 }
  0xff   : > { %v568_v24 = vpop.xlane.xlu1 %567 }
 0x100   : > { %v569_v26 = vmul.f32 %v568_v24, %v530_v10 }
 0x102   : > { %v570_v27 = vadd.f32 1e-05, %v569_v26 }
 0x104   : > { %1023 = vrsqrt.f32 %v570_v27  ;;  %vm577_vm3 = vweird.f32 %v570_v27 }
 0x107   : > { %v536_v28 = vpop.xlane.xlu1 %535 }
 0x108   : > { %v537_v29 = vmul.f32 %v536_v28, %v530_v10 }
 0x10a   : > { %v1024_v30 = vpop.eup %1023  ;;  %v538_v31 = vadd.f32 1e-05, %v537_v29  ;;  %v964_v29 = vld [vmem:[%s507_s18 + $0x4] sm:$0x7] }
 0x10b   : > { %v572_v32 = vmul.f32 %v1024_v30, %v570_v27  ;;  %vm578_vm2 = vweird.f32 %v1024_v30 }
 0x10c   : > { %1025 = vrsqrt.f32 %v538_v31  ;;  %vm579_vm4 = vmor %vm577_vm3, %vm578_vm2  ;;  %vm545_vm6 = vweird.f32 %v538_v31 }
 0x10d   : > { %v573_v33 = vmul.f32 %v1024_v30, %v572_v32 }
 0x10f   : > { %v574_v34 = vmul.f32 0.5, %v573_v33 }
 0x111   : > { %v575_v35 = vsub.f32 1.5, %v574_v34 }
 0x112   : > { %v1026_v36 = vpop.eup %1025 }
 0x113   : > { %v576_v37 = vmul.f32 %v1024_v30, %v575_v35  ;;  %v540_v38 = vmul.f32 %v1026_v36, %v538_v31  ;;  %vm546_vm5 = vweird.f32 %v1026_v36 }
 0x114   : > { %vm547_vm8 = vmor %vm545_vm6, %vm546_vm5 }
 0x115   : > { %v580_v40 = vsel %vm579_vm4, %v1024_v30, %v576_v37  ;;  %v541_v41 = vmul.f32 %v1026_v36, %v540_v38  ;;  %v728_v30 = vunpack.c.l.bf16 %v964_v29 }
 0x116   : > { %v581_v42 = vmul.f32 %v580_v40, %v564_v13 }
 0x117   : > { %v542_v44 = vmul.f32 0.5, %v541_v41 }
 0x118   : > { %v585_v45 = vmul.f32 %v1014_v39, %v581_v42 }
 0x119   : > { %v543_v46 = vsub.f32 1.5, %v542_v44  ;;  %v984_v44 = vld [vmem:[%s1254_s10 + $0x8] sm:$0xff] }
 0x11a   : > { %v589_v47 = vadd.f32 %v1015_v43, %v585_v45  ;;  %821 = vmatpush.bf16.msrb.mxu1 %v984_v44  ;;  %v983_v45 = vld [vmem:[%s1254_s10] sm:$0xff] }
 0x11b   : > { %v544_v48 = vmul.f32 %v1026_v36, %v543_v46 }
 0x11c   : > { %v628_v49 = vpack.c.bf16 %v589_v47, %v589_v47 }
 0x11d   : > { %v548_v51 = vsel %vm547_vm8, %v1026_v36, %v544_v48 }
 0x11e   : > { %961 = vmatmul.msk.bf16.vlgmr.msra.gmra.mxu1 %vm611_vm7, %v628_v49  ;;  %v549_v52 = vmul.f32 %v548_v51, %v532_v18  ;;  %v1020_v51 = vld [vmem:[%s1255_s11] ss:$0 sm:$0xff] }
 0x11f   : > { %822 = vmatpush.bf16.msrb.mxu1 %v983_v45 }
 0x120   : > { %v553_v54 = vmul.f32 %v1016_v50, %v549_v52 }
 0x122   : > { %v557_v55 = vadd.f32 %v1017_v53, %v553_v54 }
 0x124   : > { %v590_v56 = vpack.c.bf16 %v557_v55, %v557_v55 }
 0x126   : > { %952 = vmatmul.msk.bf16.vlgmr.msra.gmra.mxu0 %vm611_vm7, %v590_v56 }
 0x19b   : > { %v661_v58 = vpop.f32.mrf.mxu1 }
 0x19c   : > { %v662_v59 = vadd.f32 %v1018_v57, %v661_v58 }
 0x19e   : > { %v666_v60 = vpack.c.bf16 %v662_v59, %v662_v59 }
 0x1a0   : > { %703 = vrot.lane.b32.xlu0 %v666_v60, %s1060_s24  ;;  %732 = vrot.lane.b32.xlu1 %v666_v60, %s1061_s25  ;;  %v674_v61 = vsel %vm669_vm9, %v666_v60, 0 }
 0x1a1   : > { %683 = vmatpush.bf16.xpose.msra.mxu2 %v674_v61 }
 0x1a3   : > { %v624_v63 = vpop.f32.mrf.mxu0  ;;  %v663_v0 = vpop.f32.mrf.mxu1 }
 0x1a4   : > { %v625_v1 = vadd.f32 %v1019_v62, %v624_v63 }
 0x1a6   : > { %v665_v3 = vpack.c.bf16 %v625_v1, %v625_v1 }
 0x1a8   : > { %765 = vrot.lane.b32.xlu1 %v666_v60, %s1062_s15  ;;  %962 = vmatmul.msk.bf16.vlgmr.msra.gmra.mxu2 %vm669_vm9, %v665_v3  ;;  %s514_s15 = scalar_lea.vmem %s1257_s13, %s1152_s29 }
 0x1ab   : > { %v626_v4 = vpop.f32.mrf.mxu0 }
 0x212   : > { %v733_v5 = vpop.permute.xlu1 %732  ;;  %v704_v6 = vpop.permute.xlu0 %703 }
 0x213   : > { %v711_v7 = vsel %vm709_vm10, %v704_v6, 0  ;;  %v738_v8 = vsel %vm669_vm9, %v733_v5, 0 }
 0x214   : > { %720 = vmatpush.bf16.msra.mxu3 %v711_v7 }
 0x218   : > { %747 = vmatpush.bf16.xpose.msrb.mxu3 %v738_v8 }
 0x21a   : > { %v766_v9 = vpop.permute.xlu1 %765 }
 0x21b   : > { %v771_v10 = vsel %vm709_vm10, %v766_v9, 0 }
 0x21c   : > { %780 = vmatpush.bf16.msrb.mxu0 %v771_v10 }
 0x22b   : > { %v685_v13 = vpop.f32.mrf.mxu2 }
 0x22c   : > { %v686_v14 = vadd.f32 %v685_v13, %v668_v12 }
 0x22e   : > { %v690_v15 = vsel %vm689_vm11, %v686_v14, -inf }
 0x22f   : > { %691 = vmax.xlane.f32.xlu2 %v690_v15 }
 0x233   : > { %v687_v16 = vpop.f32.mrf.mxu2 }
 0x2a2   : > { %v692_v17 = vpop.xlane.xlu2 %691 }
 0x2a3   : > { %v693_v18 = vsub.f32 %v686_v14, %v692_v17 }
 0x2a5   : > { %v694_v19 = vmul.f32 1.442695, %v693_v18 }
 0x2a7   : > { %1027 = vpow2.f32 %v694_v19 }
 0x2ad   : > { %v1028_v20 = vpop.eup %1027 }
 0x2ae   : > { %v696_v21 = vsel %vm689_vm11, %v1028_v20, 0.0 }
 0x2af   : > { %697 = vadd.xlane.f32.xlu2 %v696_v21 }
 0x2c7   : > { %730 = vrot.lane.b32.xlu2 %v665_v3, %s1061_s25 }
 0x322   : > { %v698_v22 = vpop.xlane.xlu2 %697 }
 0x323   : > { %1029 = vrcp.f32 %v698_v22 }
 0x329   : > { %v1030_v23 = vpop.eup %1029 }
 0x32a   : > { %v700_v24 = vmul.f32 %v1030_v23, %v1028_v20  ;;  %v731_v26 = vpop.permute.xlu2 %730 }
 0x32c   : > { %v701_v25 = vpack.c.bf16 %v700_v24, %v700_v24 }
 0x32e   : > { %963 = vmatmul.msk.bf16.vlgmr.msra.gmra.mxu3 %vm705_vm12, %v701_v25 }
 0x33e   : > { %965 = vmatmul.msk.bf16.vlgmr.msrb.gmra.mxu3 %vm669_vm9, %v731_v26 }
 0x3b1   : > { %v722_v27 = vpop.f32.mrf.mxu3 }
 0x3b9   : > { %v724_v28 = vpop.f32.mrf.mxu3 }
 0x3c1   : > { %v749_v31 = vpop.f32.mrf.mxu3 }
 0x3c2   : > { %v750_v32 = vadd.f32 %v749_v31, %v728_v30 }
 0x3c4   : > { %v753_v33 = vsel %vm689_vm11, %v750_v32, -inf }
 0x3c5   : > { %754 = vmax.xlane.f32.xlu0 %v753_v33 }
 0x3c9   : > { %v751_v34 = vpop.f32.mrf.mxu3 }
 0x438   : > { %v755_v35 = vpop.xlane.xlu0 %754 }
 0x439   : > { %v756_v36 = vsub.f32 %v750_v32, %v755_v35 }
 0x43b   : > { %v757_v37 = vmul.f32 1.442695, %v756_v36 }
 0x43d   : > { %1031 = vpow2.f32 %v757_v37 }
 0x443   : > { %v1032_v38 = vpop.eup %1031 }
 0x444   : > { %v759_v39 = vsel %vm689_vm11, %v1032_v38, 0.0 }
 0x445   : > { %760 = vadd.xlane.f32.xlu2 %v759_v39 }
 0x4b8   : > { %v761_v40 = vpop.xlane.xlu2 %760 }
 0x4b9   : > { %1033 = vrcp.f32 %v761_v40 }
 0x4bf   : > { %v1034_v41 = vpop.eup %1033 }
 0x4c0   : > { %v763_v42 = vmul.f32 %v1034_v41, %v1032_v38 }
 0x4c2   : > { %v764_v43 = vpack.c.bf16 %v763_v42, %v763_v42 }
 0x4c4   : > { %966 = vmatmul.msk.bf16.vlgmr.msrb.gmra.mxu0 %vm705_vm12, %v764_v43 }
 0x541   : > { %v782_v46 = vpop.f32.mrf.mxu0 }
 0x542   : > { %787 = vrot.lane.b32.xlu1 %v782_v46, %s1063_s23 }
 0x549   : > { %v784_v47 = vpop.f32.mrf.mxu0 }
 0x5b4   : > { %v788_v48 = vpop.permute.xlu1 %787 }
 0x5b5   : > { %v790_v49 = vsel %vm669_vm9, %v722_v27, %v788_v48 }
 0x5b6   : > { %v791_v50 = vpack.c.bf16 %v790_v49, %v790_v49 }
 0x5b8   : > { %975 = vmatmul.msk.bf16.vlgmr.msrb.gmra.mxu1 %vm611_vm7, %v791_v50 }
 0x635   : > { %v824_v52 = vpop.f32.mrf.mxu1 }
 0x636   : > { %v825_v53 = vadd.f32 %v1020_v51, %v824_v52 }
 0x638   : > { %v828_v54 = vadd.f32 %v825_v53, %v1163_v2 }
 0x63a   : > { %829 = vst.msk [vmem:[%s514_s15] sm:$0x3f] %vm520_vm0, %v828_v54 }
 0x63d   : > { %v826_v55 = vpop.f32.mrf.mxu1 }
 0x63e PF: > { %s23_s27 = sadd.s32 1, %s1057_s27   ;;  %s1258_s25 = smov %s1053_s26 }
 0x63f   : > { %p20_p5 = scmp.ge.s32.totalorder %s23_s27, 4   ;;  %s1259_s26 = smov %s1261_s28 }
 0x641   :  { %22 = sbr.rel (!%p20_p5) target bundleno = 2 (0x2), region = 109 }

// kernel: encoder_forward.13
= control target key start
LH: loop header
LB: loop body
LE: loop exit
PB: predicated region body
PF: predicated region fallthrough
CT: control target
= control target key end

     0   :  { %vm31_vm0 = vcmask 261120   ;;  %v259_v4 = vmov 32.0   ;;  %vm186_vm8 = vcmask 523264   ;;  %s359_s0 = inlined_call_operand.vmem [shape: f32[16,32], index: 0, kind: input, shape index: {}]   ;;  %s360_s1 = inlined_call_operand.vmem [shape: f32[1,32], index: 1, kind: input, shape index: {}]   ;;  %s361_s2 = inlined_call_operand.vmem [shape: f32[1,32], index: 2, kind: input, shape index: {}]   ;;  %s362_s4 = inlined_call_operand.vmem [shape: f32[1,64], index: 4, kind: input, shape index: {}]   ;;  %s363_s3 = inlined_call_operand.vmem [shape: bf16[32,64], index: 3, kind: input, shape index: {}]   ;;  %s364_s6 = inlined_call_operand.vmem [shape: f32[1,32], index: 6, kind: input, shape index: {}]   ;;  %s365_s5 = inlined_call_operand.vmem [shape: bf16[64,32], index: 5, kind: input, shape index: {}]   ;;  %s366_s7 = inlined_call_operand.vmem [shape: f32[16,32], index: 7, kind: output, shape index: {}]  }
   0x1   :  { %v303_v0 = vld [vmem:[%s359_s0] sm:$0xff]  ;;  %v310_v2 = vld [vmem:[%s359_s0 + $0x8] sm:$0xff]  ;;  %249 = vrcp.f32 %v259_v4  ;;  %v243_v52 = vld [vmem:[%s365_s5 + $0x18] sm:$0xff] }
   0x2   :  { %v32_v1 = vsel %vm31_vm0, %v303_v0, 0.0  ;;  %v35_v3 = vsel %vm31_vm0, %v310_v2, 0.0  ;;  %v239_v21 = vld [vmem:[%s363_s3 + $0x8] sm:$0xff]  ;;  %v238_v23 = vld [vmem:[%s363_s3] sm:$0xff]  ;;  %194 = vmatpush.bf16.msra.mxu1 %v243_v52  ;;  %v242_v53 = vld [vmem:[%s365_s5 + $0x10] sm:$0xff] }
   0x3   :  { %33 = vadd.xlane.f32.xlu0 %v32_v1  ;;  %123 = vmatpush.bf16.msra.mxu0 %v239_v21  ;;  %v245_v42 = vld [vmem:[%s360_s1] ss:$0 sm:$0xff]  ;;  %v241_v54 = vld [vmem:[%s365_s5 + $0x8] sm:$0xff] }
   0x4   :  { %v246_v47 = vld [vmem:[%s361_s2] ss:$0 sm:$0xff] }
   0x5   :  { %v240_v55 = vld [vmem:[%s365_s5] sm:$0xff] }
   0x6   :  { %195 = vmatpush.bf16.msra.mxu1 %v242_v53  ;;  %v247_v56 = vld [vmem:[%s362_s4] ss:$0 sm:$0xff] }
   0x7   :  { %v250_v5 = vpop.eup %249  ;;  %124 = vmatpush.bf16.msra.mxu0 %v238_v23 }
   0x8   :  { %v39_v6 = vmul.f32 32.0, %v250_v5  ;;  %vm43_vm1 = vweird.f32 %v250_v5 }
   0xa   :  { %v40_v7 = vsub.f32 1.0, %v39_v6  ;;  %196 = vmatpush.bf16.msra.mxu1 %v241_v54 }
   0xb   :  { %36 = vadd.xlane.f32.xlu0 %v35_v3 }
   0xc   :  { %v41_v8 = vmul.f32 %v250_v5, %v40_v7 }
   0xe   :  { %v42_v9 = vadd.f32 %v250_v5, %v41_v8  ;;  %197 = vmatpush.bf16.msra.mxu1 %v240_v55 }
  0x10   :  { %v44_v10 = vsel %vm43_vm1, %v250_v5, %v42_v9 }
  0x76   :  { %v34_v11 = vpop.xlane.xlu0 %33 }
  0x77   :  { %v45_v12 = vmul.f32 %v44_v10, %v34_v11 }
  0x79   :  { %v47_v13 = vsub.f32 %v303_v0, %v45_v12 }
  0x7b   :  { %v49_v14 = vmul.f32 %v47_v13, %v47_v13 }
  0x7d   :  { %v51_v15 = vsel %vm31_vm0, %v49_v14, 0.0 }
  0x7e   :  { %52 = vadd.xlane.f32.xlu1 %v51_v15  ;;  %v37_v16 = vpop.xlane.xlu0 %36 }
  0x7f   :  { %v46_v17 = vmul.f32 %v44_v10, %v37_v16 }
  0x81   :  { %v48_v18 = vsub.f32 %v310_v2, %v46_v17 }
  0x83   :  { %v50_v19 = vmul.f32 %v48_v18, %v48_v18 }
  0x85   :  { %v54_v20 = vsel %vm31_vm0, %v50_v19, 0.0 }
  0x86   :  { %55 = vadd.xlane.f32.xlu1 %v54_v20 }
  0xf1   :  { %v53_v22 = vpop.xlane.xlu1 %52 }
  0xf2   :  { %v57_v24 = vmul.f32 %v53_v22, %v44_v10 }
  0xf4   :  { %v59_v25 = vadd.f32 1e-05, %v57_v24 }
  0xf6   :  { %251 = vrsqrt.f32 %v59_v25  ;;  %vm67_vm3 = vweird.f32 %v59_v25 }
  0xf9   :  { %v56_v26 = vpop.xlane.xlu1 %55 }
  0xfa   :  { %v58_v27 = vmul.f32 %v56_v26, %v44_v10 }
  0xfc   :  { %v252_v28 = vpop.eup %251  ;;  %v60_v29 = vadd.f32 1e-05, %v58_v27 }
  0xfd   :  { %v62_v30 = vmul.f32 %v252_v28, %v59_v25  ;;  %vm68_vm2 = vweird.f32 %v252_v28 }
  0xfe   :  { %253 = vrsqrt.f32 %v60_v29  ;;  %vm69_vm4 = vmor %vm67_vm3, %vm68_vm2  ;;  %vm77_vm6 = vweird.f32 %v60_v29 }
  0xff   :  { %v63_v31 = vmul.f32 %v252_v28, %v62_v30 }
 0x101   :  { %v64_v32 = vmul.f32 0.5, %v63_v31 }
 0x103   :  { %v65_v33 = vsub.f32 1.5, %v64_v32 }
 0x104   :  { %v254_v34 = vpop.eup %253 }
 0x105   :  { %v66_v35 = vmul.f32 %v252_v28, %v65_v33  ;;  %v72_v36 = vmul.f32 %v254_v34, %v60_v29  ;;  %vm78_vm5 = vweird.f32 %v254_v34 }
 0x106   :  { %vm79_vm7 = vmor %vm77_vm6, %vm78_vm5 }
 0x107   :  { %v73_v37 = vmul.f32 %v254_v34, %v72_v36  ;;  %v70_v38 = vsel %vm69_vm4, %v252_v28, %v66_v35 }
 0x108   :  { %v81_v41 = vmul.f32 %v70_v38, %v47_v13 }
 0x109   :  { %v74_v39 = vmul.f32 0.5, %v73_v37 }
 0x10a   :  { %v86_v46 = vmul.f32 %v245_v42, %v81_v41 }
 0x10b   :  { %v75_v40 = vsub.f32 1.5, %v74_v39 }
 0x10c   :  { %v91_v49 = vadd.f32 %v246_v47, %v86_v46 }
 0x10d   :  { %v76_v43 = vmul.f32 %v254_v34, %v75_v40 }
 0x10f   :  { %v80_v44 = vsel %vm79_vm7, %v254_v34, %v76_v43 }
 0x110   :  { %v82_v45 = vmul.f32 %v80_v44, %v48_v18  ;;  %v248_v18 = vld [vmem:[%s364_s6] ss:$0 sm:$0xff] }
 0x112   :  { %v87_v48 = vmul.f32 %v245_v42, %v82_v45 }
 0x114   :  { %v92_v50 = vadd.f32 %v246_v47, %v87_v48 }
 0x116   :  { %v93_v51 = vpack.c.bf16 %v92_v50, %v91_v49 }
 0x118   :  { %220 = vmatmul.msk.bf16.vlgmr.msra.gmra.mxu0 %vm31_vm0, %v93_v51 }
 0x195   :  { %v126_v57 = vpop.f32.mrf.mxu0 }
 0x196   :  { %v127_v58 = vadd.f32 %v247_v56, %v126_v57 }
 0x198   :  { %v133_v59 = vmul.f32 0.044715, %v127_v58  ;;  %v131_v12 = vmul.f32 0.5, %v127_v58 }
 0x19a   :  { %v135_v60 = vmul.f32 %v133_v59, %v127_v58 }
 0x19c   :  { %v137_v61 = vmul.f32 %v135_v60, %v127_v58 }
 0x19d   :  { %v128_v62 = vpop.f32.mrf.mxu0 }
 0x19e   :  { %v129_v63 = vadd.f32 %v247_v56, %v128_v62  ;;  %v139_v1 = vadd.f32 %v137_v61, %v127_v58 }
 0x1a0   :  { %v134_v3 = vmul.f32 0.044715, %v129_v63  ;;  %v141_v5 = vmul.f32 0.7978846, %v139_v1  ;;  %v132_v13 = vmul.f32 0.5, %v129_v63 }
 0x1a2   :  { %v136_v4 = vmul.f32 %v134_v3, %v129_v63  ;;  %255 = vtanh.f32 %v141_v5 }
 0x1a4   :  { %v138_v6 = vmul.f32 %v136_v4, %v129_v63 }
 0x1a6   :  { %v140_v7 = vadd.f32 %v138_v6, %v129_v63 }
 0x1a8   :  { %v142_v8 = vmul.f32 0.7978846, %v140_v7  ;;  %v256_v9 = vpop.eup %255 }
 0x1a9   :  { %v145_v10 = vadd.f32 1.0, %v256_v9 }
 0x1aa   :  { %257 = vtanh.f32 %v142_v8 }
 0x1ab   :  { %v147_v15 = vmul.f32 %v145_v10, %v131_v12 }
 0x1b0   :  { %v258_v11 = vpop.eup %257 }
 0x1b1   :  { %v146_v14 = vadd.f32 1.0, %v258_v11 }
 0x1b3   :  { %v148_v16 = vmul.f32 %v146_v14, %v132_v13 }
 0x1b5   :  { %v149_v17 = vpack.c.bf16 %v148_v16, %v147_v15 }
 0x1b7   :  { %237 = vmatmul.msk.bf16.vlgmr.msra.gmra.mxu1 %vm186_vm8, %v149_v17 }
 0x234   :  { %v199_v19 = vpop.f32.mrf.mxu1 }
 0x235   :  { %v200_v20 = vadd.f32 %v248_v18, %v199_v19 }
 0x237   :  { %v204_v21 = vadd.f32 %v200_v20, %v303_v0 }
 0x239   :  { %206 = vst.msk [vmem:[%s366_s7] sm:$0xff] %vm31_vm0, %v204_v21 }
 0x23c   :  { %v201_v22 = vpop.f32.mrf.mxu1 }
 0x23d   :  { %v202_v23 = vadd.f32 %v248_v18, %v201_v22 }
 0x23f   :  { %v205_v24 = vadd.f32 %v202_v23, %v310_v2 }
 0x241   :  { %207 = vst.msk [vmem:[%s366_s7 + $0x8] sm:$0xff] %vm31_vm0, %v205_v24 }

// kernel: encoder_forward.12
= control target key start
LH: loop header
LB: loop body
LE: loop exit
PB: predicated region body
PF: predicated region fallthrough
CT: control target
= control target key end

     0   :  { %s1132_s25 = smov 0   ;;  %s1134_s26 = smov 0   ;;  %s1242_s0 = inlined_call_operand.vmem [shape: f32[2,8,32], index: 0, kind: input, shape index: {}, may-alias: {0,1}]   ;;  %s1243_s1 = inlined_call_operand.vmem [shape: f32[2,8,32], index: 1, kind: input, shape index: {}, may-alias: {0,1}]   ;;  %s1244_s2 = inlined_call_operand.vmem [shape: f32[1,32], index: 2, kind: input, shape index: {}]   ;;  %s1245_s3 = inlined_call_operand.vmem [shape: f32[1,32], index: 3, kind: input, shape index: {}]   ;;  %s1246_s4 = inlined_call_operand.vmem [shape: f32[1,32], index: 4, kind: input, shape index: {}]   ;;  %s1247_s5 = inlined_call_operand.vmem [shape: f32[1,32], index: 5, kind: input, shape index: {}]   ;;  %s1248_s6 = inlined_call_operand.vmem [shape: bf16[32,32], index: 6, kind: input, shape index: {}]   ;;  %s1249_s7 = inlined_call_operand.vmem [shape: f32[1,32], index: 7, kind: input, shape index: {}]   ;;  %s1250_s8 = inlined_call_operand.vmem [shape: bf16[32,64], index: 8, kind: input, shape index: {}]   ;;  %s1251_s9 = inlined_call_operand.vmem [shape: f32[1,64], index: 9, kind: input, shape index: {}]   ;;  %s1252_s10 = inlined_call_operand.vmem [shape: bf16[32,32], index: 10, kind: input, shape index: {}]   ;;  %s1253_s11 = inlined_call_operand.vmem [shape: f32[1,32], index: 11, kind: input, shape index: {}]   ;;  %s1254_s12 = inlined_call_operand.vmem [shape: bf16[2,2,8,8], index: 12, kind: input, shape index: {}]   ;;  %s1255_s13 = inlined_call_operand.vmem [shape: f32[2,8,32], index: 13, kind: output, shape index: {}]  }
   0x1   :  { %s1136_s27 = smov 0  }
   0x2 LB: > { %s35_s28 = sadd.s32 1, %s1051_s26  ;;  %p936_p0 = scmp.ge.s32.totalorder %s1055_s27, 1  ;;  %s1055_s27 = sphi %s1136_s27, %s23_s27   ;;  %s1051_s26 = sphi %s1134_s26, %s1257_s26   ;;  %s1047_s25 = sphi %s1132_s25, %s1256_s25  }
   0x3   : > { %p37_p1 = scmp.ge.s32.totalorder %s35_s28, 2  ;;  %p429_p2 = scmp.lt.s32.totalorder %s1055_s27, 3 }
   0x5   : > { %s1259_s28 = smov (%p37_p1, %s35_s28), 0  ;;  %p430_p3 = pnand %p936_p0, %p429_p2 }
   0x6   : > { %p489_p4 = scmp.lt.s32.totalorder (!%p430_p3), %s1047_s25, 1  ;;  %s1058_s24 = smov (!%p430_p3), 96  }
   0x7   : > { %433 = sbr.rel (%p430_p3) target bundleno = 1598 (0x63e), region = 72  ;;  %s1061_s23 = smov (!%p430_p3), 16  }
   0xc   : > { %s1261_s25 = smov (!%p489_p4, %s1047_s25), 1  ;;  %vm520_vm0 = vcmask 261120   ;;  %v1057_v4 = vmov 32.0   ;;  %v980_v21 = vld [vmem:[%s1250_s8 + $0x8] sm:$0xff]  ;;  %v979_v22 = vld [vmem:[%s1250_s8] sm:$0xff]  ;;  %vm668_vm8 = vcmask 130048  }
   0xd   : > { %s1150_s29 = sshll.u32 %s1261_s25, 3  ;;  %1019 = vrcp.f32 %v1057_v4  ;;  %657 = vmatpush.bf16.msra.mxu1 %v980_v21  ;;  %v978_v23 = vld [vmem:[%s1248_s6 + $0x8] sm:$0xff]  ;;  %v977_v25 = vld [vmem:[%s1248_s6] sm:$0xff]  ;;  %s1059_s25 = smov 112   ;;  %vm707_vm9 = vcmask 1043456   ;;  %vm688_vm10 = vcmask 64512  }
   0xe   : > { %s499_s15 = scalar_lea.vmem %s1243_s1, %s1150_s29  ;;  %s495_s18 = scalar_lea.vmem %s1242_s0, %s1150_s29  ;;  %620 = vmatpush.bf16.msra.mxu0 %v978_v23  ;;  %v1012_v39 = vld [vmem:[%s1246_s4] ss:$0 sm:$0xff] }
   0xf   : > { %v517_v0 = vld [vmem:[%s499_s15] sm:$0xff]  ;;  %s1060_s15 = smov 80  }
  0x10   : > { %v560_v1 = vsel %vm520_vm0, %v517_v0, 0.0  ;;  %v1161_v2 = vld [vmem:[%s495_s18] sm:$0xff]  ;;  %s507_s18 = scalar_lea.vmem %s1254_s12, %s1150_s29 }
  0x11   : > { %561 = vadd.xlane.f32.xlu0 %v560_v1  ;;  %v521_v3 = vsel %vm520_vm0, %v1161_v2, 0.0  ;;  %658 = vmatpush.bf16.msra.mxu1 %v979_v22  ;;  %v1013_v43 = vld [vmem:[%s1247_s5] ss:$0 sm:$0xff] }
  0x12   : > { %621 = vmatpush.bf16.msra.mxu0 %v977_v25  ;;  %v1014_v50 = vld [vmem:[%s1244_s2] ss:$0 sm:$0xff] }
  0x13   : > { %v1020_v5 = vpop.eup %1019  ;;  %v1015_v53 = vld [vmem:[%s1245_s3] ss:$0 sm:$0xff] }
  0x14   : > { %v525_v6 = vmul.f32 32.0, %v1020_v5  ;;  %vm529_vm1 = vweird.f32 %v1020_v5  ;;  %v1016_v57 = vld [vmem:[%s1251_s9] ss:$0 sm:$0xff] }
  0x15   : > { %v1017_v62 = vld [vmem:[%s1249_s7] ss:$0 sm:$0xff] }
  0x16   : > { %v526_v7 = vsub.f32 1.0, %v525_v6 }
  0x18   : > { %v527_v8 = vmul.f32 %v1020_v5, %v526_v7 }
  0x19   : > { %522 = vadd.xlane.f32.xlu0 %v521_v3 }
  0x1a   : > { %v528_v9 = vadd.f32 %v1020_v5, %v527_v8 }
  0x1c   : > { %v530_v10 = vsel %vm529_vm1, %v1020_v5, %v528_v9 }
  0x84   : > { %v562_v11 = vpop.xlane.xlu0 %561 }
  0x85   : > { %v563_v12 = vmul.f32 %v562_v11, %v530_v10  ;;  %v666_v11 = vld [vmem:[%s507_s18] sm:$0xff]  }
  0x87   : > { %v564_v13 = vsub.f32 %v517_v0, %v563_v12  ;;  %v667_v12 = vunpack.c.l.bf16 %v666_v11 }
  0x89   : > { %v565_v14 = vmul.f32 %v564_v13, %v564_v13 }
  0x8b   : > { %v566_v15 = vsel %vm520_vm0, %v565_v14, 0.0 }
  0x8c   : > { %567 = vadd.xlane.f32.xlu1 %v566_v15  ;;  %v523_v16 = vpop.xlane.xlu0 %522 }
  0x8d   : > { %v531_v17 = vmul.f32 %v530_v10, %v523_v16 }
  0x8f   : > { %v532_v18 = vsub.f32 %v1161_v2, %v531_v17 }
  0x91   : > { %v533_v19 = vmul.f32 %v532_v18, %v532_v18 }
  0x93   : > { %v534_v20 = vsel %vm520_vm0, %v533_v19, 0.0 }
  0x94   : > { %535 = vadd.xlane.f32.xlu1 %v534_v20 }
  0xff   : > { %v568_v24 = vpop.xlane.xlu1 %567 }
 0x100   : > { %v569_v26 = vmul.f32 %v568_v24, %v530_v10 }
 0x102   : > { %v570_v27 = vadd.f32 1e-05, %v569_v26 }
 0x104   : > { %1021 = vrsqrt.f32 %v570_v27  ;;  %vm577_vm3 = vweird.f32 %v570_v27 }
 0x107   : > { %v536_v28 = vpop.xlane.xlu1 %535 }
 0x108   : > { %v537_v29 = vmul.f32 %v536_v28, %v530_v10 }
 0x10a   : > { %v1022_v30 = vpop.eup %1021  ;;  %v538_v31 = vadd.f32 1e-05, %v537_v29  ;;  %v726_v29 = vunpack.c.h.bf16 %v666_v11 }
 0x10b   : > { %v572_v32 = vmul.f32 %v1022_v30, %v570_v27  ;;  %vm578_vm2 = vweird.f32 %v1022_v30 }
 0x10c   : > { %1023 = vrsqrt.f32 %v538_v31  ;;  %vm579_vm4 = vmor %vm577_vm3, %vm578_vm2  ;;  %vm545_vm6 = vweird.f32 %v538_v31 }
 0x10d   : > { %v573_v33 = vmul.f32 %v1022_v30, %v572_v32 }
 0x10f   : > { %v574_v34 = vmul.f32 0.5, %v573_v33 }
 0x111   : > { %v575_v35 = vsub.f32 1.5, %v574_v34 }
 0x112   : > { %v1024_v36 = vpop.eup %1023 }
 0x113   : > { %v576_v37 = vmul.f32 %v1022_v30, %v575_v35  ;;  %v540_v38 = vmul.f32 %v1024_v36, %v538_v31  ;;  %vm546_vm5 = vweird.f32 %v1024_v36 }
 0x114   : > { %vm547_vm7 = vmor %vm545_vm6, %vm546_vm5 }
 0x115   : > { %v580_v40 = vsel %vm579_vm4, %v1022_v30, %v576_v37  ;;  %v541_v41 = vmul.f32 %v1024_v36, %v540_v38 }
 0x116   : > { %v581_v42 = vmul.f32 %v580_v40, %v564_v13 }
 0x117   : > { %v542_v44 = vmul.f32 0.5, %v541_v41 }
 0x118   : > { %v585_v45 = vmul.f32 %v1012_v39, %v581_v42 }
 0x119   : > { %v543_v46 = vsub.f32 1.5, %v542_v44  ;;  %v981_v44 = vld [vmem:[%s1252_s10] sm:$0xff] }
 0x11a   : > { %v589_v47 = vadd.f32 %v1013_v43, %v585_v45  ;;  %v982_v43 = vld [vmem:[%s1252_s10 + $0x8] sm:$0xff] }
 0x11b   : > { %v544_v48 = vmul.f32 %v1024_v36, %v543_v46  ;;  %819 = vmatpush.bf16.msrb.mxu1 %v982_v43 }
 0x11c   : > { %v627_v49 = vpack.c.bf16 %v589_v47, %v589_v47 }
 0x11d   : > { %v548_v51 = vsel %vm547_vm7, %v1024_v36, %v544_v48 }
 0x11e   : > { %959 = vmatmul.msk.bf16.vlgmr.msra.gmra.mxu1 %vm520_vm0, %v627_v49  ;;  %v549_v52 = vmul.f32 %v548_v51, %v532_v18 }
 0x11f   : > { %820 = vmatpush.bf16.msrb.mxu1 %v981_v44 }
 0x120   : > { %v553_v54 = vmul.f32 %v1014_v50, %v549_v52  ;;  %v1018_v50 = vld [vmem:[%s1253_s11] ss:$0 sm:$0xff] }
 0x122   : > { %v557_v55 = vadd.f32 %v1015_v53, %v553_v54 }
 0x124   : > { %v590_v56 = vpack.c.bf16 %v557_v55, %v557_v55 }
 0x126   : > { %950 = vmatmul.msk.bf16.vlgmr.msra.gmra.mxu0 %vm520_vm0, %v590_v56 }
 0x19b   : > { %v660_v58 = vpop.f32.mrf.mxu1 }
 0x19c   : > { %v661_v59 = vadd.f32 %v1016_v57, %v660_v58 }
 0x19e   : > { %v665_v60 = vpack.c.bf16 %v661_v59, %v661_v59 }
 0x1a0   : > { %702 = vrot.lane.b32.xlu0 %v665_v60, %s1058_s24  ;;  %730 = vrot.lane.b32.xlu1 %v665_v60, %s1059_s25  ;;  %v673_v61 = vsel %vm668_vm8, %v665_v60, 0 }
 0x1a1   : > { %682 = vmatpush.bf16.xpose.msra.mxu2 %v673_v61 }
 0x1a3   : > { %v623_v63 = vpop.f32.mrf.mxu0  ;;  %v662_v0 = vpop.f32.mrf.mxu1 }
 0x1a4   : > { %v624_v1 = vadd.f32 %v1017_v62, %v623_v63 }
 0x1a6   : > { %v664_v3 = vpack.c.bf16 %v624_v1, %v624_v1 }
 0x1a8   : > { %763 = vrot.lane.b32.xlu1 %v665_v60, %s1060_s15  ;;  %960 = vmatmul.msk.bf16.vlgmr.msra.gmra.mxu2 %vm668_vm8, %v664_v3  ;;  %s514_s15 = scalar_lea.vmem %s1255_s13, %s1150_s29 }
 0x1ab   : > { %v625_v4 = vpop.f32.mrf.mxu0 }
 0x212   : > { %v731_v5 = vpop.permute.xlu1 %730  ;;  %v703_v6 = vpop.permute.xlu0 %702 }
 0x213   : > { %v709_v7 = vsel %vm707_vm9, %v703_v6, 0  ;;  %v736_v8 = vsel %vm668_vm8, %v731_v5, 0 }
 0x214   : > { %718 = vmatpush.bf16.msra.mxu3 %v709_v7 }
 0x218   : > { %745 = vmatpush.bf16.xpose.msrb.mxu3 %v736_v8 }
 0x21a   : > { %v764_v9 = vpop.permute.xlu1 %763 }
 0x21b   : > { %v769_v10 = vsel %vm707_vm9, %v764_v9, 0 }
 0x21c   : > { %778 = vmatpush.bf16.msrb.mxu0 %v769_v10 }
 0x22b   : > { %v684_v13 = vpop.f32.mrf.mxu2 }
 0x22c   : > { %v685_v14 = vadd.f32 %v684_v13, %v667_v12 }
 0x22e   : > { %v689_v15 = vsel %vm688_vm10, %v685_v14, -inf }
 0x22f   : > { %690 = vmax.xlane.f32.xlu2 %v689_v15 }
 0x233   : > { %v686_v16 = vpop.f32.mrf.mxu2 }
 0x2a2   : > { %v691_v17 = vpop.xlane.xlu2 %690 }
 0x2a3   : > { %v692_v18 = vsub.f32 %v685_v14, %v691_v17 }
 0x2a5   : > { %v693_v19 = vmul.f32 1.442695, %v692_v18 }
 0x2a7   : > { %1025 = vpow2.f32 %v693_v19 }
 0x2ad   : > { %v1026_v20 = vpop.eup %1025 }
 0x2ae   : > { %v695_v21 = vsel %vm688_vm10, %v1026_v20, 0.0 }
 0x2af   : > { %696 = vadd.xlane.f32.xlu2 %v695_v21 }
 0x2c7   : > { %728 = vrot.lane.b32.xlu2 %v664_v3, %s1059_s25 }
 0x322   : > { %v697_v22 = vpop.xlane.xlu2 %696 }
 0x323   : > { %1027 = vrcp.f32 %v697_v22 }
 0x329   : > { %v1028_v23 = vpop.eup %1027 }
 0x32a   : > { %v699_v24 = vmul.f32 %v1028_v23, %v1026_v20  ;;  %v729_v26 = vpop.permute.xlu2 %728 }
 0x32c   : > { %v700_v25 = vpack.c.bf16 %v699_v24, %v699_v24 }
 0x32e   : > { %961 = vmatmul.msk.bf16.vlgmr.msra.gmra.mxu3 %vm688_vm10, %v700_v25 }
 0x33e   : > { %963 = vmatmul.msk.bf16.vlgmr.msrb.gmra.mxu3 %vm668_vm8, %v729_v26 }
 0x3b1   : > { %v720_v27 = vpop.f32.mrf.mxu3 }
 0x3b9   : > { %v722_v28 = vpop.f32.mrf.mxu3 }
 0x3c1   : > { %v747_v30 = vpop.f32.mrf.mxu3 }
 0x3c2   : > { %v748_v31 = vadd.f32 %v747_v30, %v726_v29 }
 0x3c4   : > { %v751_v32 = vsel %vm688_vm10, %v748_v31, -inf }
 0x3c5   : > { %752 = vmax.xlane.f32.xlu0 %v751_v32 }
 0x3c9   : > { %v749_v33 = vpop.f32.mrf.mxu3 }
 0x438   : > { %v753_v34 = vpop.xlane.xlu0 %752 }
 0x439   : > { %v754_v35 = vsub.f32 %v748_v31, %v753_v34 }
 0x43b   : > { %v755_v36 = vmul.f32 1.442695, %v754_v35 }
 0x43d   : > { %1029 = vpow2.f32 %v755_v36 }
 0x443   : > { %v1030_v37 = vpop.eup %1029 }
 0x444   : > { %v757_v38 = vsel %vm688_vm10, %v1030_v37, 0.0 }
 0x445   : > { %758 = vadd.xlane.f32.xlu2 %v757_v38 }
 0x4b8   : > { %v759_v39 = vpop.xlane.xlu2 %758 }
 0x4b9   : > { %1031 = vrcp.f32 %v759_v39 }
 0x4bf   : > { %v1032_v40 = vpop.eup %1031 }
 0x4c0   : > { %v761_v41 = vmul.f32 %v1032_v40, %v1030_v37 }
 0x4c2   : > { %v762_v42 = vpack.c.bf16 %v761_v41, %v761_v41 }
 0x4c4   : > { %964 = vmatmul.msk.bf16.vlgmr.msrb.gmra.mxu0 %vm688_vm10, %v762_v42 }
 0x541   : > { %v780_v45 = vpop.f32.mrf.mxu0 }
 0x542   : > { %785 = vrot.lane.b32.xlu1 %v780_v45, %s1061_s23 }
 0x549   : > { %v782_v46 = vpop.f32.mrf.mxu0 }
 0x5b4   : > { %v786_v47 = vpop.permute.xlu1 %785 }
 0x5b5   : > { %v788_v48 = vsel %vm668_vm8, %v720_v27, %v786_v47 }
 0x5b6   : > { %v789_v49 = vpack.c.bf16 %v788_v48, %v788_v48 }
 0x5b8   : > { %973 = vmatmul.msk.bf16.vlgmr.msrb.gmra.mxu1 %vm520_vm0, %v789_v49 }
 0x635   : > { %v822_v51 = vpop.f32.mrf.mxu1 }
 0x636   : > { %v823_v52 = vadd.f32 %v1018_v50, %v822_v51 }
 0x638   : > { %v826_v53 = vadd.f32 %v823_v52, %v1161_v2 }
 0x63a   : > { %827 = vst.msk [vmem:[%s514_s15] sm:$0xff] %vm520_vm0, %v826_v53 }
 0x63d   : > { %v824_v54 = vpop.f32.mrf.mxu1 }
 0x63e PF: > { %s23_s27 = sadd.s32 1, %s1055_s27   ;;  %s1256_s25 = smov %s1051_s26 }
 0x63f   : > { %p20_p5 = scmp.ge.s32.totalorder %s23_s27, 4   ;;  %s1257_s26 = smov %s1259_s28 }
 0x641   :  { %22 = sbr.rel (!%p20_p5) target bundleno = 2 (0x2), region = 109 }

// kernel: encoder_forward.23
= control target key start
LH: loop header
LB: loop body
LE: loop exit
PB: predicated region body
PF: predicated region fallthrough
CT: control target
= control target key end

     0   :  { %vm37_vm0 = vcmask 261120   ;;  %vm41_vm1 = vcmask 257024   ;;  %v328_v4 = vmov 32.0   ;;  %vm193_vm9 = vcmask 523264   ;;  %s458_s0 = inlined_call_operand.vmem [shape: f32[12,32], index: 0, kind: input, shape index: {}]   ;;  %s459_s1 = inlined_call_operand.vmem [shape: f32[1,32], index: 1, kind: input, shape index: {}]   ;;  %s460_s2 = inlined_call_operand.vmem [shape: f32[1,32], index: 2, kind: input, shape index: {}]   ;;  %s461_s4 = inlined_call_operand.vmem [shape: f32[1,64], index: 4, kind: input, shape index: {}]   ;;  %s462_s3 = inlined_call_operand.vmem [shape: bf16[32,64], index: 3, kind: input, shape index: {}]   ;;  %s463_s6 = inlined_call_operand.vmem [shape: f32[1,32], index: 6, kind: input, shape index: {}]   ;;  %s464_s5 = inlined_call_operand.vmem [shape: bf16[64,32], index: 5, kind: input, shape index: {}]   ;;  %s465_s7 = inlined_call_operand.vmem [shape: f32[1,32], index: 7, kind: input, shape index: {}]   ;;  %s466_s8 = inlined_call_operand.vmem [shape: f32[1,32], index: 8, kind: input, shape index: {}]   ;;  %s467_s9 = inlined_call_operand.vmem [shape: f32[12,32], index: 9, kind: output, shape index: {}]  }
   0x1   :  { %v382_v0 = vld [vmem:[%s458_s0] sm:$0xff]  ;;  %v389_v2 = vld [vmem:[%s458_s0 + $0x8] sm:$0xf]  ;;  %314 = vrcp.f32 %v328_v4  ;;  %v306_v52 = vld [vmem:[%s464_s5 + $0x18] sm:$0xff] }
   0x2   :  { %v38_v1 = vsel %vm37_vm0, %v382_v0, 0.0  ;;  %v42_v3 = vsel %vm41_vm1, %v389_v2, 0.0  ;;  %v302_v21 = vld [vmem:[%s462_s3 + $0x8] sm:$0xff]  ;;  %v301_v23 = vld [vmem:[%s462_s3] sm:$0xff]  ;;  %201 = vmatpush.bf16.msra.mxu1 %v306_v52  ;;  %v305_v53 = vld [vmem:[%s464_s5 + $0x10] sm:$0xff] }
   0x3   :  { %39 = vadd.xlane.f32.xlu0 %v38_v1  ;;  %130 = vmatpush.bf16.msra.mxu0 %v302_v21  ;;  %v308_v42 = vld [vmem:[%s459_s1] ss:$0 sm:$0xff]  ;;  %v304_v54 = vld [vmem:[%s464_s5 + $0x8] sm:$0xff] }
   0x4   :  { %v309_v47 = vld [vmem:[%s460_s2] ss:$0 sm:$0xff] }
   0x5   :  { %v303_v55 = vld [vmem:[%s464_s5] sm:$0xff] }
   0x6   :  { %202 = vmatpush.bf16.msra.mxu1 %v305_v53  ;;  %v310_v56 = vld [vmem:[%s461_s4] ss:$0 sm:$0xff] }
   0x7   :  { %v315_v5 = vpop.eup %314  ;;  %131 = vmatpush.bf16.msra.mxu0 %v301_v23 }
   0x8   :  { %v46_v6 = vmul.f32 32.0, %v315_v5  ;;  %vm50_vm2 = vweird.f32 %v315_v5 }
   0xa   :  { %v47_v7 = vsub.f32 1.0, %v46_v6  ;;  %203 = vmatpush.bf16.msra.mxu1 %v304_v54 }
   0xb   :  { %43 = vadd.xlane.f32.xlu0 %v42_v3 }
   0xc   :  { %v48_v8 = vmul.f32 %v315_v5, %v47_v7 }
   0xe   :  { %v49_v9 = vadd.f32 %v315_v5, %v48_v8  ;;  %204 = vmatpush.bf16.msra.mxu1 %v303_v55 }
  0x10   :  { %v393_v10 = vsel %vm50_vm2, %v315_v5, %v49_v9 }
  0x76   :  { %v40_v11 = vpop.xlane.xlu0 %39 }
  0x77   :  { %v52_v12 = vmul.f32 %v393_v10, %v40_v11 }
  0x79   :  { %v54_v13 = vsub.f32 %v382_v0, %v52_v12 }
  0x7b   :  { %v56_v14 = vmul.f32 %v54_v13, %v54_v13 }
  0x7d   :  { %v58_v15 = vsel %vm37_vm0, %v56_v14, 0.0 }
  0x7e   :  { %59 = vadd.xlane.f32.xlu1 %v58_v15  ;;  %v44_v16 = vpop.xlane.xlu0 %43 }
  0x7f   :  { %v53_v17 = vmul.f32 %v393_v10, %v44_v16 }
  0x81   :  { %v55_v18 = vsub.f32 %v389_v2, %v53_v17 }
  0x83   :  { %v57_v19 = vmul.f32 %v55_v18, %v55_v18 }
  0x85   :  { %v61_v20 = vsel %vm41_vm1, %v57_v19, 0.0  ;;  %v311_v19 = vld [vmem:[%s463_s6] ss:$0 sm:$0xff] }
  0x86   :  { %62 = vadd.xlane.f32.xlu1 %v61_v20 }
  0xf1   :  { %v60_v22 = vpop.xlane.xlu1 %59 }
  0xf2   :  { %v64_v24 = vmul.f32 %v60_v22, %v393_v10 }
  0xf4   :  { %v66_v25 = vadd.f32 1e-05, %v64_v24 }
  0xf6   :  { %316 = vrsqrt.f32 %v66_v25  ;;  %vm74_vm4 = vweird.f32 %v66_v25 }
  0xf9   :  { %v63_v26 = vpop.xlane.xlu1 %62 }
  0xfa   :  { %v65_v27 = vmul.f32 %v63_v26, %v393_v10 }
  0xfc   :  { %v317_v28 = vpop.eup %316  ;;  %v67_v29 = vadd.f32 1e-05, %v65_v27 }
  0xfd   :  { %v69_v30 = vmul.f32 %v317_v28, %v66_v25  ;;  %vm75_vm3 = vweird.f32 %v317_v28 }
  0xfe   :  { %318 = vrsqrt.f32 %v67_v29  ;;  %vm76_vm5 = vmor %vm74_vm4, %vm75_vm3  ;;  %vm84_vm7 = vweird.f32 %v67_v29 }
  0xff   :  { %v70_v31 = vmul.f32 %v317_v28, %v69_v30 }
 0x101   :  { %v71_v32 = vmul.f32 0.5, %v70_v31 }
 0x103   :  { %v72_v33 = vsub.f32 1.5, %v71_v32 }
 0x104   :  { %v319_v34 = vpop.eup %318 }
 0x105   :  { %v73_v35 = vmul.f32 %v317_v28, %v72_v33  ;;  %v79_v36 = vmul.f32 %v319_v34, %v67_v29  ;;  %vm85_vm6 = vweird.f32 %v319_v34 }
 0x106   :  { %vm86_vm8 = vmor %vm84_vm7, %vm85_vm6 }
 0x107   :  { %v80_v37 = vmul.f32 %v319_v34, %v79_v36  ;;  %v77_v38 = vsel %vm76_vm5, %v317_v28, %v73_v35 }
 0x108   :  { %v88_v41 = vmul.f32 %v77_v38, %v54_v13 }
 0x109   :  { %v81_v39 = vmul.f32 0.5, %v80_v37 }
 0x10a   :  { %v93_v46 = vmul.f32 %v308_v42, %v88_v41 }
 0x10b   :  { %v82_v40 = vsub.f32 1.5, %v81_v39 }
 0x10c   :  { %v98_v49 = vadd.f32 %v309_v47, %v93_v46 }
 0x10d   :  { %v83_v43 = vmul.f32 %v319_v34, %v82_v40 }
 0x10f   :  { %v87_v44 = vsel %vm86_vm8, %v319_v34, %v83_v43 }
 0x110   :  { %v89_v45 = vmul.f32 %v87_v44, %v55_v18 }
 0x112   :  { %v94_v48 = vmul.f32 %v308_v42, %v89_v45 }
 0x114   :  { %v99_v50 = vadd.f32 %v309_v47, %v94_v48 }
 0x116   :  { %v100_v51 = vpack.c.bf16 %v99_v50, %v98_v49  ;;  %v312_v50 = vld [vmem:[%s465_s7] ss:$0 sm:$0xff] }
 0x118   :  { %283 = vmatmul.msk.bf16.vlgmr.msra.gmra.mxu0 %vm37_vm0, %v100_v51 }
 0x195   :  { %v133_v57 = vpop.f32.mrf.mxu0 }
 0x196   :  { %v134_v58 = vadd.f32 %v310_v56, %v133_v57 }
 0x198   :  { %v140_v59 = vmul.f32 0.044715, %v134_v58  ;;  %v138_v13 = vmul.f32 0.5, %v134_v58 }
 0x19a   :  { %v142_v60 = vmul.f32 %v140_v59, %v134_v58 }
 0x19c   :  { %v144_v61 = vmul.f32 %v142_v60, %v134_v58 }
 0x19d   :  { %v135_v62 = vpop.f32.mrf.mxu0 }
 0x19e   :  { %v136_v63 = vadd.f32 %v310_v56, %v135_v62  ;;  %v146_v1 = vadd.f32 %v144_v61, %v134_v58 }
 0x1a0   :  { %v141_v3 = vmul.f32 0.044715, %v136_v63  ;;  %v148_v5 = vmul.f32 0.7978846, %v146_v1  ;;  %v139_v14 = vmul.f32 0.5, %v136_v63 }
 0x1a2   :  { %v143_v4 = vmul.f32 %v141_v3, %v136_v63  ;;  %320 = vtanh.f32 %v148_v5 }
 0x1a4   :  { %v145_v6 = vmul.f32 %v143_v4, %v136_v63 }
 0x1a6   :  { %v147_v7 = vadd.f32 %v145_v6, %v136_v63 }
 0x1a8   :  { %v149_v8 = vmul.f32 0.7978846, %v147_v7  ;;  %v321_v9 = vpop.eup %320 }
 0x1a9   :  { %v152_v11 = vadd.f32 1.0, %v321_v9 }
 0x1aa   :  { %322 = vtanh.f32 %v149_v8 }
 0x1ab   :  { %v154_v16 = vmul.f32 %v152_v11, %v138_v13 }
 0x1b0   :  { %v323_v12 = vpop.eup %322 }
 0x1b1   :  { %v153_v15 = vadd.f32 1.0, %v323_v12 }
 0x1b3   :  { %v155_v17 = vmul.f32 %v153_v15, %v139_v14 }
 0x1b5   :  { %v156_v18 = vpack.c.bf16 %v155_v17, %v154_v16 }
 0x1b7   :  { %300 = vmatmul.msk.bf16.vlgmr.msra.gmra.mxu1 %vm193_vm9, %v156_v18 }
 0x234   :  { %v206_v20 = vpop.f32.mrf.mxu1 }
 0x235   :  { %v207_v21 = vadd.f32 %v311_v19, %v206_v20 }
 0x237   :  { %v211_v22 = vadd.f32 %v207_v21, %v382_v0 }
 0x239   :  { %v215_v23 = vsel %vm37_vm0, %v211_v22, 0.0 }
 0x23a   :  { %216 = vadd.xlane.f32.xlu2 %v215_v23 }
 0x23c   :  { %v208_v24 = vpop.f32.mrf.mxu1 }
 0x23d   :  { %v209_v25 = vadd.f32 %v311_v19, %v208_v24 }
 0x23f   :  { %v212_v26 = vadd.f32 %v209_v25, %v389_v2 }
 0x241   :  { %v218_v27 = vsel %vm41_vm1, %v212_v26, 0.0 }
 0x242   :  { %219 = vadd.xlane.f32.xlu2 %v218_v27 }
 0x2ad   :  { %v217_v28 = vpop.xlane.xlu2 %216 }
 0x2ae   :  { %v221_v29 = vmul.f32 %v217_v28, %v393_v10 }
 0x2b0   :  { %v223_v30 = vsub.f32 %v211_v22, %v221_v29 }
 0x2b2   :  { %v225_v31 = vmul.f32 %v223_v30, %v223_v30 }
 0x2b4   :  { %v227_v32 = vsel %vm37_vm0, %v225_v31, 0.0 }
 0x2b5   :  { %228 = vadd.xlane.f32.xlu0 %v227_v32  ;;  %v220_v33 = vpop.xlane.xlu2 %219 }
 0x2b6   :  { %v222_v0 = vmul.f32 %v220_v33, %v393_v10 }
 0x2b8   :  { %v224_v34 = vsub.f32 %v212_v26, %v222_v0 }
 0x2ba   :  { %v226_v35 = vmul.f32 %v224_v34, %v224_v34 }
 0x2bc   :  { %v230_v36 = vsel %vm41_vm1, %v226_v35, 0.0 }
 0x2bd   :  { %231 = vadd.xlane.f32.xlu1 %v230_v36 }
 0x328   :  { %v229_v2 = vpop.xlane.xlu0 %228 }
 0x329   :  { %v233_v37 = vmul.f32 %v229_v2, %v393_v10 }
 0x32b   :  { %v235_v38 = vadd.f32 1e-05, %v233_v37 }
 0x32d   :  { %324 = vrsqrt.f32 %v235_v38  ;;  %vm243_vm11 = vweird.f32 %v235_v38 }
 0x330   :  { %v232_v39 = vpop.xlane.xlu1 %231 }
 0x331   :  { %v234_v40 = vmul.f32 %v232_v39, %v393_v10  ;;  %v313_v10 = vld [vmem:[%s466_s8] ss:$0 sm:$0xff] }
 0x333   :  { %v325_v41 = vpop.eup %324  ;;  %v236_v42 = vadd.f32 1e-05, %v234_v40 }
 0x334   :  { %v238_v43 = vmul.f32 %v325_v41, %v235_v38  ;;  %vm244_vm10 = vweird.f32 %v325_v41 }
 0x335   :  { %326 = vrsqrt.f32 %v236_v42  ;;  %vm245_vm12 = vmor %vm243_vm11, %vm244_vm10  ;;  %vm253_vm14 = vweird.f32 %v236_v42 }
 0x336   :  { %v239_v44 = vmul.f32 %v325_v41, %v238_v43 }
 0x338   :  { %v240_v45 = vmul.f32 0.5, %v239_v44 }
 0x33a   :  { %v241_v46 = vsub.f32 1.5, %v240_v45 }
 0x33b   :  { %v327_v47 = vpop.eup %326 }
 0x33c   :  { %v242_v48 = vmul.f32 %v325_v41, %v241_v46  ;;  %v248_v49 = vmul.f32 %v327_v47, %v236_v42  ;;  %vm254_vm13 = vweird.f32 %v327_v47 }
 0x33d   :  { %vm255_vm15 = vmor %vm253_vm14, %vm254_vm13 }
 0x33e   :  { %v246_v51 = vsel %vm245_vm12, %v325_v41, %v242_v48  ;;  %v249_v52 = vmul.f32 %v327_v47, %v248_v49 }
 0x33f   :  { %v257_v53 = vmul.f32 %v246_v51, %v223_v30 }
 0x340   :  { %v250_v54 = vmul.f32 0.5, %v249_v52 }
 0x341   :  { %v262_v55 = vmul.f32 %v312_v50, %v257_v53 }
 0x342   :  { %v251_v56 = vsub.f32 1.5, %v250_v54 }
 0x343   :  { %v267_v57 = vadd.f32 %v313_v10, %v262_v55 }
 0x344   :  { %v252_v58 = vmul.f32 %v327_v47, %v251_v56 }
 0x345   :  { %269 = vst.msk [vmem:[%s467_s9] sm:$0xff] %vm37_vm0, %v267_v57 }
 0x346   :  { %v256_v59 = vsel %vm255_vm15, %v327_v47, %v252_v58 }
 0x347   :  { %v258_v60 = vmul.f32 %v256_v59, %v224_v34 }
 0x349   :  { %v263_v61 = vmul.f32 %v312_v50, %v258_v60 }
 0x34b   :  { %v268_v62 = vadd.f32 %v313_v10, %v263_v61 }
 0x34d   :  { %270 = vst.msk [vmem:[%s467_s9 + $0x8] sm:$0xf] %vm41_vm1, %v268_v62 }

// kernel: encoder_forward.17
= control target key start
LH: loop header
LB: loop body
LE: loop exit
PB: predicated region body
PF: predicated region fallthrough
CT: control target
= control target key end

     0   :  { %s1641_s0 = inlined_call_operand.vmem [shape: f32[2,6,32], index: 0, kind: input, shape index: {}]   ;;  %s1642_s1 = inlined_call_operand.vmem [shape: f32[2,8,32], index: 1, kind: input, shape index: {}]   ;;  %s1643_s2 = inlined_call_operand.vmem [shape: f32[1,32], index: 2, kind: input, shape index: {}]   ;;  %s1644_s3 = inlined_call_operand.vmem [shape: f32[1,32], index: 3, kind: input, shape index: {}]   ;;  %s1645_s4 = inlined_call_operand.hbm [shape: f32[1,32], index: 4, kind: input, shape index: {}]   ;;  %s1646_s5 = inlined_call_operand.hbm [shape: f32[1,32], index: 5, kind: input, shape index: {}]   ;;  %s1647_s6 = inlined_call_operand.vmem [shape: bf16[32,32], index: 6, kind: input, shape index: {}]   ;;  %s1648_s7 = inlined_call_operand.hbm [shape: f32[1,32], index: 7, kind: input, shape index: {}]   ;;  %s1649_s8 = inlined_call_operand.vmem [shape: bf16[32,64], index: 8, kind: input, shape index: {}]   ;;  %s1650_s9 = inlined_call_operand.hbm [shape: f32[1,64], index: 9, kind: input, shape index: {}]   ;;  %s1651_s10 = inlined_call_operand.vmem [shape: bf16[32,32], index: 10, kind: input, shape index: {}]   ;;  %s1652_s11 = inlined_call_operand.hbm [shape: f32[1,32], index: 11, kind: input, shape index: {}]   ;;  %s1653_s12 = inlined_call_operand.vmem [shape: bf16[2,2,6,8], index: 12, kind: input, shape index: {}]   ;;  %s1654_s13 = inlined_call_operand.vmem [shape: f32[2,6,32], index: 13, kind: output, shape index: {}]  }
   0x1   :  { %1655 = sst [smem:[#allocation13_spill]] %s1646_s5 }
   0x2   :  { %1656 = sst [smem:[#allocation14_spill]] %s1650_s9 }
   0x3   :  { %18 = vsyncpa [#allocation3], 0 }
   0x4   :  { %19 = vsyncpa [#allocation5], 0 }
   0x5   :  { %20 = vsyncpa [#allocation8], 0  ;;  %s1486_s25 = smov 0   ;;  %s1488_s26 = smov 0  }
   0x6   :  { %s1490_s27 = smov 0  }
   0x7 LB: > { %s1657_s5 = sld [smem:[#allocation13_spill]]  ;;  %s1058_s14 = sadd.s32 4294967295, %s1404_s27   ;;  %s1404_s27 = sphi %s1490_s27, %s26_s27   ;;  %s1400_s26 = sphi %s1488_s26, %s1663_s26   ;;  %s1396_s25 = sphi %s1486_s25, %s1662_s25  }
   0x8   : > { %p1060_p0 = scmp.ge.s32.totalorder %s1404_s27, 1  ;;  %p363_p1 = scmp.lt.s32.totalorder %s1404_s27, 3 }
   0x9   : > { %p1507_p2 = scmp.eq.s32.totalorder %s1058_s14, 0  ;;  %s1406_s17 = smov [#allocation4]  }
   0xa   : > { %p1511_p3 = pnand %p1060_p0, %p363_p1  ;;  %s395_s18 = sshll.u32 %s1406_s17, 4  ;;  %s396_s18 = int_to_ptr.vmem [resolvable:$true] %s395_s18 }
   0xb   : > { %s1660_s9 = sld [smem:[#allocation14_spill]]  ;;  %s1407_s23 = smov [#allocation7]  }
   0xc   : > { %p1139_p4 = pneg %p1511_p3  ;;  %s425_s24 = sshll.u32 %s1407_s23, 4  ;;  %s426_s24 = int_to_ptr.vmem [resolvable:$true] %s425_s24 }
   0xd   : > { %s393_s30 = sshll.u32 %s1657_s5, 4  ;;  %s38_s28 = sadd.s32 1, %s1400_s26  ;;  %s394_s30 = int_to_ptr.hbm [resolvable:$true] %s393_s30 }
   0xe   : > { %p1522_p5 = pnand %p1507_p2, %p1139_p4  ;;  %p40_p6 = scmp.ge.s32.totalorder %s38_s28, 2 }
   0xf   : > { %s381_s17 = sshll.u32 %s1645_s4, 4  ;;  %s1408_s19 = smov [#allocation2]   ;;  %s382_s17 = int_to_ptr.hbm [resolvable:$true] %s381_s17 }
  0x10   : > { %1145 = dma.hbm_to_vmem [thread:$0]  (!%p1522_p5), %s394_s30, 16, %s396_s18, [#allocation5]  }
  0x11   : > { %s423_s21 = sshll.u32 %s1660_s9, 4  ;;  %s1665_s28 = smov (%p40_p6, %s38_s28), 0  ;;  %s424_s21 = int_to_ptr.hbm [resolvable:$true] %s423_s21 }
  0x12   : > { %1151 = dma.hbm_to_vmem [thread:$0]  (!%p1522_p5), %s424_s21, 16, %s426_s24, [#allocation8]  }
  0x13   : > { %s383_s20 = sshll.u32 %s1408_s19, 4  ;;  %s408_s9 = sshll.u32 %s1648_s7, 4  ;;  %s384_s20 = int_to_ptr.vmem [resolvable:$true] %s383_s20  ;;  %s409_s9 = int_to_ptr.hbm [resolvable:$true] %s408_s9 }
  0x14   : > { %1142 = dma.hbm_to_vmem [thread:$0]  (!%p1522_p5), %s382_s17, 16, %s384_s20, [#allocation3]  }
  0x15   : > { %s438_s21 = sshll.u32 %s1652_s11, 4  ;;  %s1409_s24 = smov [#allocation6]   ;;  %s439_s21 = int_to_ptr.hbm [resolvable:$true] %s438_s21 }
  0x16   : > { %s410_s29 = sshll.u32 %s1409_s24, 4  ;;  %s1410_s14 = smov [#allocation9]   ;;  %s411_s29 = int_to_ptr.vmem [resolvable:$true] %s410_s29 }
  0x17   : > { %1148 = dma.hbm_to_vmem [thread:$0]  (!%p1522_p5), %s409_s9, 16, %s411_s29, [#allocation5]  }
  0x18   : > { %s440_s19 = sshll.u32 %s1410_s14, 4  ;;  %481 = sbr.rel (%p1511_p3) target bundleno = 1622 (0x656), region = 72  ;;  %s441_s19 = int_to_ptr.vmem [resolvable:$true] %s440_s19 }
  0x19   : > { %1154 = dma.hbm_to_vmem [thread:$0]  (!%p1522_p5), %s439_s21, 16, %s441_s19, [#allocation8]  }
  0x1d   : > { %1383 = dma.done.wait (%p1507_p2), [#allocation3], 16  }
  0x1e   : > { %1385 = vsyncadd (%p1507_p2), [#allocation3], 4294967280 }
  0x1f   : > { %1387 = dma.done.wait (%p1507_p2), [#allocation5], 32  }
  0x20   : > { %1389 = vsyncadd (%p1507_p2), [#allocation5], 4294967264 }
  0x21   : > { %1391 = dma.done.wait (%p1507_p2), [#allocation8], 32  }
  0x22   : > { %1393 = vsyncadd (%p1507_p2), [#allocation8], 4294967264  ;;  %p562_p7 = scmp.lt.s32.totalorder %s1396_s25, 1  ;;  %vm633_vm0 = vcmask 261120   ;;  %vm593_vm1 = vcmask 259072   ;;  %v1411_v4 = vmov 32.0  }
  0x23   : > { %1206 = vrcp.f32 %v1411_v4  ;;  %v1116_v21 = vld [vmem:[%s1649_s8 + $0x8] sm:$0xff]  ;;  %v1115_v22 = vld [vmem:[%s1649_s8] sm:$0xff]  ;;  %vm742_vm9 = vcmask 130048   ;;  %s1412_s17 = smov 96   ;;  %s1413_s20 = smov 112   ;;  %vm782_vm10 = vcmask 1043456  }
  0x24   : > { %s1667_s25 = smov (!%p562_p7, %s1396_s25), 1  ;;  %731 = vmatpush.bf16.msra.mxu1 %v1116_v21  ;;  %v1114_v23 = vld [vmem:[%s1647_s6 + $0x8] sm:$0xff]  ;;  %v1113_v25 = vld [vmem:[%s1647_s6] sm:$0xff]  ;;  %vm762_vm11 = vcmask 62464   ;;  %vm778_vm12 = vcmask 64512   ;;  %s1415_s14 = smov 16  }
  0x25   : > { %s1564_s5 = sshll.u32 %s1667_s25, 3  ;;  %694 = vmatpush.bf16.msra.mxu0 %v1114_v23  ;;  %v1199_v39 = vld [vmem:[#allocation2] ss:$0 sm:$0xff]  ;;  %v1200_v43 = vld [vmem:[#allocation4] ss:$0 sm:$0xff] }
  0x26   : > { %s572_s22 = scalar_lea.vmem %s1642_s1, %s1564_s5  ;;  %s568_s15 = scalar_lea.vmem %s1641_s0, %s1564_s5  ;;  %v1201_v50 = vld [vmem:[%s1643_s2] ss:$0 sm:$0xff]  ;;  %v1203_v57 = vld [vmem:[#allocation7] ss:$0 sm:$0xff]  ;;  %v1204_v62 = vld [vmem:[#allocation6] ss:$0 sm:$0xff] }
  0x27   : > { %v590_v0 = vld [vmem:[%s572_s22] sm:$0xff]  ;;  %s580_s30 = scalar_lea.vmem %s1653_s12, %s1564_s5  ;;  %s587_s16 = scalar_lea.vmem %s1654_s13, %s1564_s5 }
  0x28   : > { %v634_v1 = vsel %vm633_vm0, %v590_v0, 0.0  ;;  %v1575_v2 = vld [vmem:[%s568_s15] sm:$0x3f]  ;;  %732 = vmatpush.bf16.msra.mxu1 %v1115_v22  ;;  %s1414_s15 = smov 80  }
  0x29   : > { %635 = vadd.xlane.f32.xlu0 %v634_v1  ;;  %v594_v3 = vsel %vm593_vm1, %v1575_v2, 0.0  ;;  %v1207_v5 = vpop.eup %1206  ;;  %695 = vmatpush.bf16.msra.mxu0 %v1113_v25  ;;  %v1202_v53 = vld [vmem:[%s1644_s3] ss:$0 sm:$0xff] }
  0x2a   : > { %v598_v6 = vmul.f32 32.0, %v1207_v5  ;;  %vm602_vm2 = vweird.f32 %v1207_v5 }
  0x2c   : > { %v599_v7 = vsub.f32 1.0, %v598_v6 }
  0x2e   : > { %v600_v8 = vmul.f32 %v1207_v5, %v599_v7 }
  0x30   : > { %v601_v9 = vadd.f32 %v1207_v5, %v600_v8 }
  0x31   : > { %595 = vadd.xlane.f32.xlu0 %v594_v3 }
  0x32   : > { %v603_v10 = vsel %vm602_vm2, %v1207_v5, %v601_v9 }
  0x9c   : > { %v636_v11 = vpop.xlane.xlu0 %635 }
  0x9d   : > { %v637_v12 = vmul.f32 %v636_v11, %v603_v10  ;;  %v740_v11 = vld [vmem:[%s580_s30] sm:$0x7] }
  0x9f   : > { %v638_v13 = vsub.f32 %v590_v0, %v637_v12  ;;  %v741_v12 = vunpack.c.l.bf16 %v740_v11 }
  0xa1   : > { %v639_v14 = vmul.f32 %v638_v13, %v638_v13 }
  0xa3   : > { %v640_v15 = vsel %vm633_vm0, %v639_v14, 0.0 }
  0xa4   : > { %641 = vadd.xlane.f32.xlu1 %v640_v15  ;;  %v596_v16 = vpop.xlane.xlu0 %595 }
  0xa5   : > { %v604_v17 = vmul.f32 %v603_v10, %v596_v16 }
  0xa7   : > { %v605_v18 = vsub.f32 %v1575_v2, %v604_v17 }
  0xa9   : > { %v606_v19 = vmul.f32 %v605_v18, %v605_v18 }
  0xab   : > { %v607_v20 = vsel %vm593_vm1, %v606_v19, 0.0 }
  0xac   : > { %608 = vadd.xlane.f32.xlu1 %v607_v20 }
 0x117   : > { %v642_v24 = vpop.xlane.xlu1 %641 }
 0x118   : > { %v643_v26 = vmul.f32 %v642_v24, %v603_v10 }
 0x11a   : > { %v644_v27 = vadd.f32 1e-05, %v643_v26 }
 0x11c   : > { %1208 = vrsqrt.f32 %v644_v27  ;;  %vm651_vm4 = vweird.f32 %v644_v27 }
 0x11f   : > { %v609_v28 = vpop.xlane.xlu1 %608 }
 0x120   : > { %v610_v29 = vmul.f32 %v609_v28, %v603_v10 }
 0x122   : > { %v1209_v30 = vpop.eup %1208  ;;  %v611_v31 = vadd.f32 1e-05, %v610_v29  ;;  %v1098_v29 = vld [vmem:[%s580_s30 + $0x4] sm:$0x7] }
 0x123   : > { %v646_v32 = vmul.f32 %v1209_v30, %v644_v27  ;;  %vm652_vm3 = vweird.f32 %v1209_v30 }
 0x124   : > { %1210 = vrsqrt.f32 %v611_v31  ;;  %vm653_vm5 = vmor %vm651_vm4, %vm652_vm3  ;;  %vm618_vm7 = vweird.f32 %v611_v31 }
 0x125   : > { %v647_v33 = vmul.f32 %v1209_v30, %v646_v32 }
 0x127   : > { %v648_v34 = vmul.f32 0.5, %v647_v33 }
 0x129   : > { %v649_v35 = vsub.f32 1.5, %v648_v34 }
 0x12a   : > { %v1211_v36 = vpop.eup %1210 }
 0x12b   : > { %v650_v37 = vmul.f32 %v1209_v30, %v649_v35  ;;  %v613_v38 = vmul.f32 %v1211_v36, %v611_v31  ;;  %vm619_vm6 = vweird.f32 %v1211_v36 }
 0x12c   : > { %vm620_vm8 = vmor %vm618_vm7, %vm619_vm6 }
 0x12d   : > { %v654_v40 = vsel %vm653_vm5, %v1209_v30, %v650_v37  ;;  %v614_v41 = vmul.f32 %v1211_v36, %v613_v38  ;;  %v801_v30 = vunpack.c.l.bf16 %v1098_v29 }
 0x12e   : > { %v655_v42 = vmul.f32 %v654_v40, %v638_v13 }
 0x12f   : > { %v615_v44 = vmul.f32 0.5, %v614_v41 }
 0x130   : > { %v659_v45 = vmul.f32 %v1199_v39, %v655_v42 }
 0x131   : > { %v616_v46 = vsub.f32 1.5, %v615_v44  ;;  %v1118_v44 = vld [vmem:[%s1651_s10 + $0x8] sm:$0xff] }
 0x132   : > { %v663_v47 = vadd.f32 %v1200_v43, %v659_v45  ;;  %894 = vmatpush.bf16.msrb.mxu1 %v1118_v44  ;;  %v1117_v45 = vld [vmem:[%s1651_s10] sm:$0xff] }
 0x133   : > { %v617_v48 = vmul.f32 %v1211_v36, %v616_v46 }
 0x134   : > { %v701_v49 = vpack.c.bf16 %v663_v47, %v663_v47 }
 0x135   : > { %v621_v51 = vsel %vm620_vm8, %v1211_v36, %v617_v48 }
 0x136   : > { %1095 = vmatmul.msk.bf16.vlgmr.msra.gmra.mxu1 %vm633_vm0, %v701_v49  ;;  %v622_v52 = vmul.f32 %v621_v51, %v605_v18  ;;  %v1205_v51 = vld [vmem:[#allocation9] ss:$0 sm:$0xff] }
 0x137   : > { %895 = vmatpush.bf16.msrb.mxu1 %v1117_v45 }
 0x138   : > { %v626_v54 = vmul.f32 %v1201_v50, %v622_v52 }
 0x13a   : > { %v630_v55 = vadd.f32 %v1202_v53, %v626_v54 }
 0x13c   : > { %v664_v56 = vpack.c.bf16 %v630_v55, %v630_v55 }
 0x13e   : > { %1086 = vmatmul.msk.bf16.vlgmr.msra.gmra.mxu0 %vm633_vm0, %v664_v56 }
 0x1b3   : > { %v734_v58 = vpop.f32.mrf.mxu1 }
 0x1b4   : > { %v735_v59 = vadd.f32 %v1203_v57, %v734_v58 }
 0x1b6   : > { %v739_v60 = vpack.c.bf16 %v735_v59, %v735_v59 }
 0x1b8   : > { %776 = vrot.lane.b32.xlu0 %v739_v60, %s1412_s17  ;;  %805 = vrot.lane.b32.xlu1 %v739_v60, %s1413_s20  ;;  %v747_v61 = vsel %vm742_vm9, %v739_v60, 0 }
 0x1b9   : > { %756 = vmatpush.bf16.xpose.msra.mxu2 %v747_v61 }
 0x1bb   : > { %v697_v63 = vpop.f32.mrf.mxu0  ;;  %v736_v0 = vpop.f32.mrf.mxu1 }
 0x1bc   : > { %v698_v1 = vadd.f32 %v1204_v62, %v697_v63 }
 0x1be   : > { %v738_v3 = vpack.c.bf16 %v698_v1, %v698_v1 }
 0x1c0   : > { %838 = vrot.lane.b32.xlu1 %v739_v60, %s1414_s15  ;;  %1096 = vmatmul.msk.bf16.vlgmr.msra.gmra.mxu2 %vm742_vm9, %v738_v3 }
 0x1c3   : > { %v699_v4 = vpop.f32.mrf.mxu0 }
 0x22a   : > { %v806_v5 = vpop.permute.xlu1 %805  ;;  %v777_v6 = vpop.permute.xlu0 %776 }
 0x22b   : > { %v784_v7 = vsel %vm782_vm10, %v777_v6, 0  ;;  %v811_v8 = vsel %vm742_vm9, %v806_v5, 0 }
 0x22c   : > { %793 = vmatpush.bf16.msra.mxu3 %v784_v7 }
 0x230   : > { %820 = vmatpush.bf16.xpose.msrb.mxu3 %v811_v8 }
 0x232   : > { %v839_v9 = vpop.permute.xlu1 %838 }
 0x233   : > { %v844_v10 = vsel %vm782_vm10, %v839_v9, 0 }
 0x234   : > { %853 = vmatpush.bf16.msrb.mxu0 %v844_v10 }
 0x243   : > { %v758_v13 = vpop.f32.mrf.mxu2 }
 0x244   : > { %v759_v14 = vadd.f32 %v758_v13, %v741_v12 }
 0x246   : > { %v763_v15 = vsel %vm762_vm11, %v759_v14, -inf }
 0x247   : > { %764 = vmax.xlane.f32.xlu2 %v763_v15 }
 0x24b   : > { %v760_v16 = vpop.f32.mrf.mxu2 }
 0x2ba   : > { %v765_v17 = vpop.xlane.xlu2 %764 }
 0x2bb   : > { %v766_v18 = vsub.f32 %v759_v14, %v765_v17 }
 0x2bd   : > { %v767_v19 = vmul.f32 1.442695, %v766_v18 }
 0x2bf   : > { %1212 = vpow2.f32 %v767_v19 }
 0x2c5   : > { %v1213_v20 = vpop.eup %1212 }
 0x2c6   : > { %v769_v21 = vsel %vm762_vm11, %v1213_v20, 0.0 }
 0x2c7   : > { %770 = vadd.xlane.f32.xlu2 %v769_v21 }
 0x2df   : > { %803 = vrot.lane.b32.xlu2 %v738_v3, %s1413_s20 }
 0x33a   : > { %v771_v22 = vpop.xlane.xlu2 %770 }
 0x33b   : > { %1214 = vrcp.f32 %v771_v22 }
 0x341   : > { %v1215_v23 = vpop.eup %1214 }
 0x342   : > { %v773_v24 = vmul.f32 %v1215_v23, %v1213_v20  ;;  %v804_v26 = vpop.permute.xlu2 %803 }
 0x344   : > { %v774_v25 = vpack.c.bf16 %v773_v24, %v773_v24 }
 0x346   : > { %1097 = vmatmul.msk.bf16.vlgmr.msra.gmra.mxu3 %vm778_vm12, %v774_v25 }
 0x356   : > { %1099 = vmatmul.msk.bf16.vlgmr.msrb.gmra.mxu3 %vm742_vm9, %v804_v26 }
 0x3c9   : > { %v795_v27 = vpop.f32.mrf.mxu3 }
 0x3d1   : > { %v797_v28 = vpop.f32.mrf.mxu3 }
 0x3d9   : > { %v822_v31 = vpop.f32.mrf.mxu3 }
 0x3da   : > { %v823_v32 = vadd.f32 %v822_v31, %v801_v30 }
 0x3dc   : > { %v826_v33 = vsel %vm762_vm11, %v823_v32, -inf }
 0x3dd   : > { %827 = vmax.xlane.f32.xlu0 %v826_v33 }
 0x3e1   : > { %v824_v34 = vpop.f32.mrf.mxu3 }
 0x450   : > { %v828_v35 = vpop.xlane.xlu0 %827 }
 0x451   : > { %v829_v36 = vsub.f32 %v823_v32, %v828_v35 }
 0x453   : > { %v830_v37 = vmul.f32 1.442695, %v829_v36 }
 0x455   : > { %1216 = vpow2.f32 %v830_v37 }
 0x45b   : > { %v1217_v38 = vpop.eup %1216 }
 0x45c   : > { %v832_v39 = vsel %vm762_vm11, %v1217_v38, 0.0 }
 0x45d   : > { %833 = vadd.xlane.f32.xlu2 %v832_v39 }
 0x4d0   : > { %v834_v40 = vpop.xlane.xlu2 %833 }
 0x4d1   : > { %1218 = vrcp.f32 %v834_v40 }
 0x4d7   : > { %v1219_v41 = vpop.eup %1218 }
 0x4d8   : > { %v836_v42 = vmul.f32 %v1219_v41, %v1217_v38 }
 0x4da   : > { %v837_v43 = vpack.c.bf16 %v836_v42, %v836_v42 }
 0x4dc   : > { %1100 = vmatmul.msk.bf16.vlgmr.msrb.gmra.mxu0 %vm778_vm12, %v837_v43 }
 0x559   : > { %v855_v46 = vpop.f32.mrf.mxu0 }
 0x55a   : > { %860 = vrot.lane.b32.xlu1 %v855_v46, %s1415_s14 }
 0x561   : > { %v857_v47 = vpop.f32.mrf.mxu0 }
 0x5cc   : > { %v861_v48 = vpop.permute.xlu1 %860 }
 0x5cd   : > { %v863_v49 = vsel %vm742_vm9, %v795_v27, %v861_v48 }
 0x5ce   : > { %v864_v50 = vpack.c.bf16 %v863_v49, %v863_v49 }
 0x5d0   : > { %1109 = vmatmul.msk.bf16.vlgmr.msrb.gmra.mxu1 %vm633_vm0, %v864_v50 }
 0x64d   : > { %v897_v52 = vpop.f32.mrf.mxu1 }
 0x64e   : > { %v898_v53 = vadd.f32 %v1205_v51, %v897_v52 }
 0x650   : > { %v901_v54 = vadd.f32 %v898_v53, %v1575_v2 }
 0x652   : > { %902 = vst.msk [vmem:[%s587_s16] sm:$0x3f] %vm593_vm1, %v901_v54 }
 0x655   : > { %v899_v55 = vpop.f32.mrf.mxu1 }
 0x656 PF: > { %s26_s27 = sadd.s32 1, %s1404_s27   ;;  %s1662_s25 = smov %s1400_s26 }
 0x657   : > { %p23_p8 = scmp.ge.s32.totalorder %s26_s27, 4   ;;  %s1663_s26 = smov %s1665_s28 }
 0x659   :  { %25 = sbr.rel (!%p23_p8) target bundleno = 7 (0x7), region = 130 }
 0x65e   :  { %928 = vsyncpa [#allocation3], 1 }
 0x65f   :  { %930 = vsyncpa [#allocation3 + $0x1], 1 }
 0x660   :  { %931 = vsyncpa [#allocation5], 1 }
 0x661   :  { %932 = vsyncpa [#allocation8], 1 }

// kernel: encoder_forward.16
= control target key start
LH: loop header
LB: loop body
LE: loop exit
PB: predicated region body
PF: predicated region fallthrough
CT: control target
= control target key end

     0   :  { %s1133_s25 = smov 0   ;;  %s1135_s26 = smov 0   ;;  %s1243_s0 = inlined_call_operand.vmem [shape: f32[2,8,32], index: 0, kind: input, shape index: {}]   ;;  %s1244_s1 = inlined_call_operand.vmem [shape: f32[2,6,32], index: 1, kind: input, shape index: {}]   ;;  %s1245_s2 = inlined_call_operand.vmem [shape: f32[1,32], index: 2, kind: input, shape index: {}]   ;;  %s1246_s3 = inlined_call_operand.vmem [shape: f32[1,32], index: 3, kind: input, shape index: {}]   ;;  %s1247_s4 = inlined_call_operand.vmem [shape: f32[1,32], index: 4, kind: input, shape index: {}]   ;;  %s1248_s5 = inlined_call_operand.vmem [shape: f32[1,32], index: 5, kind: input, shape index: {}]   ;;  %s1249_s6 = inlined_call_operand.vmem [shape: bf16[32,32], index: 6, kind: input, shape index: {}]   ;;  %s1250_s7 = inlined_call_operand.vmem [shape: f32[1,32], index: 7, kind: input, shape index: {}]   ;;  %s1251_s8 = inlined_call_operand.vmem [shape: bf16[32,64], index: 8, kind: input, shape index: {}]   ;;  %s1252_s9 = inlined_call_operand.vmem [shape: f32[1,64], index: 9, kind: input, shape index: {}]   ;;  %s1253_s10 = inlined_call_operand.vmem [shape: bf16[32,32], index: 10, kind: input, shape index: {}]   ;;  %s1254_s11 = inlined_call_operand.vmem [shape: f32[1,32], index: 11, kind: input, shape index: {}]   ;;  %s1255_s12 = inlined_call_operand.vmem [shape: bf16[2,2,8,6], index: 12, kind: input, shape index: {}]   ;;  %s1256_s13 = inlined_call_operand.vmem [shape: f32[2,8,32], index: 13, kind: output, shape index: {}]  }
   0x1   :  { %s1137_s27 = smov 0  }
   0x2 LB: > { %s35_s28 = sadd.s32 1, %s1052_s26  ;;  %p937_p0 = scmp.ge.s32.totalorder %s1056_s27, 1  ;;  %s1056_s27 = sphi %s1137_s27, %s23_s27   ;;  %s1052_s26 = sphi %s1135_s26, %s1258_s26   ;;  %s1048_s25 = sphi %s1133_s25, %s1257_s25  }
   0x3   : > { %p37_p1 = scmp.ge.s32.totalorder %s35_s28, 2  ;;  %p429_p2 = scmp.lt.s32.totalorder %s1056_s27, 3 }
   0x5   : > { %s1260_s28 = smov (%p37_p1, %s35_s28), 0  ;;  %p430_p3 = pnand %p937_p0, %p429_p2 }
   0x6   : > { %p489_p4 = scmp.lt.s32.totalorder (!%p430_p3), %s1048_s25, 1  ;;  %s1059_s24 = smov (!%p430_p3), 96  }
   0x7   : > { %433 = sbr.rel (%p430_p3) target bundleno = 1598 (0x63e), region = 72  ;;  %s1062_s23 = smov (!%p430_p3), 16  }
   0xc   : > { %s1262_s25 = smov (!%p489_p4, %s1048_s25), 1  ;;  %vm560_vm0 = vcmask 259072   ;;  %vm520_vm1 = vcmask 261120   ;;  %v1058_v4 = vmov 32.0   ;;  %v981_v21 = vld [vmem:[%s1251_s8 + $0x8] sm:$0xff]  ;;  %v980_v22 = vld [vmem:[%s1251_s8] sm:$0xff] }
   0xd   : > { %s1151_s29 = sshll.u32 %s1262_s25, 3  ;;  %1020 = vrcp.f32 %v1058_v4  ;;  %658 = vmatpush.bf16.msra.mxu1 %v981_v21  ;;  %v979_v23 = vld [vmem:[%s1249_s6 + $0x8] sm:$0xff]  ;;  %v978_v25 = vld [vmem:[%s1249_s6] sm:$0xff]  ;;  %vm669_vm9 = vcmask 130048   ;;  %s1060_s25 = smov 112   ;;  %vm708_vm10 = vcmask 1042432  }
   0xe   : > { %s499_s15 = scalar_lea.vmem %s1244_s1, %s1151_s29  ;;  %s495_s18 = scalar_lea.vmem %s1243_s0, %s1151_s29  ;;  %621 = vmatpush.bf16.msra.mxu0 %v979_v23  ;;  %v1013_v39 = vld [vmem:[%s1247_s4] ss:$0 sm:$0xff]  ;;  %vm689_vm11 = vcmask 48128  }
   0xf   : > { %v517_v0 = vld [vmem:[%s499_s15] sm:$0x3f]  ;;  %s1061_s15 = smov 80  }
  0x10   : > { %v561_v1 = vsel %vm560_vm0, %v517_v0, 0.0  ;;  %v1162_v2 = vld [vmem:[%s495_s18] sm:$0xff]  ;;  %s507_s18 = scalar_lea.vmem %s1255_s12, %s1151_s29 }
  0x11   : > { %562 = vadd.xlane.f32.xlu0 %v561_v1  ;;  %v521_v3 = vsel %vm520_vm1, %v1162_v2, 0.0  ;;  %659 = vmatpush.bf16.msra.mxu1 %v980_v22  ;;  %v1014_v43 = vld [vmem:[%s1248_s5] ss:$0 sm:$0xff] }
  0x12   : > { %622 = vmatpush.bf16.msra.mxu0 %v978_v25  ;;  %v1015_v50 = vld [vmem:[%s1245_s2] ss:$0 sm:$0xff] }
  0x13   : > { %v1021_v5 = vpop.eup %1020  ;;  %v1016_v53 = vld [vmem:[%s1246_s3] ss:$0 sm:$0xff] }
  0x14   : > { %v525_v6 = vmul.f32 32.0, %v1021_v5  ;;  %vm529_vm2 = vweird.f32 %v1021_v5  ;;  %v1017_v57 = vld [vmem:[%s1252_s9] ss:$0 sm:$0xff] }
  0x15   : > { %v1018_v62 = vld [vmem:[%s1250_s7] ss:$0 sm:$0xff] }
  0x16   : > { %v526_v7 = vsub.f32 1.0, %v525_v6 }
  0x18   : > { %v527_v8 = vmul.f32 %v1021_v5, %v526_v7 }
  0x19   : > { %522 = vadd.xlane.f32.xlu0 %v521_v3 }
  0x1a   : > { %v528_v9 = vadd.f32 %v1021_v5, %v527_v8 }
  0x1c   : > { %v530_v10 = vsel %vm529_vm2, %v1021_v5, %v528_v9 }
  0x84   : > { %v563_v11 = vpop.xlane.xlu0 %562 }
  0x85   : > { %v564_v12 = vmul.f32 %v563_v11, %v530_v10  ;;  %v667_v11 = vld [vmem:[%s507_s18] sm:$0xff]  }
  0x87   : > { %v565_v13 = vsub.f32 %v517_v0, %v564_v12  ;;  %v668_v12 = vunpack.c.l.bf16 %v667_v11 }
  0x89   : > { %v566_v14 = vmul.f32 %v565_v13, %v565_v13 }
  0x8b   : > { %v567_v15 = vsel %vm560_vm0, %v566_v14, 0.0 }
  0x8c   : > { %568 = vadd.xlane.f32.xlu1 %v567_v15  ;;  %v523_v16 = vpop.xlane.xlu0 %522 }
  0x8d   : > { %v531_v17 = vmul.f32 %v530_v10, %v523_v16 }
  0x8f   : > { %v532_v18 = vsub.f32 %v1162_v2, %v531_v17 }
  0x91   : > { %v533_v19 = vmul.f32 %v532_v18, %v532_v18 }
  0x93   : > { %v534_v20 = vsel %vm520_vm1, %v533_v19, 0.0 }
  0x94   : > { %535 = vadd.xlane.f32.xlu1 %v534_v20 }
  0xff   : > { %v569_v24 = vpop.xlane.xlu1 %568 }
 0x100   : > { %v570_v26 = vmul.f32 %v569_v24, %v530_v10 }
 0x102   : > { %v571_v27 = vadd.f32 1e-05, %v570_v26 }
 0x104   : > { %1022 = vrsqrt.f32 %v571_v27  ;;  %vm578_vm4 = vweird.f32 %v571_v27 }
 0x107   : > { %v536_v28 = vpop.xlane.xlu1 %535 }
 0x108   : > { %v537_v29 = vmul.f32 %v536_v28, %v530_v10 }
 0x10a   : > { %v1023_v30 = vpop.eup %1022  ;;  %v538_v31 = vadd.f32 1e-05, %v537_v29  ;;  %v727_v29 = vunpack.c.h.bf16 %v667_v11 }
 0x10b   : > { %v573_v32 = vmul.f32 %v1023_v30, %v571_v27  ;;  %vm579_vm3 = vweird.f32 %v1023_v30 }
 0x10c   : > { %1024 = vrsqrt.f32 %v538_v31  ;;  %vm580_vm5 = vmor %vm578_vm4, %vm579_vm3  ;;  %vm545_vm7 = vweird.f32 %v538_v31 }
 0x10d   : > { %v574_v33 = vmul.f32 %v1023_v30, %v573_v32 }
 0x10f   : > { %v575_v34 = vmul.f32 0.5, %v574_v33 }
 0x111   : > { %v576_v35 = vsub.f32 1.5, %v575_v34 }
 0x112   : > { %v1025_v36 = vpop.eup %1024 }
 0x113   : > { %v577_v37 = vmul.f32 %v1023_v30, %v576_v35  ;;  %v540_v38 = vmul.f32 %v1025_v36, %v538_v31  ;;  %vm546_vm6 = vweird.f32 %v1025_v36 }
 0x114   : > { %vm547_vm8 = vmor %vm545_vm7, %vm546_vm6 }
 0x115   : > { %v581_v40 = vsel %vm580_vm5, %v1023_v30, %v577_v37  ;;  %v541_v41 = vmul.f32 %v1025_v36, %v540_v38 }
 0x116   : > { %v582_v42 = vmul.f32 %v581_v40, %v565_v13 }
 0x117   : > { %v542_v44 = vmul.f32 0.5, %v541_v41 }
 0x118   : > { %v586_v45 = vmul.f32 %v1013_v39, %v582_v42 }
 0x119   : > { %v543_v46 = vsub.f32 1.5, %v542_v44  ;;  %v982_v44 = vld [vmem:[%s1253_s10] sm:$0xff] }
 0x11a   : > { %v590_v47 = vadd.f32 %v1014_v43, %v586_v45  ;;  %v983_v43 = vld [vmem:[%s1253_s10 + $0x8] sm:$0xff] }
 0x11b   : > { %v544_v48 = vmul.f32 %v1025_v36, %v543_v46  ;;  %820 = vmatpush.bf16.msrb.mxu1 %v983_v43 }
 0x11c   : > { %v628_v49 = vpack.c.bf16 %v590_v47, %v590_v47 }
 0x11d   : > { %v548_v51 = vsel %vm547_vm8, %v1025_v36, %v544_v48 }
 0x11e   : > { %960 = vmatmul.msk.bf16.vlgmr.msra.gmra.mxu1 %vm520_vm1, %v628_v49  ;;  %v549_v52 = vmul.f32 %v548_v51, %v532_v18 }
 0x11f   : > { %821 = vmatpush.bf16.msrb.mxu1 %v982_v44 }
 0x120   : > { %v553_v54 = vmul.f32 %v1015_v50, %v549_v52  ;;  %v1019_v50 = vld [vmem:[%s1254_s11] ss:$0 sm:$0xff] }
 0x122   : > { %v557_v55 = vadd.f32 %v1016_v53, %v553_v54 }
 0x124   : > { %v591_v56 = vpack.c.bf16 %v557_v55, %v557_v55 }
 0x126   : > { %951 = vmatmul.msk.bf16.vlgmr.msra.gmra.mxu0 %vm520_vm1, %v591_v56 }
 0x19b   : > { %v661_v58 = vpop.f32.mrf.mxu1 }
 0x19c   : > { %v662_v59 = vadd.f32 %v1017_v57, %v661_v58 }
 0x19e   : > { %v666_v60 = vpack.c.bf16 %v662_v59, %v662_v59 }
 0x1a0   : > { %703 = vrot.lane.b32.xlu0 %v666_v60, %s1059_s24  ;;  %731 = vrot.lane.b32.xlu1 %v666_v60, %s1060_s25  ;;  %v674_v61 = vsel %vm669_vm9, %v666_v60, 0 }
 0x1a1   : > { %683 = vmatpush.bf16.xpose.msra.mxu2 %v674_v61 }
 0x1a3   : > { %v624_v63 = vpop.f32.mrf.mxu0  ;;  %v663_v0 = vpop.f32.mrf.mxu1 }
 0x1a4   : > { %v625_v1 = vadd.f32 %v1018_v62, %v624_v63 }
 0x1a6   : > { %v665_v3 = vpack.c.bf16 %v625_v1, %v625_v1 }
 0x1a8   : > { %764 = vrot.lane.b32.xlu1 %v666_v60, %s1061_s15  ;;  %961 = vmatmul.msk.bf16.vlgmr.msra.gmra.mxu2 %vm669_vm9, %v665_v3  ;;  %s514_s15 = scalar_lea.vmem %s1256_s13, %s1151_s29 }
 0x1ab   : > { %v626_v4 = vpop.f32.mrf.mxu0 }
 0x212   : > { %v732_v5 = vpop.permute.xlu1 %731  ;;  %v704_v6 = vpop.permute.xlu0 %703 }
 0x213   : > { %v710_v7 = vsel %vm708_vm10, %v704_v6, 0  ;;  %v737_v8 = vsel %vm669_vm9, %v732_v5, 0 }
 0x214   : > { %719 = vmatpush.bf16.msra.mxu3 %v710_v7 }
 0x218   : > { %746 = vmatpush.bf16.xpose.msrb.mxu3 %v737_v8 }
 0x21a   : > { %v765_v9 = vpop.permute.xlu1 %764 }
 0x21b   : > { %v770_v10 = vsel %vm708_vm10, %v765_v9, 0 }
 0x21c   : > { %779 = vmatpush.bf16.msrb.mxu0 %v770_v10 }
 0x22b   : > { %v685_v13 = vpop.f32.mrf.mxu2 }
 0x22c   : > { %v686_v14 = vadd.f32 %v685_v13, %v668_v12 }
 0x22e   : > { %v690_v15 = vsel %vm689_vm11, %v686_v14, -inf }
 0x22f   : > { %691 = vmax.xlane.f32.xlu2 %v690_v15 }
 0x233   : > { %v687_v16 = vpop.f32.mrf.mxu2 }
 0x2a2   : > { %v692_v17 = vpop.xlane.xlu2 %691 }
 0x2a3   : > { %v693_v18 = vsub.f32 %v686_v14, %v692_v17 }
 0x2a5   : > { %v694_v19 = vmul.f32 1.442695, %v693_v18 }
 0x2a7   : > { %1026 = vpow2.f32 %v694_v19 }
 0x2ad   : > { %v1027_v20 = vpop.eup %1026 }
 0x2ae   : > { %v696_v21 = vsel %vm689_vm11, %v1027_v20, 0.0 }
 0x2af   : > { %697 = vadd.xlane.f32.xlu2 %v696_v21 }
 0x2c7   : > { %729 = vrot.lane.b32.xlu2 %v665_v3, %s1060_s25 }
 0x322   : > { %v698_v22 = vpop.xlane.xlu2 %697 }
 0x323   : > { %1028 = vrcp.f32 %v698_v22 }
 0x329   : > { %v1029_v23 = vpop.eup %1028 }
 0x32a   : > { %v700_v24 = vmul.f32 %v1029_v23, %v1027_v20  ;;  %v730_v26 = vpop.permute.xlu2 %729 }
 0x32c   : > { %v701_v25 = vpack.c.bf16 %v700_v24, %v700_v24 }
 0x32e   : > { %962 = vmatmul.msk.bf16.vlgmr.msra.gmra.mxu3 %vm689_vm11, %v701_v25 }
 0x33e   : > { %964 = vmatmul.msk.bf16.vlgmr.msrb.gmra.mxu3 %vm669_vm9, %v730_v26 }
 0x3b1   : > { %v721_v27 = vpop.f32.mrf.mxu3 }
 0x3b9   : > { %v723_v28 = vpop.f32.mrf.mxu3 }
 0x3c1   : > { %v748_v30 = vpop.f32.mrf.mxu3 }
 0x3c2   : > { %v749_v31 = vadd.f32 %v748_v30, %v727_v29 }
 0x3c4   : > { %v752_v32 = vsel %vm689_vm11, %v749_v31, -inf }
 0x3c5   : > { %753 = vmax.xlane.f32.xlu0 %v752_v32 }
 0x3c9   : > { %v750_v33 = vpop.f32.mrf.mxu3 }
 0x438   : > { %v754_v34 = vpop.xlane.xlu0 %753 }
 0x439   : > { %v755_v35 = vsub.f32 %v749_v31, %v754_v34 }
 0x43b   : > { %v756_v36 = vmul.f32 1.442695, %v755_v35 }
 0x43d   : > { %1030 = vpow2.f32 %v756_v36 }
 0x443   : > { %v1031_v37 = vpop.eup %1030 }
 0x444   : > { %v758_v38 = vsel %vm689_vm11, %v1031_v37, 0.0 }
 0x445   : > { %759 = vadd.xlane.f32.xlu2 %v758_v38 }
 0x4b8   : > { %v760_v39 = vpop.xlane.xlu2 %759 }
 0x4b9   : > { %1032 = vrcp.f32 %v760_v39 }
 0x4bf   : > { %v1033_v40 = vpop.eup %1032 }
 0x4c0   : > { %v762_v41 = vmul.f32 %v1033_v40, %v1031_v37 }
 0x4c2   : > { %v763_v42 = vpack.c.bf16 %v762_v41, %v762_v41 }
 0x4c4   : > { %965 = vmatmul.msk.bf16.vlgmr.msrb.gmra.mxu0 %vm689_vm11, %v763_v42 }
 0x541   : > { %v781_v45 = vpop.f32.mrf.mxu0 }
 0x542   : > { %786 = vrot.lane.b32.xlu1 %v781_v45, %s1062_s23 }
 0x549   : > { %v783_v46 = vpop.f32.mrf.mxu0 }
 0x5b4   : > { %v787_v47 = vpop.permute.xlu1 %786 }
 0x5b5   : > { %v789_v48 = vsel %vm669_vm9, %v721_v27, %v787_v47 }
 0x5b6   : > { %v790_v49 = vpack.c.bf16 %v789_v48, %v789_v48 }
 0x5b8   : > { %974 = vmatmul.msk.bf16.vlgmr.msrb.gmra.mxu1 %vm520_vm1, %v790_v49 }
 0x635   : > { %v823_v51 = vpop.f32.mrf.mxu1 }
 0x636   : > { %v824_v52 = vadd.f32 %v1019_v50, %v823_v51 }
 0x638   : > { %v827_v53 = vadd.f32 %v824_v52, %v1162_v2 }
 0x63a   : > { %828 = vst.msk [vmem:[%s514_s15] sm:$0xff] %vm520_vm1, %v827_v53 }
 0x63d   : > { %v825_v54 = vpop.f32.mrf.mxu1 }
 0x63e PF: > { %s23_s27 = sadd.s32 1, %s1056_s27   ;;  %s1257_s25 = smov %s1052_s26 }
 0x63f   : > { %p20_p5 = scmp.ge.s32.totalorder %s23_s27, 4   ;;  %s1258_s26 = smov %s1260_s28 }
 0x641   :  { %22 = sbr.rel (!%p20_p5) target bundleno = 2 (0x2), region = 109 }

// kernel: encoder_forward.21
= control target key start
LH: loop header
LB: loop body
LE: loop exit
PB: predicated region body
PF: predicated region fallthrough
CT: control target
= control target key end

     0   :  { %vm38_vm0 = vcmask 261120   ;;  %s501_s0 = inlined_call_operand.vmem [shape: f32[16,32], index: 0, kind: input, shape index: {}]   ;;  %s502_s1 = inlined_call_operand.vmem [shape: f32[1,32], index: 1, kind: input, shape index: {}]   ;;  %s503_s2 = inlined_call_operand.vmem [shape: f32[1,32], index: 2, kind: input, shape index: {}]   ;;  %s504_s3 = inlined_call_operand.vmem [shape: bf16[32,64], index: 3, kind: input, shape index: {}]   ;;  %s505_s4 = inlined_call_operand.vmem [shape: f32[1,64], index: 4, kind: input, shape index: {}]   ;;  %s506_s5 = inlined_call_operand.vmem [shape: bf16[64,32], index: 5, kind: input, shape index: {}]   ;;  %s507_s6 = inlined_call_operand.vmem [shape: f32[1,32], index: 6, kind: input, shape index: {}]   ;;  %s508_s7 = inlined_call_operand.vmem [shape: f32[1,32], index: 7, kind: input, shape index: {}]   ;;  %s509_s8 = inlined_call_operand.vmem [shape: f32[1,32], index: 8, kind: input, shape index: {}]   ;;  %s510_s9 = inlined_call_operand.hbm [shape: f32[16,32], index: 9, kind: output, shape index: {}]  }
   0x1   :  { %v428_v0 = vld [vmem:[%s501_s0] sm:$0xff] }
   0x2   :  { %v39_v1 = vsel %vm38_vm0, %v428_v0, 0.0 }
   0x3   :  { %40 = vadd.xlane.f32.xlu0 %v39_v1 }
   0x4   :  { %14 = vsyncpa [#allocation3], 0  ;;  %v435_v2 = vld [vmem:[%s501_s0 + $0x8] sm:$0xff]  ;;  %v371_v4 = vmov 32.0   ;;  %v315_v23 = vld [vmem:[%s504_s3] sm:$0xff]  ;;  %vm193_vm8 = vcmask 523264  }
   0x5   :  { %v42_v3 = vsel %vm38_vm0, %v435_v2, 0.0  ;;  %331 = vrcp.f32 %v371_v4  ;;  %v316_v21 = vld [vmem:[%s504_s3 + $0x8] sm:$0xff]  ;;  %v325_v42 = vld [vmem:[%s502_s1] ss:$0 sm:$0xff]  ;;  %v320_v52 = vld [vmem:[%s506_s5 + $0x18] sm:$0xff]  ;;  %s277_s12 = sshll.u32 %s510_s9, 4  ;;  %s278_s12 = int_to_ptr.hbm [resolvable:$true] %s277_s12 }
   0x6   :  { %130 = vmatpush.bf16.msra.mxu0 %v316_v21  ;;  %v326_v47 = vld [vmem:[%s503_s2] ss:$0 sm:$0xff]  ;;  %201 = vmatpush.bf16.msra.mxu1 %v320_v52  ;;  %v319_v53 = vld [vmem:[%s506_s5 + $0x10] sm:$0xff]  ;;  %v318_v54 = vld [vmem:[%s506_s5 + $0x8] sm:$0xff]  ;;  %s374_s0 = smov 8  }
   0x7   :  { %v317_v55 = vld [vmem:[%s506_s5] sm:$0xff] }
   0x8   :  { %v327_v56 = vld [vmem:[%s505_s4] ss:$0 sm:$0xff] }
   0xa   :  { %131 = vmatpush.bf16.msra.mxu0 %v315_v23  ;;  %202 = vmatpush.bf16.msra.mxu1 %v319_v53  ;;  %v330_v53 = vld [vmem:[%s509_s8] ss:$0 sm:$0xff]  ;;  %s373_s8 = smov 128  }
   0xb   :  { %43 = vadd.xlane.f32.xlu0 %v42_v3  ;;  %v332_v5 = vpop.eup %331 }
   0xc   :  { %v46_v6 = vmul.f32 32.0, %v332_v5  ;;  %vm50_vm1 = vweird.f32 %v332_v5 }
   0xe   :  { %v47_v7 = vsub.f32 1.0, %v46_v6  ;;  %203 = vmatpush.bf16.msra.mxu1 %v318_v54 }
  0x10   :  { %v48_v8 = vmul.f32 %v332_v5, %v47_v7 }
  0x12   :  { %v49_v9 = vadd.f32 %v332_v5, %v48_v8  ;;  %204 = vmatpush.bf16.msra.mxu1 %v317_v55 }
  0x14   :  { %v439_v10 = vsel %vm50_vm1, %v332_v5, %v49_v9 }
  0x76   :  { %v41_v11 = vpop.xlane.xlu0 %40 }
  0x77   :  { %v52_v12 = vmul.f32 %v439_v10, %v41_v11 }
  0x79   :  { %v54_v13 = vsub.f32 %v428_v0, %v52_v12 }
  0x7b   :  { %v56_v14 = vmul.f32 %v54_v13, %v54_v13 }
  0x7d   :  { %v58_v15 = vsel %vm38_vm0, %v56_v14, 0.0 }
  0x7e   :  { %59 = vadd.xlane.f32.xlu1 %v58_v15  ;;  %v44_v16 = vpop.xlane.xlu0 %43 }
  0x7f   :  { %v53_v17 = vmul.f32 %v439_v10, %v44_v16 }
  0x81   :  { %v55_v18 = vsub.f32 %v435_v2, %v53_v17 }
  0x83   :  { %v57_v19 = vmul.f32 %v55_v18, %v55_v18 }
  0x85   :  { %v61_v20 = vsel %vm38_vm0, %v57_v19, 0.0  ;;  %v328_v19 = vld [vmem:[%s507_s6] ss:$0 sm:$0xff] }
  0x86   :  { %62 = vadd.xlane.f32.xlu1 %v61_v20 }
  0xf1   :  { %v60_v22 = vpop.xlane.xlu1 %59 }
  0xf2   :  { %v64_v24 = vmul.f32 %v60_v22, %v439_v10 }
  0xf4   :  { %v66_v25 = vadd.f32 1e-05, %v64_v24 }
  0xf6   :  { %333 = vrsqrt.f32 %v66_v25  ;;  %vm74_vm3 = vweird.f32 %v66_v25 }
  0xf9   :  { %v63_v26 = vpop.xlane.xlu1 %62 }
  0xfa   :  { %v65_v27 = vmul.f32 %v63_v26, %v439_v10 }
  0xfc   :  { %v334_v28 = vpop.eup %333  ;;  %v67_v29 = vadd.f32 1e-05, %v65_v27 }
  0xfd   :  { %v69_v30 = vmul.f32 %v334_v28, %v66_v25  ;;  %vm75_vm2 = vweird.f32 %v334_v28 }
  0xfe   :  { %335 = vrsqrt.f32 %v67_v29  ;;  %vm76_vm4 = vmor %vm74_vm3, %vm75_vm2  ;;  %vm84_vm6 = vweird.f32 %v67_v29 }
  0xff   :  { %v70_v31 = vmul.f32 %v334_v28, %v69_v30 }
 0x101   :  { %v71_v32 = vmul.f32 0.5, %v70_v31 }
 0x103   :  { %v72_v33 = vsub.f32 1.5, %v71_v32 }
 0x104   :  { %v336_v34 = vpop.eup %335 }
 0x105   :  { %v73_v35 = vmul.f32 %v334_v28, %v72_v33  ;;  %v79_v36 = vmul.f32 %v336_v34, %v67_v29  ;;  %vm85_vm5 = vweird.f32 %v336_v34 }
 0x106   :  { %vm86_vm7 = vmor %vm84_vm6, %vm85_vm5 }
 0x107   :  { %v80_v37 = vmul.f32 %v336_v34, %v79_v36  ;;  %v77_v38 = vsel %vm76_vm4, %v334_v28, %v73_v35 }
 0x108   :  { %v88_v41 = vmul.f32 %v77_v38, %v54_v13 }
 0x109   :  { %v81_v39 = vmul.f32 0.5, %v80_v37 }
 0x10a   :  { %v93_v46 = vmul.f32 %v325_v42, %v88_v41 }
 0x10b   :  { %v82_v40 = vsub.f32 1.5, %v81_v39 }
 0x10c   :  { %v98_v49 = vadd.f32 %v326_v47, %v93_v46 }
 0x10d   :  { %v83_v43 = vmul.f32 %v336_v34, %v82_v40 }
 0x10f   :  { %v87_v44 = vsel %vm86_vm7, %v336_v34, %v83_v43 }
 0x110   :  { %v89_v45 = vmul.f32 %v87_v44, %v55_v18 }
 0x112   :  { %v94_v48 = vmul.f32 %v325_v42, %v89_v45 }
 0x114   :  { %v99_v50 = vadd.f32 %v326_v47, %v94_v48 }
 0x116   :  { %v100_v51 = vpack.c.bf16 %v99_v50, %v98_v49  ;;  %v329_v50 = vld [vmem:[%s508_s7] ss:$0 sm:$0xff]  ;;  %s372_s7 = smov [#allocation2]  }
 0x117   :  { %s275_s30 = sshll.u32 %s372_s7, 4  ;;  %s276_s30 = int_to_ptr.vmem [resolvable:$true] %s275_s30 }
 0x118   :  { %297 = vmatmul.msk.bf16.vlgmr.msra.gmra.mxu0 %vm38_vm0, %v100_v51 }
 0x195   :  { %v133_v57 = vpop.f32.mrf.mxu0 }
 0x196   :  { %v134_v58 = vadd.f32 %v327_v56, %v133_v57 }
 0x198   :  { %v140_v59 = vmul.f32 0.044715, %v134_v58  ;;  %v138_v13 = vmul.f32 0.5, %v134_v58 }
 0x19a   :  { %v142_v60 = vmul.f32 %v140_v59, %v134_v58 }
 0x19c   :  { %v144_v61 = vmul.f32 %v142_v60, %v134_v58 }
 0x19d   :  { %v135_v62 = vpop.f32.mrf.mxu0 }
 0x19e   :  { %v136_v63 = vadd.f32 %v327_v56, %v135_v62  ;;  %v146_v1 = vadd.f32 %v144_v61, %v134_v58 }
 0x1a0   :  { %v141_v3 = vmul.f32 0.044715, %v136_v63  ;;  %v148_v5 = vmul.f32 0.7978846, %v146_v1  ;;  %v139_v14 = vmul.f32 0.5, %v136_v63 }
 0x1a2   :  { %v143_v4 = vmul.f32 %v141_v3, %v136_v63  ;;  %337 = vtanh.f32 %v148_v5 }
 0x1a4   :  { %v145_v6 = vmul.f32 %v143_v4, %v136_v63 }
 0x1a6   :  { %v147_v7 = vadd.f32 %v145_v6, %v136_v63 }
 0x1a8   :  { %v149_v8 = vmul.f32 0.7978846, %v147_v7  ;;  %v338_v9 = vpop.eup %337 }
 0x1a9   :  { %v152_v11 = vadd.f32 1.0, %v338_v9 }
 0x1aa   :  { %339 = vtanh.f32 %v149_v8 }
 0x1ab   :  { %v154_v16 = vmul.f32 %v152_v11, %v138_v13 }
 0x1b0   :  { %v340_v12 = vpop.eup %339 }
 0x1b1   :  { %v153_v15 = vadd.f32 1.0, %v340_v12 }
 0x1b3   :  { %v155_v17 = vmul.f32 %v153_v15, %v139_v14 }
 0x1b5   :  { %v156_v18 = vpack.c.bf16 %v155_v17, %v154_v16 }
 0x1b7   :  { %314 = vmatmul.msk.bf16.vlgmr.msra.gmra.mxu1 %vm193_vm8, %v156_v18 }
 0x234   :  { %v206_v20 = vpop.f32.mrf.mxu1 }
 0x235   :  { %v207_v21 = vadd.f32 %v328_v19, %v206_v20 }
 0x237   :  { %v211_v22 = vadd.f32 %v207_v21, %v428_v0 }
 0x239   :  { %v215_v23 = vsel %vm38_vm0, %v211_v22, 0.0 }
 0x23a   :  { %216 = vadd.xlane.f32.xlu2 %v215_v23 }
 0x23c   :  { %v208_v24 = vpop.f32.mrf.mxu1 }
 0x23d   :  { %v209_v25 = vadd.f32 %v328_v19, %v208_v24 }
 0x23f   :  { %v212_v26 = vadd.f32 %v209_v25, %v435_v2 }
 0x241   :  { %v218_v27 = vsel %vm38_vm0, %v212_v26, 0.0 }
 0x242   :  { %219 = vadd.xlane.f32.xlu2 %v218_v27 }
 0x2ad   :  { %v217_v28 = vpop.xlane.xlu2 %216 }
 0x2ae   :  { %v221_v29 = vmul.f32 %v217_v28, %v439_v10 }
 0x2b0   :  { %v223_v30 = vsub.f32 %v211_v22, %v221_v29 }
 0x2b2   :  { %v225_v31 = vmul.f32 %v223_v30, %v223_v30 }
 0x2b4   :  { %v227_v32 = vsel %vm38_vm0, %v225_v31, 0.0 }
 0x2b5   :  { %228 = vadd.xlane.f32.xlu0 %v227_v32  ;;  %v220_v33 = vpop.xlane.xlu2 %219 }
 0x2b6   :  { %v222_v0 = vmul.f32 %v220_v33, %v439_v10 }
 0x2b8   :  { %v224_v34 = vsub.f32 %v212_v26, %v222_v0 }
 0x2ba   :  { %v226_v35 = vmul.f32 %v224_v34, %v224_v34 }
 0x2bc   :  { %v230_v36 = vsel %vm38_vm0, %v226_v35, 0.0 }
 0x2bd   :  { %231 = vadd.xlane.f32.xlu1 %v230_v36 }
 0x328   :  { %v229_v2 = vpop.xlane.xlu0 %228 }
 0x329   :  { %v233_v37 = vmul.f32 %v229_v2, %v439_v10 }
 0x32b   :  { %v235_v38 = vadd.f32 1e-05, %v233_v37 }
 0x32d   :  { %341 = vrsqrt.f32 %v235_v38  ;;  %vm243_vm10 = vweird.f32 %v235_v38 }
 0x330   :  { %v232_v39 = vpop.xlane.xlu1 %231 }
 0x331   :  { %v234_v40 = vmul.f32 %v232_v39, %v439_v10 }
 0x333   :  { %v342_v41 = vpop.eup %341  ;;  %v236_v42 = vadd.f32 1e-05, %v234_v40 }
 0x334   :  { %v238_v43 = vmul.f32 %v342_v41, %v235_v38  ;;  %vm244_vm9 = vweird.f32 %v342_v41 }
 0x335   :  { %343 = vrsqrt.f32 %v236_v42  ;;  %vm245_vm11 = vmor %vm243_vm10, %vm244_vm9  ;;  %vm253_vm13 = vweird.f32 %v236_v42 }
 0x336   :  { %v239_v44 = vmul.f32 %v342_v41, %v238_v43 }
 0x338   :  { %v240_v45 = vmul.f32 0.5, %v239_v44 }
 0x33a   :  { %v241_v46 = vsub.f32 1.5, %v240_v45 }
 0x33b   :  { %v344_v47 = vpop.eup %343 }
 0x33c   :  { %v242_v48 = vmul.f32 %v342_v41, %v241_v46  ;;  %v248_v49 = vmul.f32 %v344_v47, %v236_v42  ;;  %vm254_vm12 = vweird.f32 %v344_v47 }
 0x33d   :  { %vm255_vm14 = vmor %vm253_vm13, %vm254_vm12 }
 0x33e   :  { %v246_v51 = vsel %vm245_vm11, %v342_v41, %v242_v48  ;;  %v249_v52 = vmul.f32 %v344_v47, %v248_v49 }
 0x33f   :  { %v257_v10 = vmul.f32 %v246_v51, %v223_v30 }
 0x340   :  { %v250_v54 = vmul.f32 0.5, %v249_v52 }
 0x341   :  { %v262_v55 = vmul.f32 %v329_v50, %v257_v10 }
 0x342   :  { %v251_v56 = vsub.f32 1.5, %v250_v54 }
 0x343   :  { %v267_v57 = vadd.f32 %v330_v53, %v262_v55 }
 0x344   :  { %v252_v58 = vmul.f32 %v344_v47, %v251_v56 }
 0x345   :  { %269 = vst.msk [vmem:[#allocation2] sm:$0xff] %vm38_vm0, %v267_v57 }
 0x346   :  { %v256_v59 = vsel %vm255_vm14, %v344_v47, %v252_v58 }
 0x347   :  { %v258_v60 = vmul.f32 %v256_v59, %v224_v34 }
 0x349   :  { %v263_v61 = vmul.f32 %v329_v50, %v258_v60 }
 0x34b   :  { %v268_v62 = vadd.f32 %v330_v53, %v263_v61 }
 0x34d   :  { %270 = vst.msk [vmem:[#allocation2 + $0x8] sm:$0xff] %vm38_vm0, %v268_v62 }
 0x34e   :  { %283 = dma.vmem_to_hbm [thread:$0]  %s276_s30, 256, %s278_s12, [#allocation3], %s373_s8, %s373_s8, %s374_s0  }
 0x34f   :  { %369 = dma.done.wait [#allocation3], 256  }
 0x350   :  { %370 = vsyncadd [#allocation3], 4294967040 }
 0x351   :  { %288 = vsyncpa [#allocation3], 1 }

</bundles_post_ra>
